<compile_context>
chip_gen: v7x
topology: tpu7x:2x2x1
jax: 0.10.0
libtpu: 0.0.40
codegen_flags: <defaults>
</compile_context>

<pallas_src>
import functools

import jax
import jax.numpy as jnp
from jax import lax
from jax.experimental import pallas as pl
from jax.experimental.pallas import tpu as pltpu

K = 7            # spatial attention kernel size
PAD = K // 2     # = 3


def cbam_kernel(w_sp_ref, mask_ref, x_ref, w1t_ref, w2t_ref, o_ref, *, W):
    # w_sp_ref : (2*K*K,) f32 SMEM    -- 7x7 conv weights, [avg-chan | max-chan]
    # mask_ref : (K, PW)   f32 VMEM   -- column-validity mask per horizontal tap
    # x_ref    : (BB, C, HW) f32 VMEM -- lane-dense activation block
    # w1t_ref  : (C, Cr)  f32 VMEM    -- fc1 weight, transposed
    # w2t_ref  : (Cr, C)  f32 VMEM    -- fc2 weight, transposed
    # o_ref    : (BB, C, HW) f32 VMEM
    x = x_ref[...]
    BB, C, HW = x.shape
    PW = mask_ref.shape[1]
    M = (PW - HW) // 2                                  # lane pad on each side

    # ---------------- channel attention (fused avg/max MLP) ----------------
    avg_c = jnp.mean(x, axis=2)                         # (BB, C) lane reduce
    max_c = jnp.max(x, axis=2)                          # (BB, C)
    pooled = jnp.concatenate([avg_c, max_c], axis=0)    # (2*BB, C)
    h = jnp.dot(pooled, w1t_ref[...], preferred_element_type=jnp.float32)
    h = jnp.maximum(h, 0.0)                             # ReLU
    y = jnp.dot(h, w2t_ref[...], preferred_element_type=jnp.float32)
    ch_scale = jax.nn.sigmoid(y[:BB] + y[BB:])          # (BB, C)
    x = x * ch_scale[:, :, None]                        # broadcast over HW

    # ---------------- spatial attention (flattened-lane 7x7 conv) ----------
    avg_s = jnp.mean(x, axis=1)                         # (BB, HW)
    max_s = jnp.max(x, axis=1)                          # (BB, HW)
    stacked = jnp.stack([avg_s, max_s], axis=0)         # (2, BB, HW)
    zpad = jnp.zeros((2, BB, M), jnp.float32)
    padded = jnp.concatenate([zpad, stacked, zpad], axis=2)   # (2, BB, PW)

    # Hoisted: one column-masked copy per horizontal offset (7 lane-wide muls
    # total) so the hot tap loop never deals with row-wraparound reads.
    masks = mask_ref[...]                               # (K, PW)
    masked = [padded * masks[kx][None, None, :] for kx in range(K)]

    # Hoisted: all 98 conv weights out of SMEM before the MAC loop.
    w_avg = [w_sp_ref[t] for t in range(K * K)]
    w_max = [w_sp_ref[K * K + t] for t in range(K * K)]

    # Two independent accumulators (avg-channel / max-channel) -> two ~49-deep
    # add chains instead of one 98-deep chain; combined once at the end.
    acc_a = jnp.zeros((BB, HW), jnp.float32)
    acc_m = jnp.zeros((BB, HW), jnp.float32)
    for ky in range(K):                                 # unrolled 7x7 conv
        dy = ky - PAD
        for kx in range(K):
            dx = kx - PAD
            off = M + dy * W + dx                       # static lane shift
            s = masked[kx][:, :, off:off + HW]          # (2, BB, HW)
            t = ky * K + kx
            acc_a = acc_a + w_avg[t] * s[0]
            acc_m = acc_m + w_max[t] * s[1]

    sp_scale = jax.nn.sigmoid(acc_a + acc_m)            # (BB, HW)
    o_ref[...] = x * sp_scale[:, None, :]               # lane-dense store


def cbam_pallas(x, w1, w2, w_sp, *, batch_block=None):
    """x: (B,C,H,W) f32, w1: (Cr,C), w2: (C,Cr), w_sp: (1,2,K,K)."""
    B, C, H, W = x.shape
    Cr = w1.shape[0]
    HW = H * W
    M = PAD * W + PAD
    PW = HW + 2 * M

    # Whole batch per grid step by default (amortizes per-step overhead and
    # fattens the MLP matmul).  On v7x, pass batch_block=B//2 to give both
    # TensorCores a "parallel" grid step.
    bb = B if batch_block is None else batch_block
    assert B % bb == 0

    x_flat = x.reshape(B, C, HW)                        # lane-dense re-layout (free)
    w1t = jnp.transpose(w1)                             # (C, Cr)
    w2t = jnp.transpose(w2)                             # (Cr, C)
    w_sp_flat = w_sp.reshape(-1)                        # (2*K*K,)

    # Column-validity masks, one per horizontal tap offset dx = kx - PAD:
    # a padded-lane position with source column c is valid for offset dx iff
    # dx <= c < W + dx (the shifted read stays within the same spatial row).
    q = jnp.arange(PW, dtype=jnp.int32)
    c_src = jnp.remainder(q - M, W)
    masks = jnp.stack(
        [((c_src >= dx) & (c_src < W + dx)).astype(jnp.float32)
         for dx in range(-PAD, PAD + 1)], axis=0)       # (K, PW)

    kernel = functools.partial(cbam_kernel, W=W)

    out_flat = pl.pallas_call(
        kernel,
        out_shape=jax.ShapeDtypeStruct((B, C, HW), jnp.float32),
        grid=(B // bb,),
        in_specs=[
            pl.BlockSpec(memory_space=pltpu.MemorySpace.SMEM),   # w_sp_flat
            pl.BlockSpec((K, PW), lambda b: (0, 0)),             # masks
            pl.BlockSpec((bb, C, HW), lambda b: (b, 0, 0)),      # x
            pl.BlockSpec((C, Cr), lambda b: (0, 0)),             # w1t
            pl.BlockSpec((Cr, C), lambda b: (0, 0)),             # w2t
        ],
        out_specs=pl.BlockSpec((bb, C, HW), lambda b: (b, 0, 0)),
        compiler_params=pltpu.CompilerParams(
            dimension_semantics=("parallel",)),
    )(w_sp_flat, masks, x_flat, w1t, w2t)
    return out_flat.reshape(B, C, H, W)


def cbam_ref(x, w1, w2, w_sp):
    """Pure-JAX reference mirroring the PyTorch module.

    MLP matmuls use default precision (apples-to-apples with the kernel's MXU
    path); the 7x7 conv uses HIGHEST since the kernel conv is exact f32 MACs.
    """
    avg_c = jnp.mean(x, axis=(2, 3))
    max_c = jnp.max(x, axis=(2, 3))

    def mlp(v):
        h = jax.nn.relu(jnp.dot(v, w1.T))
        return jnp.dot(h, w2.T)

    ch = jax.nn.sigmoid(mlp(avg_c) + mlp(max_c))
    x = x * ch[:, :, None, None]

    avg_s = jnp.mean(x, axis=1, keepdims=True)
    max_s = jnp.max(x, axis=1, keepdims=True)
    st = jnp.concatenate([avg_s, max_s], axis=1)               # (B, 2, H, W)
    conv = lax.conv_general_dilated(
        st, w_sp, window_strides=(1, 1), padding="SAME",
        dimension_numbers=("NCHW", "OIHW", "NCHW"),
        precision=lax.Precision.HIGHEST)
    sp = jax.nn.sigmoid(conv)                                  # (B, 1, H, W)
    return x * sp


if __name__ == "__main__":
    B, C, H, W = 2, 32, 16, 16
    reduction = 16
    Cr = C // reduction                                        # = 2

    key = jax.random.PRNGKey(0)
    kxk, k1, k2, k3 = jax.random.split(key, 4)
    x = jax.random.normal(kxk, (B, C, H, W), dtype=jnp.float32)
    w1 = jax.random.normal(k1, (Cr, C), dtype=jnp.float32) * 0.1   # fc1 (1x1 conv)
    w2 = jax.random.normal(k2, (C, Cr), dtype=jnp.float32) * 0.1   # fc2 (1x1 conv)
    w_sp = jax.random.normal(k3, (1, 2, K, K), dtype=jnp.float32) * 0.1

    out = jax.block_until_ready(cbam_pallas(x, w1, w2, w_sp))
    ref = jax.block_until_ready(cbam_ref(x, w1, w2, w_sp))
    if not jnp.allclose(out, ref, rtol=1e-3, atol=1e-3):
        raise AssertionError("Pallas CBAM output mismatches reference")

    print("KERNEL_OK")
</pallas_src>

<mosaic_0001>
module attributes {stable_mosaic.version = 11 : i64} {
  func.func @cbam_kernel(%arg0: i32, %arg1: memref<98xf32, #tpu.memory_space<smem>>, %arg2: memref<7x358xf32, #tpu.memory_space<vmem>>, %arg3: memref<2x32x256xf32, #tpu.memory_space<vmem>>, %arg4: memref<32x2xf32, #tpu.memory_space<vmem>>, %arg5: memref<2x32xf32, #tpu.memory_space<vmem>>, %arg6: memref<2x32x256xf32, #tpu.memory_space<vmem>>) attributes {dimension_semantics = [#tpu.dimension_semantics<parallel>], iteration_bounds = array<i64: 1>, scalar_prefetch = 0 : i64, scratch_operands = 0 : i64, tpu.core_type = #tpu.core_type<tc>, window_params = [{transform_indices = @transform_0, window_bounds = array<i64: 98>}, {pipeline_mode = #tpu.pipeline_mode<synchronous>, transform_indices = @transform_1, window_bounds = array<i64: 7, 358>}, {transform_indices = @transform_2, window_bounds = array<i64: 2, 32, 256>}, {pipeline_mode = #tpu.pipeline_mode<synchronous>, transform_indices = @transform_3, window_bounds = array<i64: 32, 2>}, {pipeline_mode = #tpu.pipeline_mode<synchronous>, transform_indices = @transform_4, window_bounds = array<i64: 2, 32>}, {transform_indices = @transform_5, window_bounds = array<i64: 2, 32, 256>}]} {
    %c0 = arith.constant 0 : index
    %c0_0 = arith.constant 0 : index
    %c0_1 = arith.constant 0 : index
    %0 = vector.load %arg3[%c0, %c0_0, %c0_1] : memref<2x32x256xf32, #tpu.memory_space<vmem>>, vector<2x32x256xf32>
    %cst = arith.constant dense<0.000000e+00> : vector<2x32xf32>
    %1 = vector.multi_reduction <add>, %0, %cst [2] : vector<2x32x256xf32> to vector<2x32xf32>
    %cst_2 = arith.constant 2.560000e+02 : f32
    %2 = vector.broadcast %cst_2 : f32 to vector<2x32xf32>
    %3 = arith.divf %1, %2 : vector<2x32xf32>
    %cst_3 = arith.constant dense<0xFF800000> : vector<2x32xf32>
    %4 = vector.multi_reduction <maximumf>, %0, %cst_3 [2] : vector<2x32x256xf32> to vector<2x32xf32>
    %5 = tpu.concatenate %3, %4 in 0 : vector<2x32xf32>, vector<2x32xf32> -> vector<4x32xf32>
    %c0_4 = arith.constant 0 : index
    %c0_5 = arith.constant 0 : index
    %6 = vector.load %arg4[%c0_4, %c0_5] : memref<32x2xf32, #tpu.memory_space<vmem>>, vector<32x2xf32>
    %cst_6 = arith.constant dense<0.000000e+00> : vector<4x2xf32>
    %7 = tpu.matmul %5, %6, %cst_6 {dimension_numbers = #tpu.dot_dimension_numbers<[1], [0], [0], [1], [0, 0, 1, 1], [], []>} : vector<4x32xf32>, vector<32x2xf32>, vector<4x2xf32> -> vector<4x2xf32>
    %cst_7 = arith.constant 0.000000e+00 : f32
    %8 = vector.broadcast %cst_7 : f32 to vector<4x2xf32>
    %9 = arith.maximumf %7, %8 : vector<4x2xf32>
    %c0_8 = arith.constant 0 : index
    %c0_9 = arith.constant 0 : index
    %10 = vector.load %arg5[%c0_8, %c0_9] : memref<2x32xf32, #tpu.memory_space<vmem>>, vector<2x32xf32>
    %cst_10 = arith.constant dense<0.000000e+00> : vector<4x32xf32>
    %11 = tpu.matmul %9, %10, %cst_10 {dimension_numbers = #tpu.dot_dimension_numbers<[1], [0], [0], [1], [0, 0, 1, 1], [], []>} : vector<4x2xf32>, vector<2x32xf32>, vector<4x32xf32> -> vector<4x32xf32>
    %12 = vector.extract_strided_slice %11 {offsets = [0, 0], sizes = [2, 32], strides = [1, 1]} : vector<4x32xf32> to vector<2x32xf32>
    %13 = vector.extract_strided_slice %11 {offsets = [2, 0], sizes = [2, 32], strides = [1, 1]} : vector<4x32xf32> to vector<2x32xf32>
    %14 = arith.addf %12, %13 : vector<2x32xf32>
    %15 = arith.negf %14 : vector<2x32xf32>
    %16 = math.exp %15 : vector<2x32xf32>
    %cst_11 = arith.constant 1.000000e+00 : f32
    %17 = vector.broadcast %cst_11 : f32 to vector<2x32xf32>
    %18 = arith.addf %17, %16 : vector<2x32xf32>
    %19 = arith.divf %17, %18 : vector<2x32xf32>
    %20 = vector.shape_cast %19 : vector<2x32xf32> to vector<2x32x1xf32>
    %21 = vector.broadcast %20 : vector<2x32x1xf32> to vector<2x32x256xf32>
    %22 = arith.mulf %0, %21 : vector<2x32x256xf32>
    %cst_12 = arith.constant dense<0.000000e+00> : vector<2x256xf32>
    %23 = vector.multi_reduction <add>, %22, %cst_12 [1] : vector<2x32x256xf32> to vector<2x256xf32>
    %cst_13 = arith.constant 3.200000e+01 : f32
    %24 = vector.broadcast %cst_13 : f32 to vector<2x256xf32>
    %25 = arith.divf %23, %24 : vector<2x256xf32>
    %cst_14 = arith.constant dense<0xFF800000> : vector<2x256xf32>
    %26 = vector.multi_reduction <maximumf>, %22, %cst_14 [1] : vector<2x32x256xf32> to vector<2x256xf32>
    %27 = vector.shape_cast %25 : vector<2x256xf32> to vector<1x2x256xf32>
    %28 = vector.shape_cast %26 : vector<2x256xf32> to vector<1x2x256xf32>
    %29 = tpu.concatenate %27, %28 in 0 : vector<1x2x256xf32>, vector<1x2x256xf32> -> vector<2x2x256xf32>
    %cst_15 = arith.constant 0.000000e+00 : f32
    %30 = vector.broadcast %cst_15 : f32 to vector<2x2x51xf32>
    %31 = tpu.concatenate %30, %29, %30 in 2 : vector<2x2x51xf32>, vector<2x2x256xf32>, vector<2x2x51xf32> -> vector<2x2x358xf32>
    %c0_16 = arith.constant 0 : index
    %c0_17 = arith.constant 0 : index
    %32 = vector.load %arg2[%c0_16, %c0_17] : memref<7x358xf32, #tpu.memory_space<vmem>>, vector<7x358xf32>
    %33 = vector.extract_strided_slice %32 {offsets = [0, 0], sizes = [1, 358], strides = [1, 1]} : vector<7x358xf32> to vector<1x358xf32>
    %34 = vector.shape_cast %33 : vector<1x358xf32> to vector<358xf32>
    %35 = vector.shape_cast %34 : vector<358xf32> to vector<1x1x358xf32>
    %36 = vector.broadcast %35 : vector<1x1x358xf32> to vector<2x2x358xf32>
    %37 = arith.mulf %31, %36 : vector<2x2x358xf32>
    %38 = vector.extract_strided_slice %32 {offsets = [1, 0], sizes = [1, 358], strides = [1, 1]} : vector<7x358xf32> to vector<1x358xf32>
    %39 = vector.shape_cast %38 : vector<1x358xf32> to vector<358xf32>
    %40 = vector.shape_cast %39 : vector<358xf32> to vector<1x1x358xf32>
    %41 = vector.broadcast %40 : vector<1x1x358xf32> to vector<2x2x358xf32>
    %42 = arith.mulf %31, %41 : vector<2x2x358xf32>
    %43 = vector.extract_strided_slice %32 {offsets = [2, 0], sizes = [1, 358], strides = [1, 1]} : vector<7x358xf32> to vector<1x358xf32>
    %44 = vector.shape_cast %43 : vector<1x358xf32> to vector<358xf32>
    %45 = vector.shape_cast %44 : vector<358xf32> to vector<1x1x358xf32>
    %46 = vector.broadcast %45 : vector<1x1x358xf32> to vector<2x2x358xf32>
    %47 = arith.mulf %31, %46 : vector<2x2x358xf32>
    %48 = vector.extract_strided_slice %32 {offsets = [3, 0], sizes = [1, 358], strides = [1, 1]} : vector<7x358xf32> to vector<1x358xf32>
    %49 = vector.shape_cast %48 : vector<1x358xf32> to vector<358xf32>
    %50 = vector.shape_cast %49 : vector<358xf32> to vector<1x1x358xf32>
    %51 = vector.broadcast %50 : vector<1x1x358xf32> to vector<2x2x358xf32>
    %52 = arith.mulf %31, %51 : vector<2x2x358xf32>
    %53 = vector.extract_strided_slice %32 {offsets = [4, 0], sizes = [1, 358], strides = [1, 1]} : vector<7x358xf32> to vector<1x358xf32>
    %54 = vector.shape_cast %53 : vector<1x358xf32> to vector<358xf32>
    %55 = vector.shape_cast %54 : vector<358xf32> to vector<1x1x358xf32>
    %56 = vector.broadcast %55 : vector<1x1x358xf32> to vector<2x2x358xf32>
    %57 = arith.mulf %31, %56 : vector<2x2x358xf32>
    %58 = vector.extract_strided_slice %32 {offsets = [5, 0], sizes = [1, 358], strides = [1, 1]} : vector<7x358xf32> to vector<1x358xf32>
    %59 = vector.shape_cast %58 : vector<1x358xf32> to vector<358xf32>
    %60 = vector.shape_cast %59 : vector<358xf32> to vector<1x1x358xf32>
    %61 = vector.broadcast %60 : vector<1x1x358xf32> to vector<2x2x358xf32>
    %62 = arith.mulf %31, %61 : vector<2x2x358xf32>
    %63 = vector.extract_strided_slice %32 {offsets = [6, 0], sizes = [1, 358], strides = [1, 1]} : vector<7x358xf32> to vector<1x358xf32>
    %64 = vector.shape_cast %63 : vector<1x358xf32> to vector<358xf32>
    %65 = vector.shape_cast %64 : vector<358xf32> to vector<1x1x358xf32>
    %66 = vector.broadcast %65 : vector<1x1x358xf32> to vector<2x2x358xf32>
    %67 = arith.mulf %31, %66 : vector<2x2x358xf32>
    %c0_18 = arith.constant 0 : index
    %68 = memref.load %arg1[%c0_18] : memref<98xf32, #tpu.memory_space<smem>>
    %c1 = arith.constant 1 : index
    %69 = memref.load %arg1[%c1] : memref<98xf32, #tpu.memory_space<smem>>
    %c2 = arith.constant 2 : index
    %70 = memref.load %arg1[%c2] : memref<98xf32, #tpu.memory_space<smem>>
    %c3 = arith.constant 3 : index
    %71 = memref.load %arg1[%c3] : memref<98xf32, #tpu.memory_space<smem>>
    %c4 = arith.constant 4 : index
    %72 = memref.load %arg1[%c4] : memref<98xf32, #tpu.memory_space<smem>>
    %c5 = arith.constant 5 : index
    %73 = memref.load %arg1[%c5] : memref<98xf32, #tpu.memory_space<smem>>
    %c6 = arith.constant 6 : index
    %74 = memref.load %arg1[%c6] : memref<98xf32, #tpu.memory_space<smem>>
    %c7 = arith.constant 7 : index
    %75 = memref.load %arg1[%c7] : memref<98xf32, #tpu.memory_space<smem>>
    %c8 = arith.constant 8 : index
    %76 = memref.load %arg1[%c8] : memref<98xf32, #tpu.memory_space<smem>>
    %c9 = arith.constant 9 : index
    %77 = memref.load %arg1[%c9] : memref<98xf32, #tpu.memory_space<smem>>
    %c10 = arith.constant 10 : index
    %78 = memref.load %arg1[%c10] : memref<98xf32, #tpu.memory_space<smem>>
    %c11 = arith.constant 11 : index
    %79 = memref.load %arg1[%c11] : memref<98xf32, #tpu.memory_space<smem>>
    %c12 = arith.constant 12 : index
    %80 = memref.load %arg1[%c12] : memref<98xf32, #tpu.memory_space<smem>>
    %c13 = arith.constant 13 : index
    %81 = memref.load %arg1[%c13] : memref<98xf32, #tpu.memory_space<smem>>
    %c14 = arith.constant 14 : index
    %82 = memref.load %arg1[%c14] : memref<98xf32, #tpu.memory_space<smem>>
    %c15 = arith.constant 15 : index
    %83 = memref.load %arg1[%c15] : memref<98xf32, #tpu.memory_space<smem>>
    %c16 = arith.constant 16 : index
    %84 = memref.load %arg1[%c16] : memref<98xf32, #tpu.memory_space<smem>>
    %c17 = arith.constant 17 : index
    %85 = memref.load %arg1[%c17] : memref<98xf32, #tpu.memory_space<smem>>
    %c18 = arith.constant 18 : index
    %86 = memref.load %arg1[%c18] : memref<98xf32, #tpu.memory_space<smem>>
    %c19 = arith.constant 19 : index
    %87 = memref.load %arg1[%c19] : memref<98xf32, #tpu.memory_space<smem>>
    %c20 = arith.constant 20 : index
    %88 = memref.load %arg1[%c20] : memref<98xf32, #tpu.memory_space<smem>>
    %c21 = arith.constant 21 : index
    %89 = memref.load %arg1[%c21] : memref<98xf32, #tpu.memory_space<smem>>
    %c22 = arith.constant 22 : index
    %90 = memref.load %arg1[%c22] : memref<98xf32, #tpu.memory_space<smem>>
    %c23 = arith.constant 23 : index
    %91 = memref.load %arg1[%c23] : memref<98xf32, #tpu.memory_space<smem>>
    %c24 = arith.constant 24 : index
    %92 = memref.load %arg1[%c24] : memref<98xf32, #tpu.memory_space<smem>>
    %c25 = arith.constant 25 : index
    %93 = memref.load %arg1[%c25] : memref<98xf32, #tpu.memory_space<smem>>
    %c26 = arith.constant 26 : index
    %94 = memref.load %arg1[%c26] : memref<98xf32, #tpu.memory_space<smem>>
    %c27 = arith.constant 27 : index
    %95 = memref.load %arg1[%c27] : memref<98xf32, #tpu.memory_space<smem>>
    %c28 = arith.constant 28 : index
    %96 = memref.load %arg1[%c28] : memref<98xf32, #tpu.memory_space<smem>>
    %c29 = arith.constant 29 : index
    %97 = memref.load %arg1[%c29] : memref<98xf32, #tpu.memory_space<smem>>
    %c30 = arith.constant 30 : index
    %98 = memref.load %arg1[%c30] : memref<98xf32, #tpu.memory_space<smem>>
    %c31 = arith.constant 31 : index
    %99 = memref.load %arg1[%c31] : memref<98xf32, #tpu.memory_space<smem>>
    %c32 = arith.constant 32 : index
    %100 = memref.load %arg1[%c32] : memref<98xf32, #tpu.memory_space<smem>>
    %c33 = arith.constant 33 : index
    %101 = memref.load %arg1[%c33] : memref<98xf32, #tpu.memory_space<smem>>
    %c34 = arith.constant 34 : index
    %102 = memref.load %arg1[%c34] : memref<98xf32, #tpu.memory_space<smem>>
    %c35 = arith.constant 35 : index
    %103 = memref.load %arg1[%c35] : memref<98xf32, #tpu.memory_space<smem>>
    %c36 = arith.constant 36 : index
    %104 = memref.load %arg1[%c36] : memref<98xf32, #tpu.memory_space<smem>>
    %c37 = arith.constant 37 : index
    %105 = memref.load %arg1[%c37] : memref<98xf32, #tpu.memory_space<smem>>
    %c38 = arith.constant 38 : index
    %106 = memref.load %arg1[%c38] : memref<98xf32, #tpu.memory_space<smem>>
    %c39 = arith.constant 39 : index
    %107 = memref.load %arg1[%c39] : memref<98xf32, #tpu.memory_space<smem>>
    %c40 = arith.constant 40 : index
    %108 = memref.load %arg1[%c40] : memref<98xf32, #tpu.memory_space<smem>>
    %c41 = arith.constant 41 : index
    %109 = memref.load %arg1[%c41] : memref<98xf32, #tpu.memory_space<smem>>
    %c42 = arith.constant 42 : index
    %110 = memref.load %arg1[%c42] : memref<98xf32, #tpu.memory_space<smem>>
    %c43 = arith.constant 43 : index
    %111 = memref.load %arg1[%c43] : memref<98xf32, #tpu.memory_space<smem>>
    %c44 = arith.constant 44 : index
    %112 = memref.load %arg1[%c44] : memref<98xf32, #tpu.memory_space<smem>>
    %c45 = arith.constant 45 : index
    %113 = memref.load %arg1[%c45] : memref<98xf32, #tpu.memory_space<smem>>
    %c46 = arith.constant 46 : index
    %114 = memref.load %arg1[%c46] : memref<98xf32, #tpu.memory_space<smem>>
    %c47 = arith.constant 47 : index
    %115 = memref.load %arg1[%c47] : memref<98xf32, #tpu.memory_space<smem>>
    %c48 = arith.constant 48 : index
    %116 = memref.load %arg1[%c48] : memref<98xf32, #tpu.memory_space<smem>>
    %c49 = arith.constant 49 : index
    %117 = memref.load %arg1[%c49] : memref<98xf32, #tpu.memory_space<smem>>
    %c50 = arith.constant 50 : index
    %118 = memref.load %arg1[%c50] : memref<98xf32, #tpu.memory_space<smem>>
    %c51 = arith.constant 51 : index
    %119 = memref.load %arg1[%c51] : memref<98xf32, #tpu.memory_space<smem>>
    %c52 = arith.constant 52 : index
    %120 = memref.load %arg1[%c52] : memref<98xf32, #tpu.memory_space<smem>>
    %c53 = arith.constant 53 : index
    %121 = memref.load %arg1[%c53] : memref<98xf32, #tpu.memory_space<smem>>
    %c54 = arith.constant 54 : index
    %122 = memref.load %arg1[%c54] : memref<98xf32, #tpu.memory_space<smem>>
    %c55 = arith.constant 55 : index
    %123 = memref.load %arg1[%c55] : memref<98xf32, #tpu.memory_space<smem>>
    %c56 = arith.constant 56 : index
    %124 = memref.load %arg1[%c56] : memref<98xf32, #tpu.memory_space<smem>>
    %c57 = arith.constant 57 : index
    %125 = memref.load %arg1[%c57] : memref<98xf32, #tpu.memory_space<smem>>
    %c58 = arith.constant 58 : index
    %126 = memref.load %arg1[%c58] : memref<98xf32, #tpu.memory_space<smem>>
    %c59 = arith.constant 59 : index
    %127 = memref.load %arg1[%c59] : memref<98xf32, #tpu.memory_space<smem>>
    %c60 = arith.constant 60 : index
    %128 = memref.load %arg1[%c60] : memref<98xf32, #tpu.memory_space<smem>>
    %c61 = arith.constant 61 : index
    %129 = memref.load %arg1[%c61] : memref<98xf32, #tpu.memory_space<smem>>
    %c62 = arith.constant 62 : index
    %130 = memref.load %arg1[%c62] : memref<98xf32, #tpu.memory_space<smem>>
    %c63 = arith.constant 63 : index
    %131 = memref.load %arg1[%c63] : memref<98xf32, #tpu.memory_space<smem>>
    %c64 = arith.constant 64 : index
    %132 = memref.load %arg1[%c64] : memref<98xf32, #tpu.memory_space<smem>>
    %c65 = arith.constant 65 : index
    %133 = memref.load %arg1[%c65] : memref<98xf32, #tpu.memory_space<smem>>
    %c66 = arith.constant 66 : index
    %134 = memref.load %arg1[%c66] : memref<98xf32, #tpu.memory_space<smem>>
    %c67 = arith.constant 67 : index
    %135 = memref.load %arg1[%c67] : memref<98xf32, #tpu.memory_space<smem>>
    %c68 = arith.constant 68 : index
    %136 = memref.load %arg1[%c68] : memref<98xf32, #tpu.memory_space<smem>>
    %c69 = arith.constant 69 : index
    %137 = memref.load %arg1[%c69] : memref<98xf32, #tpu.memory_space<smem>>
    %c70 = arith.constant 70 : index
    %138 = memref.load %arg1[%c70] : memref<98xf32, #tpu.memory_space<smem>>
    %c71 = arith.constant 71 : index
    %139 = memref.load %arg1[%c71] : memref<98xf32, #tpu.memory_space<smem>>
    %c72 = arith.constant 72 : index
    %140 = memref.load %arg1[%c72] : memref<98xf32, #tpu.memory_space<smem>>
    %c73 = arith.constant 73 : index
    %141 = memref.load %arg1[%c73] : memref<98xf32, #tpu.memory_space<smem>>
    %c74 = arith.constant 74 : index
    %142 = memref.load %arg1[%c74] : memref<98xf32, #tpu.memory_space<smem>>
    %c75 = arith.constant 75 : index
    %143 = memref.load %arg1[%c75] : memref<98xf32, #tpu.memory_space<smem>>
    %c76 = arith.constant 76 : index
    %144 = memref.load %arg1[%c76] : memref<98xf32, #tpu.memory_space<smem>>
    %c77 = arith.constant 77 : index
    %145 = memref.load %arg1[%c77] : memref<98xf32, #tpu.memory_space<smem>>
    %c78 = arith.constant 78 : index
    %146 = memref.load %arg1[%c78] : memref<98xf32, #tpu.memory_space<smem>>
    %c79 = arith.constant 79 : index
    %147 = memref.load %arg1[%c79] : memref<98xf32, #tpu.memory_space<smem>>
    %c80 = arith.constant 80 : index
    %148 = memref.load %arg1[%c80] : memref<98xf32, #tpu.memory_space<smem>>
    %c81 = arith.constant 81 : index
    %149 = memref.load %arg1[%c81] : memref<98xf32, #tpu.memory_space<smem>>
    %c82 = arith.constant 82 : index
    %150 = memref.load %arg1[%c82] : memref<98xf32, #tpu.memory_space<smem>>
    %c83 = arith.constant 83 : index
    %151 = memref.load %arg1[%c83] : memref<98xf32, #tpu.memory_space<smem>>
    %c84 = arith.constant 84 : index
    %152 = memref.load %arg1[%c84] : memref<98xf32, #tpu.memory_space<smem>>
    %c85 = arith.constant 85 : index
    %153 = memref.load %arg1[%c85] : memref<98xf32, #tpu.memory_space<smem>>
    %c86 = arith.constant 86 : index
    %154 = memref.load %arg1[%c86] : memref<98xf32, #tpu.memory_space<smem>>
    %c87 = arith.constant 87 : index
    %155 = memref.load %arg1[%c87] : memref<98xf32, #tpu.memory_space<smem>>
    %c88 = arith.constant 88 : index
    %156 = memref.load %arg1[%c88] : memref<98xf32, #tpu.memory_space<smem>>
    %c89 = arith.constant 89 : index
    %157 = memref.load %arg1[%c89] : memref<98xf32, #tpu.memory_space<smem>>
    %c90 = arith.constant 90 : index
    %158 = memref.load %arg1[%c90] : memref<98xf32, #tpu.memory_space<smem>>
    %c91 = arith.constant 91 : index
    %159 = memref.load %arg1[%c91] : memref<98xf32, #tpu.memory_space<smem>>
    %c92 = arith.constant 92 : index
    %160 = memref.load %arg1[%c92] : memref<98xf32, #tpu.memory_space<smem>>
    %c93 = arith.constant 93 : index
    %161 = memref.load %arg1[%c93] : memref<98xf32, #tpu.memory_space<smem>>
    %c94 = arith.constant 94 : index
    %162 = memref.load %arg1[%c94] : memref<98xf32, #tpu.memory_space<smem>>
    %c95 = arith.constant 95 : index
    %163 = memref.load %arg1[%c95] : memref<98xf32, #tpu.memory_space<smem>>
    %c96 = arith.constant 96 : index
    %164 = memref.load %arg1[%c96] : memref<98xf32, #tpu.memory_space<smem>>
    %c97 = arith.constant 97 : index
    %165 = memref.load %arg1[%c97] : memref<98xf32, #tpu.memory_space<smem>>
    %cst_19 = arith.constant 0.000000e+00 : f32
    %166 = vector.broadcast %cst_19 : f32 to vector<2x256xf32>
    %cst_20 = arith.constant 0.000000e+00 : f32
    %167 = vector.broadcast %cst_20 : f32 to vector<2x256xf32>
    %168 = vector.extract_strided_slice %37 {offsets = [0, 0, 0], sizes = [2, 2, 256], strides = [1, 1, 1]} : vector<2x2x358xf32> to vector<2x2x256xf32>
    %169 = vector.extract_strided_slice %168 {offsets = [0, 0, 0], sizes = [1, 2, 256], strides = [1, 1, 1]} : vector<2x2x256xf32> to vector<1x2x256xf32>
    %170 = vector.shape_cast %169 : vector<1x2x256xf32> to vector<2x256xf32>
    %171 = vector.broadcast %68 : f32 to vector<2x256xf32>
    %172 = arith.mulf %171, %170 : vector<2x256xf32>
    %173 = arith.addf %166, %172 : vector<2x256xf32>
    %174 = vector.extract_strided_slice %168 {offsets = [1, 0, 0], sizes = [1, 2, 256], strides = [1, 1, 1]} : vector<2x2x256xf32> to vector<1x2x256xf32>
    %175 = vector.shape_cast %174 : vector<1x2x256xf32> to vector<2x256xf32>
    %176 = vector.broadcast %117 : f32 to vector<2x256xf32>
    %177 = arith.mulf %176, %175 : vector<2x256xf32>
    %178 = arith.addf %167, %177 : vector<2x256xf32>
    %179 = vector.extract_strided_slice %42 {offsets = [0, 0, 1], sizes = [2, 2, 256], strides = [1, 1, 1]} : vector<2x2x358xf32> to vector<2x2x256xf32>
    %180 = vector.extract_strided_slice %179 {offsets = [0, 0, 0], sizes = [1, 2, 256], strides = [1, 1, 1]} : vector<2x2x256xf32> to vector<1x2x256xf32>
    %181 = vector.shape_cast %180 : vector<1x2x256xf32> to vector<2x256xf32>
    %182 = vector.broadcast %69 : f32 to vector<2x256xf32>
    %183 = arith.mulf %182, %181 : vector<2x256xf32>
    %184 = arith.addf %173, %183 : vector<2x256xf32>
    %185 = vector.extract_strided_slice %179 {offsets = [1, 0, 0], sizes = [1, 2, 256], strides = [1, 1, 1]} : vector<2x2x256xf32> to vector<1x2x256xf32>
    %186 = vector.shape_cast %185 : vector<1x2x256xf32> to vector<2x256xf32>
    %187 = vector.broadcast %118 : f32 to vector<2x256xf32>
    %188 = arith.mulf %187, %186 : vector<2x256xf32>
    %189 = arith.addf %178, %188 : vector<2x256xf32>
    %190 = vector.extract_strided_slice %47 {offsets = [0, 0, 2], sizes = [2, 2, 256], strides = [1, 1, 1]} : vector<2x2x358xf32> to vector<2x2x256xf32>
    %191 = vector.extract_strided_slice %190 {offsets = [0, 0, 0], sizes = [1, 2, 256], strides = [1, 1, 1]} : vector<2x2x256xf32> to vector<1x2x256xf32>
    %192 = vector.shape_cast %191 : vector<1x2x256xf32> to vector<2x256xf32>
    %193 = vector.broadcast %70 : f32 to vector<2x256xf32>
    %194 = arith.mulf %193, %192 : vector<2x256xf32>
    %195 = arith.addf %184, %194 : vector<2x256xf32>
    %196 = vector.extract_strided_slice %190 {offsets = [1, 0, 0], sizes = [1, 2, 256], strides = [1, 1, 1]} : vector<2x2x256xf32> to vector<1x2x256xf32>
    %197 = vector.shape_cast %196 : vector<1x2x256xf32> to vector<2x256xf32>
    %198 = vector.broadcast %119 : f32 to vector<2x256xf32>
    %199 = arith.mulf %198, %197 : vector<2x256xf32>
    %200 = arith.addf %189, %199 : vector<2x256xf32>
    %201 = vector.extract_strided_slice %52 {offsets = [0, 0, 3], sizes = [2, 2, 256], strides = [1, 1, 1]} : vector<2x2x358xf32> to vector<2x2x256xf32>
    %202 = vector.extract_strided_slice %201 {offsets = [0, 0, 0], sizes = [1, 2, 256], strides = [1, 1, 1]} : vector<2x2x256xf32> to vector<1x2x256xf32>
    %203 = vector.shape_cast %202 : vector<1x2x256xf32> to vector<2x256xf32>
    %204 = vector.broadcast %71 : f32 to vector<2x256xf32>
    %205 = arith.mulf %204, %203 : vector<2x256xf32>
    %206 = arith.addf %195, %205 : vector<2x256xf32>
    %207 = vector.extract_strided_slice %201 {offsets = [1, 0, 0], sizes = [1, 2, 256], strides = [1, 1, 1]} : vector<2x2x256xf32> to vector<1x2x256xf32>
    %208 = vector.shape_cast %207 : vector<1x2x256xf32> to vector<2x256xf32>
    %209 = vector.broadcast %120 : f32 to vector<2x256xf32>
    %210 = arith.mulf %209, %208 : vector<2x256xf32>
    %211 = arith.addf %200, %210 : vector<2x256xf32>
    %212 = vector.extract_strided_slice %57 {offsets = [0, 0, 4], sizes = [2, 2, 256], strides = [1, 1, 1]} : vector<2x2x358xf32> to vector<2x2x256xf32>
    %213 = vector.extract_strided_slice %212 {offsets = [0, 0, 0], sizes = [1, 2, 256], strides = [1, 1, 1]} : vector<2x2x256xf32> to vector<1x2x256xf32>
    %214 = vector.shape_cast %213 : vector<1x2x256xf32> to vector<2x256xf32>
    %215 = vector.broadcast %72 : f32 to vector<2x256xf32>
    %216 = arith.mulf %215, %214 : vector<2x256xf32>
    %217 = arith.addf %206, %216 : vector<2x256xf32>
    %218 = vector.extract_strided_slice %212 {offsets = [1, 0, 0], sizes = [1, 2, 256], strides = [1, 1, 1]} : vector<2x2x256xf32> to vector<1x2x256xf32>
    %219 = vector.shape_cast %218 : vector<1x2x256xf32> to vector<2x256xf32>
    %220 = vector.broadcast %121 : f32 to vector<2x256xf32>
    %221 = arith.mulf %220, %219 : vector<2x256xf32>
    %222 = arith.addf %211, %221 : vector<2x256xf32>
    %223 = vector.extract_strided_slice %62 {offsets = [0, 0, 5], sizes = [2, 2, 256], strides = [1, 1, 1]} : vector<2x2x358xf32> to vector<2x2x256xf32>
    %224 = vector.extract_strided_slice %223 {offsets = [0, 0, 0], sizes = [1, 2, 256], strides = [1, 1, 1]} : vector<2x2x256xf32> to vector<1x2x256xf32>
    %225 = vector.shape_cast %224 : vector<1x2x256xf32> to vector<2x256xf32>
    %226 = vector.broadcast %73 : f32 to vector<2x256xf32>
    %227 = arith.mulf %226, %225 : vector<2x256xf32>
    %228 = arith.addf %217, %227 : vector<2x256xf32>
    %229 = vector.extract_strided_slice %223 {offsets = [1, 0, 0], sizes = [1, 2, 256], strides = [1, 1, 1]} : vector<2x2x256xf32> to vector<1x2x256xf32>
    %230 = vector.shape_cast %229 : vector<1x2x256xf32> to vector<2x256xf32>
    %231 = vector.broadcast %122 : f32 to vector<2x256xf32>
    %232 = arith.mulf %231, %230 : vector<2x256xf32>
    %233 = arith.addf %222, %232 : vector<2x256xf32>
    %234 = vector.extract_strided_slice %67 {offsets = [0, 0, 6], sizes = [2, 2, 256], strides = [1, 1, 1]} : vector<2x2x358xf32> to vector<2x2x256xf32>
    %235 = vector.extract_strided_slice %234 {offsets = [0, 0, 0], sizes = [1, 2, 256], strides = [1, 1, 1]} : vector<2x2x256xf32> to vector<1x2x256xf32>
    %236 = vector.shape_cast %235 : vector<1x2x256xf32> to vector<2x256xf32>
    %237 = vector.broadcast %74 : f32 to vector<2x256xf32>
    %238 = arith.mulf %237, %236 : vector<2x256xf32>
    %239 = arith.addf %228, %238 : vector<2x256xf32>
    %240 = vector.extract_strided_slice %234 {offsets = [1, 0, 0], sizes = [1, 2, 256], strides = [1, 1, 1]} : vector<2x2x256xf32> to vector<1x2x256xf32>
    %241 = vector.shape_cast %240 : vector<1x2x256xf32> to vector<2x256xf32>
    %242 = vector.broadcast %123 : f32 to vector<2x256xf32>
    %243 = arith.mulf %242, %241 : vector<2x256xf32>
    %244 = arith.addf %233, %243 : vector<2x256xf32>
    %245 = vector.extract_strided_slice %37 {offsets = [0, 0, 16], sizes = [2, 2, 256], strides = [1, 1, 1]} : vector<2x2x358xf32> to vector<2x2x256xf32>
    %246 = vector.extract_strided_slice %245 {offsets = [0, 0, 0], sizes = [1, 2, 256], strides = [1, 1, 1]} : vector<2x2x256xf32> to vector<1x2x256xf32>
    %247 = vector.shape_cast %246 : vector<1x2x256xf32> to vector<2x256xf32>
    %248 = vector.broadcast %75 : f32 to vector<2x256xf32>
    %249 = arith.mulf %248, %247 : vector<2x256xf32>
    %250 = arith.addf %239, %249 : vector<2x256xf32>
    %251 = vector.extract_strided_slice %245 {offsets = [1, 0, 0], sizes = [1, 2, 256], strides = [1, 1, 1]} : vector<2x2x256xf32> to vector<1x2x256xf32>
    %252 = vector.shape_cast %251 : vector<1x2x256xf32> to vector<2x256xf32>
    %253 = vector.broadcast %124 : f32 to vector<2x256xf32>
    %254 = arith.mulf %253, %252 : vector<2x256xf32>
    %255 = arith.addf %244, %254 : vector<2x256xf32>
    %256 = vector.extract_strided_slice %42 {offsets = [0, 0, 17], sizes = [2, 2, 256], strides = [1, 1, 1]} : vector<2x2x358xf32> to vector<2x2x256xf32>
    %257 = vector.extract_strided_slice %256 {offsets = [0, 0, 0], sizes = [1, 2, 256], strides = [1, 1, 1]} : vector<2x2x256xf32> to vector<1x2x256xf32>
    %258 = vector.shape_cast %257 : vector<1x2x256xf32> to vector<2x256xf32>
    %259 = vector.broadcast %76 : f32 to vector<2x256xf32>
    %260 = arith.mulf %259, %258 : vector<2x256xf32>
    %261 = arith.addf %250, %260 : vector<2x256xf32>
    %262 = vector.extract_strided_slice %256 {offsets = [1, 0, 0], sizes = [1, 2, 256], strides = [1, 1, 1]} : vector<2x2x256xf32> to vector<1x2x256xf32>
    %263 = vector.shape_cast %262 : vector<1x2x256xf32> to vector<2x256xf32>
    %264 = vector.broadcast %125 : f32 to vector<2x256xf32>
    %265 = arith.mulf %264, %263 : vector<2x256xf32>
    %266 = arith.addf %255, %265 : vector<2x256xf32>
    %267 = vector.extract_strided_slice %47 {offsets = [0, 0, 18], sizes = [2, 2, 256], strides = [1, 1, 1]} : vector<2x2x358xf32> to vector<2x2x256xf32>
    %268 = vector.extract_strided_slice %267 {offsets = [0, 0, 0], sizes = [1, 2, 256], strides = [1, 1, 1]} : vector<2x2x256xf32> to vector<1x2x256xf32>
    %269 = vector.shape_cast %268 : vector<1x2x256xf32> to vector<2x256xf32>
    %270 = vector.broadcast %77 : f32 to vector<2x256xf32>
    %271 = arith.mulf %270, %269 : vector<2x256xf32>
    %272 = arith.addf %261, %271 : vector<2x256xf32>
    %273 = vector.extract_strided_slice %267 {offsets = [1, 0, 0], sizes = [1, 2, 256], strides = [1, 1, 1]} : vector<2x2x256xf32> to vector<1x2x256xf32>
    %274 = vector.shape_cast %273 : vector<1x2x256xf32> to vector<2x256xf32>
    %275 = vector.broadcast %126 : f32 to vector<2x256xf32>
    %276 = arith.mulf %275, %274 : vector<2x256xf32>
    %277 = arith.addf %266, %276 : vector<2x256xf32>
    %278 = vector.extract_strided_slice %52 {offsets = [0, 0, 19], sizes = [2, 2, 256], strides = [1, 1, 1]} : vector<2x2x358xf32> to vector<2x2x256xf32>
    %279 = vector.extract_strided_slice %278 {offsets = [0, 0, 0], sizes = [1, 2, 256], strides = [1, 1, 1]} : vector<2x2x256xf32> to vector<1x2x256xf32>
    %280 = vector.shape_cast %279 : vector<1x2x256xf32> to vector<2x256xf32>
    %281 = vector.broadcast %78 : f32 to vector<2x256xf32>
    %282 = arith.mulf %281, %280 : vector<2x256xf32>
    %283 = arith.addf %272, %282 : vector<2x256xf32>
    %284 = vector.extract_strided_slice %278 {offsets = [1, 0, 0], sizes = [1, 2, 256], strides = [1, 1, 1]} : vector<2x2x256xf32> to vector<1x2x256xf32>
    %285 = vector.shape_cast %284 : vector<1x2x256xf32> to vector<2x256xf32>
    %286 = vector.broadcast %127 : f32 to vector<2x256xf32>
    %287 = arith.mulf %286, %285 : vector<2x256xf32>
    %288 = arith.addf %277, %287 : vector<2x256xf32>
    %289 = vector.extract_strided_slice %57 {offsets = [0, 0, 20], sizes = [2, 2, 256], strides = [1, 1, 1]} : vector<2x2x358xf32> to vector<2x2x256xf32>
    %290 = vector.extract_strided_slice %289 {offsets = [0, 0, 0], sizes = [1, 2, 256], strides = [1, 1, 1]} : vector<2x2x256xf32> to vector<1x2x256xf32>
    %291 = vector.shape_cast %290 : vector<1x2x256xf32> to vector<2x256xf32>
    %292 = vector.broadcast %79 : f32 to vector<2x256xf32>
    %293 = arith.mulf %292, %291 : vector<2x256xf32>
    %294 = arith.addf %283, %293 : vector<2x256xf32>
    %295 = vector.extract_strided_slice %289 {offsets = [1, 0, 0], sizes = [1, 2, 256], strides = [1, 1, 1]} : vector<2x2x256xf32> to vector<1x2x256xf32>
    %296 = vector.shape_cast %295 : vector<1x2x256xf32> to vector<2x256xf32>
    %297 = vector.broadcast %128 : f32 to vector<2x256xf32>
    %298 = arith.mulf %297, %296 : vector<2x256xf32>
    %299 = arith.addf %288, %298 : vector<2x256xf32>
    %300 = vector.extract_strided_slice %62 {offsets = [0, 0, 21], sizes = [2, 2, 256], strides = [1, 1, 1]} : vector<2x2x358xf32> to vector<2x2x256xf32>
    %301 = vector.extract_strided_slice %300 {offsets = [0, 0, 0], sizes = [1, 2, 256], strides = [1, 1, 1]} : vector<2x2x256xf32> to vector<1x2x256xf32>
    %302 = vector.shape_cast %301 : vector<1x2x256xf32> to vector<2x256xf32>
    %303 = vector.broadcast %80 : f32 to vector<2x256xf32>
    %304 = arith.mulf %303, %302 : vector<2x256xf32>
    %305 = arith.addf %294, %304 : vector<2x256xf32>
    %306 = vector.extract_strided_slice %300 {offsets = [1, 0, 0], sizes = [1, 2, 256], strides = [1, 1, 1]} : vector<2x2x256xf32> to vector<1x2x256xf32>
    %307 = vector.shape_cast %306 : vector<1x2x256xf32> to vector<2x256xf32>
    %308 = vector.broadcast %129 : f32 to vector<2x256xf32>
    %309 = arith.mulf %308, %307 : vector<2x256xf32>
    %310 = arith.addf %299, %309 : vector<2x256xf32>
    %311 = vector.extract_strided_slice %67 {offsets = [0, 0, 22], sizes = [2, 2, 256], strides = [1, 1, 1]} : vector<2x2x358xf32> to vector<2x2x256xf32>
    %312 = vector.extract_strided_slice %311 {offsets = [0, 0, 0], sizes = [1, 2, 256], strides = [1, 1, 1]} : vector<2x2x256xf32> to vector<1x2x256xf32>
    %313 = vector.shape_cast %312 : vector<1x2x256xf32> to vector<2x256xf32>
    %314 = vector.broadcast %81 : f32 to vector<2x256xf32>
    %315 = arith.mulf %314, %313 : vector<2x256xf32>
    %316 = arith.addf %305, %315 : vector<2x256xf32>
    %317 = vector.extract_strided_slice %311 {offsets = [1, 0, 0], sizes = [1, 2, 256], strides = [1, 1, 1]} : vector<2x2x256xf32> to vector<1x2x256xf32>
    %318 = vector.shape_cast %317 : vector<1x2x256xf32> to vector<2x256xf32>
    %319 = vector.broadcast %130 : f32 to vector<2x256xf32>
    %320 = arith.mulf %319, %318 : vector<2x256xf32>
    %321 = arith.addf %310, %320 : vector<2x256xf32>
    %322 = vector.extract_strided_slice %37 {offsets = [0, 0, 32], sizes = [2, 2, 256], strides = [1, 1, 1]} : vector<2x2x358xf32> to vector<2x2x256xf32>
    %323 = vector.extract_strided_slice %322 {offsets = [0, 0, 0], sizes = [1, 2, 256], strides = [1, 1, 1]} : vector<2x2x256xf32> to vector<1x2x256xf32>
    %324 = vector.shape_cast %323 : vector<1x2x256xf32> to vector<2x256xf32>
    %325 = vector.broadcast %82 : f32 to vector<2x256xf32>
    %326 = arith.mulf %325, %324 : vector<2x256xf32>
    %327 = arith.addf %316, %326 : vector<2x256xf32>
    %328 = vector.extract_strided_slice %322 {offsets = [1, 0, 0], sizes = [1, 2, 256], strides = [1, 1, 1]} : vector<2x2x256xf32> to vector<1x2x256xf32>
    %329 = vector.shape_cast %328 : vector<1x2x256xf32> to vector<2x256xf32>
    %330 = vector.broadcast %131 : f32 to vector<2x256xf32>
    %331 = arith.mulf %330, %329 : vector<2x256xf32>
    %332 = arith.addf %321, %331 : vector<2x256xf32>
    %333 = vector.extract_strided_slice %42 {offsets = [0, 0, 33], sizes = [2, 2, 256], strides = [1, 1, 1]} : vector<2x2x358xf32> to vector<2x2x256xf32>
    %334 = vector.extract_strided_slice %333 {offsets = [0, 0, 0], sizes = [1, 2, 256], strides = [1, 1, 1]} : vector<2x2x256xf32> to vector<1x2x256xf32>
    %335 = vector.shape_cast %334 : vector<1x2x256xf32> to vector<2x256xf32>
    %336 = vector.broadcast %83 : f32 to vector<2x256xf32>
    %337 = arith.mulf %336, %335 : vector<2x256xf32>
    %338 = arith.addf %327, %337 : vector<2x256xf32>
    %339 = vector.extract_strided_slice %333 {offsets = [1, 0, 0], sizes = [1, 2, 256], strides = [1, 1, 1]} : vector<2x2x256xf32> to vector<1x2x256xf32>
    %340 = vector.shape_cast %339 : vector<1x2x256xf32> to vector<2x256xf32>
    %341 = vector.broadcast %132 : f32 to vector<2x256xf32>
    %342 = arith.mulf %341, %340 : vector<2x256xf32>
    %343 = arith.addf %332, %342 : vector<2x256xf32>
    %344 = vector.extract_strided_slice %47 {offsets = [0, 0, 34], sizes = [2, 2, 256], strides = [1, 1, 1]} : vector<2x2x358xf32> to vector<2x2x256xf32>
    %345 = vector.extract_strided_slice %344 {offsets = [0, 0, 0], sizes = [1, 2, 256], strides = [1, 1, 1]} : vector<2x2x256xf32> to vector<1x2x256xf32>
    %346 = vector.shape_cast %345 : vector<1x2x256xf32> to vector<2x256xf32>
    %347 = vector.broadcast %84 : f32 to vector<2x256xf32>
    %348 = arith.mulf %347, %346 : vector<2x256xf32>
    %349 = arith.addf %338, %348 : vector<2x256xf32>
    %350 = vector.extract_strided_slice %344 {offsets = [1, 0, 0], sizes = [1, 2, 256], strides = [1, 1, 1]} : vector<2x2x256xf32> to vector<1x2x256xf32>
    %351 = vector.shape_cast %350 : vector<1x2x256xf32> to vector<2x256xf32>
    %352 = vector.broadcast %133 : f32 to vector<2x256xf32>
    %353 = arith.mulf %352, %351 : vector<2x256xf32>
    %354 = arith.addf %343, %353 : vector<2x256xf32>
    %355 = vector.extract_strided_slice %52 {offsets = [0, 0, 35], sizes = [2, 2, 256], strides = [1, 1, 1]} : vector<2x2x358xf32> to vector<2x2x256xf32>
    %356 = vector.extract_strided_slice %355 {offsets = [0, 0, 0], sizes = [1, 2, 256], strides = [1, 1, 1]} : vector<2x2x256xf32> to vector<1x2x256xf32>
    %357 = vector.shape_cast %356 : vector<1x2x256xf32> to vector<2x256xf32>
    %358 = vector.broadcast %85 : f32 to vector<2x256xf32>
    %359 = arith.mulf %358, %357 : vector<2x256xf32>
    %360 = arith.addf %349, %359 : vector<2x256xf32>
    %361 = vector.extract_strided_slice %355 {offsets = [1, 0, 0], sizes = [1, 2, 256], strides = [1, 1, 1]} : vector<2x2x256xf32> to vector<1x2x256xf32>
    %362 = vector.shape_cast %361 : vector<1x2x256xf32> to vector<2x256xf32>
    %363 = vector.broadcast %134 : f32 to vector<2x256xf32>
    %364 = arith.mulf %363, %362 : vector<2x256xf32>
    %365 = arith.addf %354, %364 : vector<2x256xf32>
    %366 = vector.extract_strided_slice %57 {offsets = [0, 0, 36], sizes = [2, 2, 256], strides = [1, 1, 1]} : vector<2x2x358xf32> to vector<2x2x256xf32>
    %367 = vector.extract_strided_slice %366 {offsets = [0, 0, 0], sizes = [1, 2, 256], strides = [1, 1, 1]} : vector<2x2x256xf32> to vector<1x2x256xf32>
    %368 = vector.shape_cast %367 : vector<1x2x256xf32> to vector<2x256xf32>
    %369 = vector.broadcast %86 : f32 to vector<2x256xf32>
    %370 = arith.mulf %369, %368 : vector<2x256xf32>
    %371 = arith.addf %360, %370 : vector<2x256xf32>
    %372 = vector.extract_strided_slice %366 {offsets = [1, 0, 0], sizes = [1, 2, 256], strides = [1, 1, 1]} : vector<2x2x256xf32> to vector<1x2x256xf32>
    %373 = vector.shape_cast %372 : vector<1x2x256xf32> to vector<2x256xf32>
    %374 = vector.broadcast %135 : f32 to vector<2x256xf32>
    %375 = arith.mulf %374, %373 : vector<2x256xf32>
    %376 = arith.addf %365, %375 : vector<2x256xf32>
    %377 = vector.extract_strided_slice %62 {offsets = [0, 0, 37], sizes = [2, 2, 256], strides = [1, 1, 1]} : vector<2x2x358xf32> to vector<2x2x256xf32>
    %378 = vector.extract_strided_slice %377 {offsets = [0, 0, 0], sizes = [1, 2, 256], strides = [1, 1, 1]} : vector<2x2x256xf32> to vector<1x2x256xf32>
    %379 = vector.shape_cast %378 : vector<1x2x256xf32> to vector<2x256xf32>
    %380 = vector.broadcast %87 : f32 to vector<2x256xf32>
    %381 = arith.mulf %380, %379 : vector<2x256xf32>
    %382 = arith.addf %371, %381 : vector<2x256xf32>
    %383 = vector.extract_strided_slice %377 {offsets = [1, 0, 0], sizes = [1, 2, 256], strides = [1, 1, 1]} : vector<2x2x256xf32> to vector<1x2x256xf32>
    %384 = vector.shape_cast %383 : vector<1x2x256xf32> to vector<2x256xf32>
    %385 = vector.broadcast %136 : f32 to vector<2x256xf32>
    %386 = arith.mulf %385, %384 : vector<2x256xf32>
    %387 = arith.addf %376, %386 : vector<2x256xf32>
    %388 = vector.extract_strided_slice %67 {offsets = [0, 0, 38], sizes = [2, 2, 256], strides = [1, 1, 1]} : vector<2x2x358xf32> to vector<2x2x256xf32>
    %389 = vector.extract_strided_slice %388 {offsets = [0, 0, 0], sizes = [1, 2, 256], strides = [1, 1, 1]} : vector<2x2x256xf32> to vector<1x2x256xf32>
    %390 = vector.shape_cast %389 : vector<1x2x256xf32> to vector<2x256xf32>
    %391 = vector.broadcast %88 : f32 to vector<2x256xf32>
    %392 = arith.mulf %391, %390 : vector<2x256xf32>
    %393 = arith.addf %382, %392 : vector<2x256xf32>
    %394 = vector.extract_strided_slice %388 {offsets = [1, 0, 0], sizes = [1, 2, 256], strides = [1, 1, 1]} : vector<2x2x256xf32> to vector<1x2x256xf32>
    %395 = vector.shape_cast %394 : vector<1x2x256xf32> to vector<2x256xf32>
    %396 = vector.broadcast %137 : f32 to vector<2x256xf32>
    %397 = arith.mulf %396, %395 : vector<2x256xf32>
    %398 = arith.addf %387, %397 : vector<2x256xf32>
    %399 = vector.extract_strided_slice %37 {offsets = [0, 0, 48], sizes = [2, 2, 256], strides = [1, 1, 1]} : vector<2x2x358xf32> to vector<2x2x256xf32>
    %400 = vector.extract_strided_slice %399 {offsets = [0, 0, 0], sizes = [1, 2, 256], strides = [1, 1, 1]} : vector<2x2x256xf32> to vector<1x2x256xf32>
    %401 = vector.shape_cast %400 : vector<1x2x256xf32> to vector<2x256xf32>
    %402 = vector.broadcast %89 : f32 to vector<2x256xf32>
    %403 = arith.mulf %402, %401 : vector<2x256xf32>
    %404 = arith.addf %393, %403 : vector<2x256xf32>
    %405 = vector.extract_strided_slice %399 {offsets = [1, 0, 0], sizes = [1, 2, 256], strides = [1, 1, 1]} : vector<2x2x256xf32> to vector<1x2x256xf32>
    %406 = vector.shape_cast %405 : vector<1x2x256xf32> to vector<2x256xf32>
    %407 = vector.broadcast %138 : f32 to vector<2x256xf32>
    %408 = arith.mulf %407, %406 : vector<2x256xf32>
    %409 = arith.addf %398, %408 : vector<2x256xf32>
    %410 = vector.extract_strided_slice %42 {offsets = [0, 0, 49], sizes = [2, 2, 256], strides = [1, 1, 1]} : vector<2x2x358xf32> to vector<2x2x256xf32>
    %411 = vector.extract_strided_slice %410 {offsets = [0, 0, 0], sizes = [1, 2, 256], strides = [1, 1, 1]} : vector<2x2x256xf32> to vector<1x2x256xf32>
    %412 = vector.shape_cast %411 : vector<1x2x256xf32> to vector<2x256xf32>
    %413 = vector.broadcast %90 : f32 to vector<2x256xf32>
    %414 = arith.mulf %413, %412 : vector<2x256xf32>
    %415 = arith.addf %404, %414 : vector<2x256xf32>
    %416 = vector.extract_strided_slice %410 {offsets = [1, 0, 0], sizes = [1, 2, 256], strides = [1, 1, 1]} : vector<2x2x256xf32> to vector<1x2x256xf32>
    %417 = vector.shape_cast %416 : vector<1x2x256xf32> to vector<2x256xf32>
    %418 = vector.broadcast %139 : f32 to vector<2x256xf32>
    %419 = arith.mulf %418, %417 : vector<2x256xf32>
    %420 = arith.addf %409, %419 : vector<2x256xf32>
    %421 = vector.extract_strided_slice %47 {offsets = [0, 0, 50], sizes = [2, 2, 256], strides = [1, 1, 1]} : vector<2x2x358xf32> to vector<2x2x256xf32>
    %422 = vector.extract_strided_slice %421 {offsets = [0, 0, 0], sizes = [1, 2, 256], strides = [1, 1, 1]} : vector<2x2x256xf32> to vector<1x2x256xf32>
    %423 = vector.shape_cast %422 : vector<1x2x256xf32> to vector<2x256xf32>
    %424 = vector.broadcast %91 : f32 to vector<2x256xf32>
    %425 = arith.mulf %424, %423 : vector<2x256xf32>
    %426 = arith.addf %415, %425 : vector<2x256xf32>
    %427 = vector.extract_strided_slice %421 {offsets = [1, 0, 0], sizes = [1, 2, 256], strides = [1, 1, 1]} : vector<2x2x256xf32> to vector<1x2x256xf32>
    %428 = vector.shape_cast %427 : vector<1x2x256xf32> to vector<2x256xf32>
    %429 = vector.broadcast %140 : f32 to vector<2x256xf32>
    %430 = arith.mulf %429, %428 : vector<2x256xf32>
    %431 = arith.addf %420, %430 : vector<2x256xf32>
    %432 = vector.extract_strided_slice %52 {offsets = [0, 0, 51], sizes = [2, 2, 256], strides = [1, 1, 1]} : vector<2x2x358xf32> to vector<2x2x256xf32>
    %433 = vector.extract_strided_slice %432 {offsets = [0, 0, 0], sizes = [1, 2, 256], strides = [1, 1, 1]} : vector<2x2x256xf32> to vector<1x2x256xf32>
    %434 = vector.shape_cast %433 : vector<1x2x256xf32> to vector<2x256xf32>
    %435 = vector.broadcast %92 : f32 to vector<2x256xf32>
    %436 = arith.mulf %435, %434 : vector<2x256xf32>
    %437 = arith.addf %426, %436 : vector<2x256xf32>
    %438 = vector.extract_strided_slice %432 {offsets = [1, 0, 0], sizes = [1, 2, 256], strides = [1, 1, 1]} : vector<2x2x256xf32> to vector<1x2x256xf32>
    %439 = vector.shape_cast %438 : vector<1x2x256xf32> to vector<2x256xf32>
    %440 = vector.broadcast %141 : f32 to vector<2x256xf32>
    %441 = arith.mulf %440, %439 : vector<2x256xf32>
    %442 = arith.addf %431, %441 : vector<2x256xf32>
    %443 = vector.extract_strided_slice %57 {offsets = [0, 0, 52], sizes = [2, 2, 256], strides = [1, 1, 1]} : vector<2x2x358xf32> to vector<2x2x256xf32>
    %444 = vector.extract_strided_slice %443 {offsets = [0, 0, 0], sizes = [1, 2, 256], strides = [1, 1, 1]} : vector<2x2x256xf32> to vector<1x2x256xf32>
    %445 = vector.shape_cast %444 : vector<1x2x256xf32> to vector<2x256xf32>
    %446 = vector.broadcast %93 : f32 to vector<2x256xf32>
    %447 = arith.mulf %446, %445 : vector<2x256xf32>
    %448 = arith.addf %437, %447 : vector<2x256xf32>
    %449 = vector.extract_strided_slice %443 {offsets = [1, 0, 0], sizes = [1, 2, 256], strides = [1, 1, 1]} : vector<2x2x256xf32> to vector<1x2x256xf32>
    %450 = vector.shape_cast %449 : vector<1x2x256xf32> to vector<2x256xf32>
    %451 = vector.broadcast %142 : f32 to vector<2x256xf32>
    %452 = arith.mulf %451, %450 : vector<2x256xf32>
    %453 = arith.addf %442, %452 : vector<2x256xf32>
    %454 = vector.extract_strided_slice %62 {offsets = [0, 0, 53], sizes = [2, 2, 256], strides = [1, 1, 1]} : vector<2x2x358xf32> to vector<2x2x256xf32>
    %455 = vector.extract_strided_slice %454 {offsets = [0, 0, 0], sizes = [1, 2, 256], strides = [1, 1, 1]} : vector<2x2x256xf32> to vector<1x2x256xf32>
    %456 = vector.shape_cast %455 : vector<1x2x256xf32> to vector<2x256xf32>
    %457 = vector.broadcast %94 : f32 to vector<2x256xf32>
    %458 = arith.mulf %457, %456 : vector<2x256xf32>
    %459 = arith.addf %448, %458 : vector<2x256xf32>
    %460 = vector.extract_strided_slice %454 {offsets = [1, 0, 0], sizes = [1, 2, 256], strides = [1, 1, 1]} : vector<2x2x256xf32> to vector<1x2x256xf32>
    %461 = vector.shape_cast %460 : vector<1x2x256xf32> to vector<2x256xf32>
    %462 = vector.broadcast %143 : f32 to vector<2x256xf32>
    %463 = arith.mulf %462, %461 : vector<2x256xf32>
    %464 = arith.addf %453, %463 : vector<2x256xf32>
    %465 = vector.extract_strided_slice %67 {offsets = [0, 0, 54], sizes = [2, 2, 256], strides = [1, 1, 1]} : vector<2x2x358xf32> to vector<2x2x256xf32>
    %466 = vector.extract_strided_slice %465 {offsets = [0, 0, 0], sizes = [1, 2, 256], strides = [1, 1, 1]} : vector<2x2x256xf32> to vector<1x2x256xf32>
    %467 = vector.shape_cast %466 : vector<1x2x256xf32> to vector<2x256xf32>
    %468 = vector.broadcast %95 : f32 to vector<2x256xf32>
    %469 = arith.mulf %468, %467 : vector<2x256xf32>
    %470 = arith.addf %459, %469 : vector<2x256xf32>
    %471 = vector.extract_strided_slice %465 {offsets = [1, 0, 0], sizes = [1, 2, 256], strides = [1, 1, 1]} : vector<2x2x256xf32> to vector<1x2x256xf32>
    %472 = vector.shape_cast %471 : vector<1x2x256xf32> to vector<2x256xf32>
    %473 = vector.broadcast %144 : f32 to vector<2x256xf32>
    %474 = arith.mulf %473, %472 : vector<2x256xf32>
    %475 = arith.addf %464, %474 : vector<2x256xf32>
    %476 = vector.extract_strided_slice %37 {offsets = [0, 0, 64], sizes = [2, 2, 256], strides = [1, 1, 1]} : vector<2x2x358xf32> to vector<2x2x256xf32>
    %477 = vector.extract_strided_slice %476 {offsets = [0, 0, 0], sizes = [1, 2, 256], strides = [1, 1, 1]} : vector<2x2x256xf32> to vector<1x2x256xf32>
    %478 = vector.shape_cast %477 : vector<1x2x256xf32> to vector<2x256xf32>
    %479 = vector.broadcast %96 : f32 to vector<2x256xf32>
    %480 = arith.mulf %479, %478 : vector<2x256xf32>
    %481 = arith.addf %470, %480 : vector<2x256xf32>
    %482 = vector.extract_strided_slice %476 {offsets = [1, 0, 0], sizes = [1, 2, 256], strides = [1, 1, 1]} : vector<2x2x256xf32> to vector<1x2x256xf32>
    %483 = vector.shape_cast %482 : vector<1x2x256xf32> to vector<2x256xf32>
    %484 = vector.broadcast %145 : f32 to vector<2x256xf32>
    %485 = arith.mulf %484, %483 : vector<2x256xf32>
    %486 = arith.addf %475, %485 : vector<2x256xf32>
    %487 = vector.extract_strided_slice %42 {offsets = [0, 0, 65], sizes = [2, 2, 256], strides = [1, 1, 1]} : vector<2x2x358xf32> to vector<2x2x256xf32>
    %488 = vector.extract_strided_slice %487 {offsets = [0, 0, 0], sizes = [1, 2, 256], strides = [1, 1, 1]} : vector<2x2x256xf32> to vector<1x2x256xf32>
    %489 = vector.shape_cast %488 : vector<1x2x256xf32> to vector<2x256xf32>
    %490 = vector.broadcast %97 : f32 to vector<2x256xf32>
    %491 = arith.mulf %490, %489 : vector<2x256xf32>
    %492 = arith.addf %481, %491 : vector<2x256xf32>
    %493 = vector.extract_strided_slice %487 {offsets = [1, 0, 0], sizes = [1, 2, 256], strides = [1, 1, 1]} : vector<2x2x256xf32> to vector<1x2x256xf32>
    %494 = vector.shape_cast %493 : vector<1x2x256xf32> to vector<2x256xf32>
    %495 = vector.broadcast %146 : f32 to vector<2x256xf32>
    %496 = arith.mulf %495, %494 : vector<2x256xf32>
    %497 = arith.addf %486, %496 : vector<2x256xf32>
    %498 = vector.extract_strided_slice %47 {offsets = [0, 0, 66], sizes = [2, 2, 256], strides = [1, 1, 1]} : vector<2x2x358xf32> to vector<2x2x256xf32>
    %499 = vector.extract_strided_slice %498 {offsets = [0, 0, 0], sizes = [1, 2, 256], strides = [1, 1, 1]} : vector<2x2x256xf32> to vector<1x2x256xf32>
    %500 = vector.shape_cast %499 : vector<1x2x256xf32> to vector<2x256xf32>
    %501 = vector.broadcast %98 : f32 to vector<2x256xf32>
    %502 = arith.mulf %501, %500 : vector<2x256xf32>
    %503 = arith.addf %492, %502 : vector<2x256xf32>
    %504 = vector.extract_strided_slice %498 {offsets = [1, 0, 0], sizes = [1, 2, 256], strides = [1, 1, 1]} : vector<2x2x256xf32> to vector<1x2x256xf32>
    %505 = vector.shape_cast %504 : vector<1x2x256xf32> to vector<2x256xf32>
    %506 = vector.broadcast %147 : f32 to vector<2x256xf32>
    %507 = arith.mulf %506, %505 : vector<2x256xf32>
    %508 = arith.addf %497, %507 : vector<2x256xf32>
    %509 = vector.extract_strided_slice %52 {offsets = [0, 0, 67], sizes = [2, 2, 256], strides = [1, 1, 1]} : vector<2x2x358xf32> to vector<2x2x256xf32>
    %510 = vector.extract_strided_slice %509 {offsets = [0, 0, 0], sizes = [1, 2, 256], strides = [1, 1, 1]} : vector<2x2x256xf32> to vector<1x2x256xf32>
    %511 = vector.shape_cast %510 : vector<1x2x256xf32> to vector<2x256xf32>
    %512 = vector.broadcast %99 : f32 to vector<2x256xf32>
    %513 = arith.mulf %512, %511 : vector<2x256xf32>
    %514 = arith.addf %503, %513 : vector<2x256xf32>
    %515 = vector.extract_strided_slice %509 {offsets = [1, 0, 0], sizes = [1, 2, 256], strides = [1, 1, 1]} : vector<2x2x256xf32> to vector<1x2x256xf32>
    %516 = vector.shape_cast %515 : vector<1x2x256xf32> to vector<2x256xf32>
    %517 = vector.broadcast %148 : f32 to vector<2x256xf32>
    %518 = arith.mulf %517, %516 : vector<2x256xf32>
    %519 = arith.addf %508, %518 : vector<2x256xf32>
    %520 = vector.extract_strided_slice %57 {offsets = [0, 0, 68], sizes = [2, 2, 256], strides = [1, 1, 1]} : vector<2x2x358xf32> to vector<2x2x256xf32>
    %521 = vector.extract_strided_slice %520 {offsets = [0, 0, 0], sizes = [1, 2, 256], strides = [1, 1, 1]} : vector<2x2x256xf32> to vector<1x2x256xf32>
    %522 = vector.shape_cast %521 : vector<1x2x256xf32> to vector<2x256xf32>
    %523 = vector.broadcast %100 : f32 to vector<2x256xf32>
    %524 = arith.mulf %523, %522 : vector<2x256xf32>
    %525 = arith.addf %514, %524 : vector<2x256xf32>
    %526 = vector.extract_strided_slice %520 {offsets = [1, 0, 0], sizes = [1, 2, 256], strides = [1, 1, 1]} : vector<2x2x256xf32> to vector<1x2x256xf32>
    %527 = vector.shape_cast %526 : vector<1x2x256xf32> to vector<2x256xf32>
    %528 = vector.broadcast %149 : f32 to vector<2x256xf32>
    %529 = arith.mulf %528, %527 : vector<2x256xf32>
    %530 = arith.addf %519, %529 : vector<2x256xf32>
    %531 = vector.extract_strided_slice %62 {offsets = [0, 0, 69], sizes = [2, 2, 256], strides = [1, 1, 1]} : vector<2x2x358xf32> to vector<2x2x256xf32>
    %532 = vector.extract_strided_slice %531 {offsets = [0, 0, 0], sizes = [1, 2, 256], strides = [1, 1, 1]} : vector<2x2x256xf32> to vector<1x2x256xf32>
    %533 = vector.shape_cast %532 : vector<1x2x256xf32> to vector<2x256xf32>
    %534 = vector.broadcast %101 : f32 to vector<2x256xf32>
    %535 = arith.mulf %534, %533 : vector<2x256xf32>
    %536 = arith.addf %525, %535 : vector<2x256xf32>
    %537 = vector.extract_strided_slice %531 {offsets = [1, 0, 0], sizes = [1, 2, 256], strides = [1, 1, 1]} : vector<2x2x256xf32> to vector<1x2x256xf32>
    %538 = vector.shape_cast %537 : vector<1x2x256xf32> to vector<2x256xf32>
    %539 = vector.broadcast %150 : f32 to vector<2x256xf32>
    %540 = arith.mulf %539, %538 : vector<2x256xf32>
    %541 = arith.addf %530, %540 : vector<2x256xf32>
    %542 = vector.extract_strided_slice %67 {offsets = [0, 0, 70], sizes = [2, 2, 256], strides = [1, 1, 1]} : vector<2x2x358xf32> to vector<2x2x256xf32>
    %543 = vector.extract_strided_slice %542 {offsets = [0, 0, 0], sizes = [1, 2, 256], strides = [1, 1, 1]} : vector<2x2x256xf32> to vector<1x2x256xf32>
    %544 = vector.shape_cast %543 : vector<1x2x256xf32> to vector<2x256xf32>
    %545 = vector.broadcast %102 : f32 to vector<2x256xf32>
    %546 = arith.mulf %545, %544 : vector<2x256xf32>
    %547 = arith.addf %536, %546 : vector<2x256xf32>
    %548 = vector.extract_strided_slice %542 {offsets = [1, 0, 0], sizes = [1, 2, 256], strides = [1, 1, 1]} : vector<2x2x256xf32> to vector<1x2x256xf32>
    %549 = vector.shape_cast %548 : vector<1x2x256xf32> to vector<2x256xf32>
    %550 = vector.broadcast %151 : f32 to vector<2x256xf32>
    %551 = arith.mulf %550, %549 : vector<2x256xf32>
    %552 = arith.addf %541, %551 : vector<2x256xf32>
    %553 = vector.extract_strided_slice %37 {offsets = [0, 0, 80], sizes = [2, 2, 256], strides = [1, 1, 1]} : vector<2x2x358xf32> to vector<2x2x256xf32>
    %554 = vector.extract_strided_slice %553 {offsets = [0, 0, 0], sizes = [1, 2, 256], strides = [1, 1, 1]} : vector<2x2x256xf32> to vector<1x2x256xf32>
    %555 = vector.shape_cast %554 : vector<1x2x256xf32> to vector<2x256xf32>
    %556 = vector.broadcast %103 : f32 to vector<2x256xf32>
    %557 = arith.mulf %556, %555 : vector<2x256xf32>
    %558 = arith.addf %547, %557 : vector<2x256xf32>
    %559 = vector.extract_strided_slice %553 {offsets = [1, 0, 0], sizes = [1, 2, 256], strides = [1, 1, 1]} : vector<2x2x256xf32> to vector<1x2x256xf32>
    %560 = vector.shape_cast %559 : vector<1x2x256xf32> to vector<2x256xf32>
    %561 = vector.broadcast %152 : f32 to vector<2x256xf32>
    %562 = arith.mulf %561, %560 : vector<2x256xf32>
    %563 = arith.addf %552, %562 : vector<2x256xf32>
    %564 = vector.extract_strided_slice %42 {offsets = [0, 0, 81], sizes = [2, 2, 256], strides = [1, 1, 1]} : vector<2x2x358xf32> to vector<2x2x256xf32>
    %565 = vector.extract_strided_slice %564 {offsets = [0, 0, 0], sizes = [1, 2, 256], strides = [1, 1, 1]} : vector<2x2x256xf32> to vector<1x2x256xf32>
    %566 = vector.shape_cast %565 : vector<1x2x256xf32> to vector<2x256xf32>
    %567 = vector.broadcast %104 : f32 to vector<2x256xf32>
    %568 = arith.mulf %567, %566 : vector<2x256xf32>
    %569 = arith.addf %558, %568 : vector<2x256xf32>
    %570 = vector.extract_strided_slice %564 {offsets = [1, 0, 0], sizes = [1, 2, 256], strides = [1, 1, 1]} : vector<2x2x256xf32> to vector<1x2x256xf32>
    %571 = vector.shape_cast %570 : vector<1x2x256xf32> to vector<2x256xf32>
    %572 = vector.broadcast %153 : f32 to vector<2x256xf32>
    %573 = arith.mulf %572, %571 : vector<2x256xf32>
    %574 = arith.addf %563, %573 : vector<2x256xf32>
    %575 = vector.extract_strided_slice %47 {offsets = [0, 0, 82], sizes = [2, 2, 256], strides = [1, 1, 1]} : vector<2x2x358xf32> to vector<2x2x256xf32>
    %576 = vector.extract_strided_slice %575 {offsets = [0, 0, 0], sizes = [1, 2, 256], strides = [1, 1, 1]} : vector<2x2x256xf32> to vector<1x2x256xf32>
    %577 = vector.shape_cast %576 : vector<1x2x256xf32> to vector<2x256xf32>
    %578 = vector.broadcast %105 : f32 to vector<2x256xf32>
    %579 = arith.mulf %578, %577 : vector<2x256xf32>
    %580 = arith.addf %569, %579 : vector<2x256xf32>
    %581 = vector.extract_strided_slice %575 {offsets = [1, 0, 0], sizes = [1, 2, 256], strides = [1, 1, 1]} : vector<2x2x256xf32> to vector<1x2x256xf32>
    %582 = vector.shape_cast %581 : vector<1x2x256xf32> to vector<2x256xf32>
    %583 = vector.broadcast %154 : f32 to vector<2x256xf32>
    %584 = arith.mulf %583, %582 : vector<2x256xf32>
    %585 = arith.addf %574, %584 : vector<2x256xf32>
    %586 = vector.extract_strided_slice %52 {offsets = [0, 0, 83], sizes = [2, 2, 256], strides = [1, 1, 1]} : vector<2x2x358xf32> to vector<2x2x256xf32>
    %587 = vector.extract_strided_slice %586 {offsets = [0, 0, 0], sizes = [1, 2, 256], strides = [1, 1, 1]} : vector<2x2x256xf32> to vector<1x2x256xf32>
    %588 = vector.shape_cast %587 : vector<1x2x256xf32> to vector<2x256xf32>
    %589 = vector.broadcast %106 : f32 to vector<2x256xf32>
    %590 = arith.mulf %589, %588 : vector<2x256xf32>
    %591 = arith.addf %580, %590 : vector<2x256xf32>
    %592 = vector.extract_strided_slice %586 {offsets = [1, 0, 0], sizes = [1, 2, 256], strides = [1, 1, 1]} : vector<2x2x256xf32> to vector<1x2x256xf32>
    %593 = vector.shape_cast %592 : vector<1x2x256xf32> to vector<2x256xf32>
    %594 = vector.broadcast %155 : f32 to vector<2x256xf32>
    %595 = arith.mulf %594, %593 : vector<2x256xf32>
    %596 = arith.addf %585, %595 : vector<2x256xf32>
    %597 = vector.extract_strided_slice %57 {offsets = [0, 0, 84], sizes = [2, 2, 256], strides = [1, 1, 1]} : vector<2x2x358xf32> to vector<2x2x256xf32>
    %598 = vector.extract_strided_slice %597 {offsets = [0, 0, 0], sizes = [1, 2, 256], strides = [1, 1, 1]} : vector<2x2x256xf32> to vector<1x2x256xf32>
    %599 = vector.shape_cast %598 : vector<1x2x256xf32> to vector<2x256xf32>
    %600 = vector.broadcast %107 : f32 to vector<2x256xf32>
    %601 = arith.mulf %600, %599 : vector<2x256xf32>
    %602 = arith.addf %591, %601 : vector<2x256xf32>
    %603 = vector.extract_strided_slice %597 {offsets = [1, 0, 0], sizes = [1, 2, 256], strides = [1, 1, 1]} : vector<2x2x256xf32> to vector<1x2x256xf32>
    %604 = vector.shape_cast %603 : vector<1x2x256xf32> to vector<2x256xf32>
    %605 = vector.broadcast %156 : f32 to vector<2x256xf32>
    %606 = arith.mulf %605, %604 : vector<2x256xf32>
    %607 = arith.addf %596, %606 : vector<2x256xf32>
    %608 = vector.extract_strided_slice %62 {offsets = [0, 0, 85], sizes = [2, 2, 256], strides = [1, 1, 1]} : vector<2x2x358xf32> to vector<2x2x256xf32>
    %609 = vector.extract_strided_slice %608 {offsets = [0, 0, 0], sizes = [1, 2, 256], strides = [1, 1, 1]} : vector<2x2x256xf32> to vector<1x2x256xf32>
    %610 = vector.shape_cast %609 : vector<1x2x256xf32> to vector<2x256xf32>
    %611 = vector.broadcast %108 : f32 to vector<2x256xf32>
    %612 = arith.mulf %611, %610 : vector<2x256xf32>
    %613 = arith.addf %602, %612 : vector<2x256xf32>
    %614 = vector.extract_strided_slice %608 {offsets = [1, 0, 0], sizes = [1, 2, 256], strides = [1, 1, 1]} : vector<2x2x256xf32> to vector<1x2x256xf32>
    %615 = vector.shape_cast %614 : vector<1x2x256xf32> to vector<2x256xf32>
    %616 = vector.broadcast %157 : f32 to vector<2x256xf32>
    %617 = arith.mulf %616, %615 : vector<2x256xf32>
    %618 = arith.addf %607, %617 : vector<2x256xf32>
    %619 = vector.extract_strided_slice %67 {offsets = [0, 0, 86], sizes = [2, 2, 256], strides = [1, 1, 1]} : vector<2x2x358xf32> to vector<2x2x256xf32>
    %620 = vector.extract_strided_slice %619 {offsets = [0, 0, 0], sizes = [1, 2, 256], strides = [1, 1, 1]} : vector<2x2x256xf32> to vector<1x2x256xf32>
    %621 = vector.shape_cast %620 : vector<1x2x256xf32> to vector<2x256xf32>
    %622 = vector.broadcast %109 : f32 to vector<2x256xf32>
    %623 = arith.mulf %622, %621 : vector<2x256xf32>
    %624 = arith.addf %613, %623 : vector<2x256xf32>
    %625 = vector.extract_strided_slice %619 {offsets = [1, 0, 0], sizes = [1, 2, 256], strides = [1, 1, 1]} : vector<2x2x256xf32> to vector<1x2x256xf32>
    %626 = vector.shape_cast %625 : vector<1x2x256xf32> to vector<2x256xf32>
    %627 = vector.broadcast %158 : f32 to vector<2x256xf32>
    %628 = arith.mulf %627, %626 : vector<2x256xf32>
    %629 = arith.addf %618, %628 : vector<2x256xf32>
    %630 = vector.extract_strided_slice %37 {offsets = [0, 0, 96], sizes = [2, 2, 256], strides = [1, 1, 1]} : vector<2x2x358xf32> to vector<2x2x256xf32>
    %631 = vector.extract_strided_slice %630 {offsets = [0, 0, 0], sizes = [1, 2, 256], strides = [1, 1, 1]} : vector<2x2x256xf32> to vector<1x2x256xf32>
    %632 = vector.shape_cast %631 : vector<1x2x256xf32> to vector<2x256xf32>
    %633 = vector.broadcast %110 : f32 to vector<2x256xf32>
    %634 = arith.mulf %633, %632 : vector<2x256xf32>
    %635 = arith.addf %624, %634 : vector<2x256xf32>
    %636 = vector.extract_strided_slice %630 {offsets = [1, 0, 0], sizes = [1, 2, 256], strides = [1, 1, 1]} : vector<2x2x256xf32> to vector<1x2x256xf32>
    %637 = vector.shape_cast %636 : vector<1x2x256xf32> to vector<2x256xf32>
    %638 = vector.broadcast %159 : f32 to vector<2x256xf32>
    %639 = arith.mulf %638, %637 : vector<2x256xf32>
    %640 = arith.addf %629, %639 : vector<2x256xf32>
    %641 = vector.extract_strided_slice %42 {offsets = [0, 0, 97], sizes = [2, 2, 256], strides = [1, 1, 1]} : vector<2x2x358xf32> to vector<2x2x256xf32>
    %642 = vector.extract_strided_slice %641 {offsets = [0, 0, 0], sizes = [1, 2, 256], strides = [1, 1, 1]} : vector<2x2x256xf32> to vector<1x2x256xf32>
    %643 = vector.shape_cast %642 : vector<1x2x256xf32> to vector<2x256xf32>
    %644 = vector.broadcast %111 : f32 to vector<2x256xf32>
    %645 = arith.mulf %644, %643 : vector<2x256xf32>
    %646 = arith.addf %635, %645 : vector<2x256xf32>
    %647 = vector.extract_strided_slice %641 {offsets = [1, 0, 0], sizes = [1, 2, 256], strides = [1, 1, 1]} : vector<2x2x256xf32> to vector<1x2x256xf32>
    %648 = vector.shape_cast %647 : vector<1x2x256xf32> to vector<2x256xf32>
    %649 = vector.broadcast %160 : f32 to vector<2x256xf32>
    %650 = arith.mulf %649, %648 : vector<2x256xf32>
    %651 = arith.addf %640, %650 : vector<2x256xf32>
    %652 = vector.extract_strided_slice %47 {offsets = [0, 0, 98], sizes = [2, 2, 256], strides = [1, 1, 1]} : vector<2x2x358xf32> to vector<2x2x256xf32>
    %653 = vector.extract_strided_slice %652 {offsets = [0, 0, 0], sizes = [1, 2, 256], strides = [1, 1, 1]} : vector<2x2x256xf32> to vector<1x2x256xf32>
    %654 = vector.shape_cast %653 : vector<1x2x256xf32> to vector<2x256xf32>
    %655 = vector.broadcast %112 : f32 to vector<2x256xf32>
    %656 = arith.mulf %655, %654 : vector<2x256xf32>
    %657 = arith.addf %646, %656 : vector<2x256xf32>
    %658 = vector.extract_strided_slice %652 {offsets = [1, 0, 0], sizes = [1, 2, 256], strides = [1, 1, 1]} : vector<2x2x256xf32> to vector<1x2x256xf32>
    %659 = vector.shape_cast %658 : vector<1x2x256xf32> to vector<2x256xf32>
    %660 = vector.broadcast %161 : f32 to vector<2x256xf32>
    %661 = arith.mulf %660, %659 : vector<2x256xf32>
    %662 = arith.addf %651, %661 : vector<2x256xf32>
    %663 = vector.extract_strided_slice %52 {offsets = [0, 0, 99], sizes = [2, 2, 256], strides = [1, 1, 1]} : vector<2x2x358xf32> to vector<2x2x256xf32>
    %664 = vector.extract_strided_slice %663 {offsets = [0, 0, 0], sizes = [1, 2, 256], strides = [1, 1, 1]} : vector<2x2x256xf32> to vector<1x2x256xf32>
    %665 = vector.shape_cast %664 : vector<1x2x256xf32> to vector<2x256xf32>
    %666 = vector.broadcast %113 : f32 to vector<2x256xf32>
    %667 = arith.mulf %666, %665 : vector<2x256xf32>
    %668 = arith.addf %657, %667 : vector<2x256xf32>
    %669 = vector.extract_strided_slice %663 {offsets = [1, 0, 0], sizes = [1, 2, 256], strides = [1, 1, 1]} : vector<2x2x256xf32> to vector<1x2x256xf32>
    %670 = vector.shape_cast %669 : vector<1x2x256xf32> to vector<2x256xf32>
    %671 = vector.broadcast %162 : f32 to vector<2x256xf32>
    %672 = arith.mulf %671, %670 : vector<2x256xf32>
    %673 = arith.addf %662, %672 : vector<2x256xf32>
    %674 = vector.extract_strided_slice %57 {offsets = [0, 0, 100], sizes = [2, 2, 256], strides = [1, 1, 1]} : vector<2x2x358xf32> to vector<2x2x256xf32>
    %675 = vector.extract_strided_slice %674 {offsets = [0, 0, 0], sizes = [1, 2, 256], strides = [1, 1, 1]} : vector<2x2x256xf32> to vector<1x2x256xf32>
    %676 = vector.shape_cast %675 : vector<1x2x256xf32> to vector<2x256xf32>
    %677 = vector.broadcast %114 : f32 to vector<2x256xf32>
    %678 = arith.mulf %677, %676 : vector<2x256xf32>
    %679 = arith.addf %668, %678 : vector<2x256xf32>
    %680 = vector.extract_strided_slice %674 {offsets = [1, 0, 0], sizes = [1, 2, 256], strides = [1, 1, 1]} : vector<2x2x256xf32> to vector<1x2x256xf32>
    %681 = vector.shape_cast %680 : vector<1x2x256xf32> to vector<2x256xf32>
    %682 = vector.broadcast %163 : f32 to vector<2x256xf32>
    %683 = arith.mulf %682, %681 : vector<2x256xf32>
    %684 = arith.addf %673, %683 : vector<2x256xf32>
    %685 = vector.extract_strided_slice %62 {offsets = [0, 0, 101], sizes = [2, 2, 256], strides = [1, 1, 1]} : vector<2x2x358xf32> to vector<2x2x256xf32>
    %686 = vector.extract_strided_slice %685 {offsets = [0, 0, 0], sizes = [1, 2, 256], strides = [1, 1, 1]} : vector<2x2x256xf32> to vector<1x2x256xf32>
    %687 = vector.shape_cast %686 : vector<1x2x256xf32> to vector<2x256xf32>
    %688 = vector.broadcast %115 : f32 to vector<2x256xf32>
    %689 = arith.mulf %688, %687 : vector<2x256xf32>
    %690 = arith.addf %679, %689 : vector<2x256xf32>
    %691 = vector.extract_strided_slice %685 {offsets = [1, 0, 0], sizes = [1, 2, 256], strides = [1, 1, 1]} : vector<2x2x256xf32> to vector<1x2x256xf32>
    %692 = vector.shape_cast %691 : vector<1x2x256xf32> to vector<2x256xf32>
    %693 = vector.broadcast %164 : f32 to vector<2x256xf32>
    %694 = arith.mulf %693, %692 : vector<2x256xf32>
    %695 = arith.addf %684, %694 : vector<2x256xf32>
    %696 = vector.extract_strided_slice %67 {offsets = [0, 0, 102], sizes = [2, 2, 256], strides = [1, 1, 1]} : vector<2x2x358xf32> to vector<2x2x256xf32>
    %697 = vector.extract_strided_slice %696 {offsets = [0, 0, 0], sizes = [1, 2, 256], strides = [1, 1, 1]} : vector<2x2x256xf32> to vector<1x2x256xf32>
    %698 = vector.shape_cast %697 : vector<1x2x256xf32> to vector<2x256xf32>
    %699 = vector.broadcast %116 : f32 to vector<2x256xf32>
    %700 = arith.mulf %699, %698 : vector<2x256xf32>
    %701 = arith.addf %690, %700 : vector<2x256xf32>
    %702 = vector.extract_strided_slice %696 {offsets = [1, 0, 0], sizes = [1, 2, 256], strides = [1, 1, 1]} : vector<2x2x256xf32> to vector<1x2x256xf32>
    %703 = vector.shape_cast %702 : vector<1x2x256xf32> to vector<2x256xf32>
    %704 = vector.broadcast %165 : f32 to vector<2x256xf32>
    %705 = arith.mulf %704, %703 : vector<2x256xf32>
    %706 = arith.addf %695, %705 : vector<2x256xf32>
    %707 = arith.addf %701, %706 : vector<2x256xf32>
    %708 = arith.negf %707 : vector<2x256xf32>
    %709 = math.exp %708 : vector<2x256xf32>
    %cst_21 = arith.constant 1.000000e+00 : f32
    %710 = vector.broadcast %cst_21 : f32 to vector<2x256xf32>
    %711 = arith.addf %710, %709 : vector<2x256xf32>
    %712 = arith.divf %710, %711 : vector<2x256xf32>
    %713 = vector.shape_cast %712 : vector<2x256xf32> to vector<2x1x256xf32>
    %714 = vector.broadcast %713 : vector<2x1x256xf32> to vector<2x32x256xf32>
    %715 = arith.mulf %22, %714 : vector<2x32x256xf32>
    %c0_22 = arith.constant 0 : index
    %c0_23 = arith.constant 0 : index
    %c0_24 = arith.constant 0 : index
    %716 = vector.load %arg6[%c0_22, %c0_23, %c0_24] : memref<2x32x256xf32, #tpu.memory_space<vmem>>, vector<2x32x256xf32>
    tpu.vector_store %arg6[%c0_22, %c0_23, %c0_24], %715 {strides = array<i32>} : memref<2x32x256xf32, #tpu.memory_space<vmem>>, vector<2x32x256xf32>,
    return
  }
  func.func @transform_0(%arg0: i32) -> i32 {
    %c0_i32 = arith.constant 0 : i32
    %c0_i32_0 = arith.constant 0 : i32
    return %c0_i32 : i32
  }
  func.func @transform_1(%arg0: i32) -> (i32, i32) {
    %c0_i32 = arith.constant 0 : i32
    %c0_i32_0 = arith.constant 0 : i32
    %c0_i32_1 = arith.constant 0 : i32
    return %c0_i32, %c0_i32_0 : i32, i32
  }
  func.func @transform_2(%arg0: i32) -> (i32, i32, i32) {
    %c0_i32 = arith.constant 0 : i32
    %c0_i32_0 = arith.constant 0 : i32
    %c0_i32_1 = arith.constant 0 : i32
    return %arg0, %c0_i32, %c0_i32_0 : i32, i32, i32
  }
  func.func @transform_3(%arg0: i32) -> (i32, i32) {
    %c0_i32 = arith.constant 0 : i32
    %c0_i32_0 = arith.constant 0 : i32
    %c0_i32_1 = arith.constant 0 : i32
    return %c0_i32, %c0_i32_0 : i32, i32
  }
  func.func @transform_4(%arg0: i32) -> (i32, i32) {
    %c0_i32 = arith.constant 0 : i32
    %c0_i32_0 = arith.constant 0 : i32
    %c0_i32_1 = arith.constant 0 : i32
    return %c0_i32, %c0_i32_0 : i32, i32
  }
  func.func @transform_5(%arg0: i32) -> (i32, i32, i32) {
    %c0_i32 = arith.constant 0 : i32
    %c0_i32_0 = arith.constant 0 : i32
    %c0_i32_1 = arith.constant 0 : i32
    return %arg0, %c0_i32, %c0_i32_0 : i32, i32, i32
  }
}

</mosaic_0001>

<bundles_post_ra>
// kernel: tpu_custom_call.1
= control target key start
LH: loop header
LB: loop body
LE: loop exit
PB: predicated region body
PF: predicated region fallthrough
CT: control target
= control target key end

     0   :  { %10 = vsyncpa [#allocation5], 0  ;;  %s6029_s0 = inlined_call_operand.vmem [shape: f32[98], index: 0, kind: input, shape index: {}]   ;;  %s6030_s1 = inlined_call_operand.vmem [shape: f32[7,358], index: 1, kind: input, shape index: {}]   ;;  %s6031_s2 = inlined_call_operand.hbm [shape: f32[2,32,256], index: 2, kind: input, shape index: {}]   ;;  %s6032_s3 = inlined_call_operand.vmem [shape: f32[32,2], index: 3, kind: input, shape index: {}]   ;;  %s6033_s4 = inlined_call_operand.vmem [shape: f32[2,32], index: 4, kind: input, shape index: {}]   ;;  %s6034_s5 = inlined_call_operand.hbm [shape: f32[2,32,256], index: 5, kind: output, shape index: {}]  }
   0x1   :  { %11 = vsyncpa [#allocation3], 0 }
   0x2   :  { %12 = vsyncpa [#allocation4], 0  ;;  %s19_s20 = sshll.u32 %s6029_s0, 4  ;;  %s20_s20 = int_to_ptr.vmem [resolvable:$true] %s19_s20 }
   0x3   :  { %s2983_s21 = scalar_lea.vmem %s20_s20, 16  ;;  %p2988_p1 = scmp.lt.s32.totalorder %s20_s20, %s20_s20 }
   0x4   :  { %p2984_p0 = scmp.ne.s32.totalorder %s20_s20, %s2983_s21  ;;  %p2989_p2 = scmp.lt.s32.totalorder %s2983_s21, %s2983_s21 }
   0x6   :  { %p2990_p3 = por %p2989_p2, %p2988_p1 }
   0x8   :  { %p2991_p4 = pnand %p2990_p3, %p2984_p0 }
   0xa   :  { %2994 = shalt.err (!%p2991_p4)
}
   0xb   :  { %s3045_s22 = smov [#allocation2]   ;;  %s3046_s23 = smov [#allocation6]  }
   0xc   :  { %22 = dma.vmem_to_smem %s20_s20, 16, %s3045_s22, [#allocation5]  }
   0xd   :  { %s30_s24 = sshll.u32 %s3046_s23, 4  ;;  %s2995_s27 = scalar_lea.hbm %s6031_s2, 2048  ;;  %s31_s24 = int_to_ptr.vmem [resolvable:$true] %s30_s24 }
   0xe   :  { %p2996_p5 = scmp.ne.s32.totalorder %s6031_s2, %s2995_s27  ;;  %p2999_p6 = scmp.lt.u32.totalorder %s2995_s27, %s6031_s2 }
  0x10   :  { %p3001_p7 = pnand %p2999_p6, %p2996_p5 }
  0x12   :  { %3004 = shalt.err (!%p3001_p7)
}
  0x13   :  { %s3005_s6 = scalar_lea.vmem %s31_s24, 2048  ;;  %p3010_p9 = scmp.lt.s32.totalorder %s31_s24, %s31_s24 }
  0x14   :  { %p3006_p8 = scmp.ne.s32.totalorder %s31_s24, %s3005_s6  ;;  %p3011_p10 = scmp.lt.s32.totalorder %s3005_s6, %s3005_s6 }
  0x16   :  { %p3012_p11 = por %p3011_p10, %p3010_p9 }
  0x18   :  { %p3013_p12 = pnand %p3012_p11, %p3006_p8 }
  0x1a   :  { %3016 = shalt.err (!%p3013_p12)
}
  0x1b   :  { %s6087_s7 = smov 256   ;;  %s6090_s8 = smov 16  }
  0x1c   :  { %36 = dma.hbm_to_vmem [thread:$0]  %s6031_s2, 2048, %s31_s24, [#allocation3], %s6087_s7, %s6087_s7, %s6090_s8  }
  0x1d   :  { %3039 = dma.done.wait [#allocation5], 16  }
  0x1e   :  { %3040 = vsyncadd [#allocation5], 4294967280 }
  0x1f   :  { %3041 = dma.done.wait [#allocation3], 2048  }
  0x20   :  { %3042 = vsyncadd [#allocation3], 4294965248 }
  0x21   :  { %47 = sfence }
  0x22   :  { %v3151_v0 = vld [vmem:[#allocation6 + $0x40] sm:$0xff]  ;;  %v3153_v1 = vld [vmem:[#allocation6 + $0x48] sm:$0xff]  ;;  %v3161_v5 = vld [vmem:[#allocation6 + $0x50] sm:$0xff]  ;;  %v3049_v35 = vmov 0.0|0.0   ;;  %vm3050_vm0 = vmmov 0   ;;  %v3051_v39 = vmov 0.0   ;;  %v129_v45 = vlaneseq }
  0x23   :  { %v3155_v2 = vld [vmem:[#allocation6] sm:$0xff]  ;;  %v76_v3 = vadd.f32 %v3153_v1, %v3151_v0  ;;  %v3159_v4 = vld [vmem:[#allocation6 + $0x8] sm:$0xff]  ;;  %v3163_v6 = vld [vmem:[#allocation6 + $0x58] sm:$0xff]  ;;  %v109_v27 = vmax.f32 %v3151_v0, %v3153_v1  ;;  %2907 = vmatprep.subr.bf16.mxu0 %v3049_v35  ;;  %2899 = vmatprep.mubr.msk.f32.mxu0 %vm3050_vm0, %v3051_v39  ;;  %vm140_vm1 = vcmask 130112   ;;  %vm147_vm2 = vcmask 195712   ;;  %s3351_s21 = sld [smem:[#allocation2 + $0x32]] }
  0x24   :  { %v64_v7 = vadd.f32 %v3159_v4, %v3155_v2  ;;  %v3167_v8 = vld [vmem:[#allocation6 + $0x10] sm:$0xff]  ;;  %v3169_v9 = vld [vmem:[#allocation6 + $0x18] sm:$0xff]  ;;  %v79_v10 = vadd.f32 %v3163_v6, %v3161_v5  ;;  %v3175_v12 = vld [vmem:[#allocation6 + $0x60] sm:$0xff]  ;;  %v97_v25 = vmax.f32 %v3155_v2, %v3159_v4  ;;  %v112_v26 = vmax.f32 %v3161_v5, %v3163_v6  ;;  %2902 = vmatprep.subr.mxu1 %v3051_v39  ;;  %s2836_s26 = sld [smem:[#allocation2 + $0x34]]  ;;  %s2837_s27 = sld [smem:[#allocation2 + $0x35]] }
  0x25   :  { %77 = vadd.xlane.f32.xlu1 %v76_v3  ;;  %v67_v11 = vadd.f32 %v3169_v9, %v3167_v8  ;;  %v3177_v13 = vld [vmem:[#allocation6 + $0x68] sm:$0xff]  ;;  %v3179_v14 = vld [vmem:[#allocation6 + $0x20] sm:$0xff]  ;;  %v3187_v18 = vld [vmem:[#allocation6 + $0x70] sm:$0xff]  ;;  %v100_v24 = vmax.f32 %v3167_v8, %v3169_v9  ;;  %2904 = vmatprep.mubr.msk.f32.mxu1 %vm3050_vm0, %v3051_v39  ;;  %v130_v48 = vand.u32 127, %v129_v45  ;;  %v3227_v50 = vshrl.u32 %v129_v45, 7  ;;  %s3053_s28 = smov 127  }
  0x26   :  { %65 = vadd.xlane.f32.xlu0 %v64_v7  ;;  %v3181_v15 = vld [vmem:[#allocation6 + $0x28] sm:$0xff]  ;;  %v82_v16 = vadd.f32 %v3177_v13, %v3175_v12  ;;  %v3189_v19 = vld [vmem:[#allocation6 + $0x78] sm:$0xff]  ;;  %v3191_v20 = vld [vmem:[#allocation6 + $0x30] sm:$0xff]  ;;  %v115_v28 = vmax.f32 %v3175_v12, %v3177_v13  ;;  %vm154_vm3 = vcmask 261312   ;;  %vm175_vm4 = vcmask 1041409   ;;  %s2838_s29 = sld [smem:[#allocation2 + $0x36]] }
  0x27   :  { %v70_v17 = vadd.f32 %v3181_v15, %v3179_v14  ;;  %v3193_v21 = vld [vmem:[#allocation6 + $0x38] sm:$0xff]  ;;  %v85_v22 = vadd.f32 %v3189_v19, %v3187_v18  ;;  %v103_v29 = vmax.f32 %v3179_v14, %v3181_v15  ;;  %v118_v30 = vmax.f32 %v3187_v18, %v3189_v19  ;;  %v229_v32 = vld [vmem:[%s6032_s3] sm:$0xff]  ;;  %v230_v33 = vld [vmem:[%s6032_s3 + $0x8] sm:$0xff]  ;;  %6265 = vst [vmem:[#allocation11_spill] sm:$0xff] %v3227_v50  ;;  %s2839_s0 = sld [smem:[#allocation2 + $0x37]]  ;;  %s2849_s30 = sld [smem:[#allocation2 + $0x41]] }
  0x28   :  { %v73_v23 = vadd.f32 %v3193_v21, %v3191_v20  ;;  %v106_v31 = vmax.f32 %v3191_v20, %v3193_v21  ;;  %v2908_v34 = vpack.c.bf16 %v230_v33, %v229_v32  ;;  %v231_v36 = vld [vmem:[%s6032_s3 + $0x10] sm:$0xff]  ;;  %v232_v37 = vld [vmem:[%s6032_s3 + $0x18] sm:$0xff]  ;;  %v135_v51 = vadd.s32 4294967288, %v130_v48  ;;  %s2850_s6 = sld [smem:[#allocation2 + $0x42]]  ;;  %s3054_s9 = smov 126  }
  0x29   :  { %80 = vadd.xlane.f32.xlu1 %v79_v10  ;;  %v2911_v38 = vpack.c.bf16 %v232_v37, %v231_v36  ;;  %v142_v52 = vadd.s32 4294967280, %v130_v48  ;;  %v149_v54 = vadd.s32 4294967272, %v130_v48  ;;  %v133_v56 = vsub.s32 %v130_v48, %v3227_v50  ;;  %s2851_s10 = sld [smem:[#allocation2 + $0x43]]  ;;  %s2852_s2 = sld [smem:[#allocation2 + $0x44]] }
  0x2a   :  { %68 = vadd.xlane.f32.xlu0 %v67_v11  ;;  %2909 = vmatpush3.bf16.msra.mxu0 %v2908_v34  ;;  %v138_v57 = vsub.s32 %v135_v51, %v3227_v50  ;;  %vm224_vm5 = vcmask 1043459   ;;  %vm227_vm6 = vcmask 1041408   ;;  %vm6259_vm7 = vcmask 261120   ;;  %s3502_s11 = sld [smem:[#allocation2 + $0x45]]  ;;  %s3055_s12 = smov 125  }
  0x2b   :  { %2910 = vmatprep.subr.bf16.mxu0 %v3049_v35  ;;  %v145_v59 = vsub.s32 %v142_v52, %v3227_v50  ;;  %v152_v10 = vsub.s32 %v149_v54, %v3227_v50  ;;  %vm309_vm8 = vcmask 15360   ;;  %vm551_vm9 = vcmask 416768   ;;  %s3506_s13 = sld [smem:[#allocation2 + $0x46]]  ;;  %s3508_s14 = sld [smem:[#allocation2 + $0x47]] }
  0x2c   :  { %s3512_s15 = sld [smem:[#allocation2 + $0x48]]  ;;  %s3537_s17 = sld [smem:[#allocation2 + $0x49]]  ;;  %vm814_vm10 = vcmask 1039360   ;;  %vm853_vm11 = vcmask 1031168   ;;  %vm892_vm12 = vcmask 1022976   ;;  %vm931_vm13 = vcmask 1014784  }
  0x2d   :  { %83 = vadd.xlane.f32.xlu1 %v82_v16  ;;  %s3531_s16 = sld [smem:[#allocation2 + $0x38]]  ;;  %s3056_s3 = smov 124   ;;  %vm970_vm14 = vcmask 1006592   ;;  %vm1009_vm15 = vcmask 998400   ;;  %vm1048_vm0 = vcmask 916480  }
  0x2e   :  { %71 = vadd.xlane.f32.xlu0 %v70_v17  ;;  %2912 = vmatpush3.bf16.msra.mxu0 %v2911_v38  ;;  %s3549_s18 = sld [smem:[#allocation2 + $0x4a]]  ;;  %s3585_s19 = sld [smem:[#allocation2 + $0x39]] }
  0x2f   :  { %s3590_s20 = sld [smem:[#allocation2 + $0x4c]]  ;;  %s3612_s22 = sld [smem:[#allocation2 + $0x4d]] }
  0x30   :  { %s3625_s23 = sld [smem:[#allocation2 + $0x4e]]  ;;  %s3639_s24 = sld [smem:[#allocation2 + $0x4f]] }
  0x31   :  { %86 = vadd.xlane.f32.xlu1 %v85_v22  ;;  %s3652_s25 = sld [smem:[#allocation2 + $0x3a]]  ;;  %s6143_s7 = smov 106  }
  0x32   :  { %74 = vadd.xlane.f32.xlu0 %v73_v23  ;;  %s4121_s8 = sld [smem:[#allocation2 + $0x19]] }
  0x35   :  { %101 = vmax.xlane.f32.xlu1 %v100_v24 }
  0x36   :  { %98 = vmax.xlane.f32.xlu0 %v97_v25 }
  0x39   :  { %113 = vmax.xlane.f32.xlu1 %v112_v26 }
  0x3a   :  { %110 = vmax.xlane.f32.xlu0 %v109_v27 }
  0x3d   :  { %116 = vmax.xlane.f32.xlu1 %v115_v28 }
  0x3e   :  { %104 = vmax.xlane.f32.xlu0 %v103_v29 }
  0x41   :  { %119 = vmax.xlane.f32.xlu1 %v118_v30 }
  0x42   :  { %107 = vmax.xlane.f32.xlu0 %v106_v31 }
  0xb2   :  { %v78_v40 = vpop.xlane.xlu1 %77 }
  0xb3   :  { %v66_v41 = vpop.xlane.xlu0 %65  ;;  %v93_v60 = vmul.f32 0.00390625, %v78_v40 }
  0xb4   :  { %v89_v61 = vmul.f32 0.00390625, %v66_v41 }
  0xb5   :  { %v159_v23 = vrot.slane %v93_v60, %v133_v56 }
  0xb6   :  { %v81_v42 = vpop.xlane.xlu1 %80  ;;  %v134_v24 = vrot.slane %v89_v61, %v133_v56 }
  0xb7   :  { %v69_v43 = vpop.xlane.xlu0 %68  ;;  %v94_v58 = vmul.f32 0.00390625, %v81_v42 }
  0xb8   :  { %v90_v62 = vmul.f32 0.00390625, %v69_v43 }
  0xb9   :  { %v163_v22 = vrot.slane %v94_v58, %v138_v57  ;;  %v308_v58 = vld [vmem:[%s6033_s4] sm:$0x3]  ;;  %s3052_s4 = smov 51  }
  0xba   :  { %v84_v44 = vpop.xlane.xlu1 %83  ;;  %v139_v25 = vrot.slane %v90_v62, %v138_v57  ;;  %2903 = vmatpush3.msk.msra.mxu1 %vm227_vm6, %v308_v58 }
  0xbb   :  { %v72_v46 = vpop.xlane.xlu0 %71  ;;  %v95_v63 = vmul.f32 0.00390625, %v84_v44  ;;  %v164_v37 = vsel %vm140_vm1, %v163_v22, %v159_v23 }
  0xbc   :  { %v91_v7 = vmul.f32 0.00390625, %v72_v46  ;;  %v141_v39 = vsel %vm140_vm1, %v139_v25, %v134_v24  ;;  %v3256_v24 = vsub.s32 1, %v3227_v50 }
  0xbd   :  { %v168_v26 = vrot.slane %v95_v63, %v145_v59 }
  0xbe   :  { %v87_v47 = vpop.xlane.xlu1 %86  ;;  %v146_v28 = vrot.slane %v91_v7, %v145_v59  ;;  %6267 = vst [vmem:[#allocation13_spill] sm:$0xff] %v3256_v24 }
  0xbf   :  { %v75_v49 = vpop.xlane.xlu0 %74  ;;  %v96_v11 = vmul.f32 0.00390625, %v87_v47  ;;  %v169_v40 = vsel %vm147_vm2, %v168_v26, %v164_v37 }
  0xc0   :  { %v92_v17 = vmul.f32 0.00390625, %v75_v49  ;;  %v148_v42 = vsel %vm147_vm2, %v146_v28, %v141_v39 }
  0xc1   :  { %v173_v29 = vrot.slane %v96_v11, %v152_v10 }
  0xc2   :  { %v102_v53 = vpop.xlane.xlu1 %101  ;;  %v153_v33 = vrot.slane %v92_v17, %v152_v10  ;;  %v3252_v17 = vsub.s32 0, %v3227_v50 }
  0xc3   :  { %v99_v55 = vpop.xlane.xlu0 %98  ;;  %v193_v34 = vrot.slane %v102_v53, %v138_v57  ;;  %v174_v46 = vsel %vm154_vm3, %v173_v29, %v169_v40 }
  0xc4   :  { %v189_v35 = vrot.slane %v99_v55, %v133_v56  ;;  %v155_v51 = vsel %vm154_vm3, %v153_v33, %v148_v42  ;;  %6266 = vst [vmem:[#allocation12_spill] sm:$0xff] %v3252_v17 }
  0xc5   :  { %v176_v55 = vsel %vm175_vm4, %v174_v46, %v155_v51 }
  0xc6   :  { %v114_v3 = vpop.xlane.xlu1 %113  ;;  %v194_v47 = vsel %vm140_vm1, %v193_v34, %v189_v35 }
  0xc7   :  { %v111_v16 = vpop.xlane.xlu0 %110  ;;  %v212_v30 = vrot.slane %v114_v3, %v138_v57 }
  0xc8   :  { %v208_v31 = vrot.slane %v111_v16, %v133_v56 }
  0xca   :  { %v117_v27 = vpop.xlane.xlu1 %116  ;;  %v213_v43 = vsel %vm140_vm1, %v212_v30, %v208_v31  ;;  %vm1087_vm1 = vcmask 908288  }
  0xcb   :  { %v105_v32 = vpop.xlane.xlu0 %104  ;;  %v217_v36 = vrot.slane %v117_v27, %v145_v59 }
  0xcc   :  { %v198_v38 = vrot.slane %v105_v32, %v145_v59 }
  0xcd   :  { %v218_v48 = vsel %vm147_vm2, %v217_v36, %v213_v43 }
  0xce   :  { %v120_v41 = vpop.xlane.xlu1 %119  ;;  %v199_v52 = vsel %vm147_vm2, %v198_v38, %v194_v47  ;;  %vm1126_vm2 = vcmask 900096  }
  0xcf   :  { %v222_v44 = vrot.slane %v120_v41, %v152_v10  ;;  %v108_v45 = vpop.xlane.xlu0 %107 }
  0xd0   :  { %v203_v49 = vrot.slane %v108_v45, %v152_v10 }
  0xd1   :  { %v223_v53 = vsel %vm154_vm3, %v222_v44, %v218_v48 }
  0xd2   :  { %v204_v54 = vsel %vm154_vm3, %v203_v49, %v199_v52  ;;  %vm1165_vm3 = vcmask 891904  }
  0xd3   :  { %v225_v56 = vsel %vm224_vm5, %v223_v53, %v204_v54  ;;  %vm1243_vm5 = vcmask 875520  }
  0xd4   :  { %v228_v57 = vsel %vm227_vm6, %v176_v55, %v225_v56  ;;  %vm1282_vm6 = vcmask 867328  }
  0xd5   :  { %2900 = vmatmul.mubr.msk.f32.vlgmr.msra.gmra.mrb[0].mxu0 %vm6259_vm7, %v228_v57  ;;  %vm6261_vm7 = vcmask 769024  }
 0x1a8   :  { %v303_v59 = vpop.f32.mrb[0].mxu0 }
 0x1a9   :  { %v307_v60 = vmax.f32 %v303_v59, 0.0  ;;  %v2901_v61 = vpop.f32.mrb[1].mxu0 }
 0x1ab   :  { %2905 = vmatmul.mubr.msk.f32.vlgmr.msra.gmra.mrb[0].mxu1 %vm309_vm8, %v307_v60  ;;  %vm1321_vm8 = vcmask 785408  }
 0x27e   :  { %v382_v62 = vpop.f32.mrb[0].mxu1 }
 0x27f   :  { %v387_v63 = vrot.slane %v382_v62, 2  ;;  %v2906_v3 = vpop.f32.mrb[1].mxu1 }
 0x281   :  { %v389_v7 = vadd.f32 %v387_v63, %v382_v62 }
 0x283   :  { %v2784_v10 = vmul.f32 -1.442695, %v389_v7 }
 0x285   :  { %2971 = vpow2.f32 %v2784_v10 }
 0x28f   :  { %v2972_v11 = vpop.eup %2971 }
 0x290   :  { %v393_v16 = vadd.f32 1.0, %v2972_v11 }
 0x292   :  { %2973 = vrcp.f32 %v393_v16 }
 0x29c   :  { %v2974_v22 = vpop.eup %2973 }
 0x29d   :  { %v399_v23 = vrot.slane %v2974_v22, %v3252_v17  ;;  %v418_v25 = vrot.slane %v2974_v22, %v3256_v24 }
 0x29f   :  { %405 = vbcast.lane.b32.xlu1 %v399_v23, 264  ;;  %401 = vbcast.lane.b32.xlu0 %v399_v23, 256 }
 0x2a3   :  { %409 = vbcast.lane.b32.xlu1 %v399_v23, 272  ;;  %420 = vbcast.lane.b32.xlu0 %v418_v25, 256 }
 0x2a7   :  { %413 = vbcast.lane.b32.xlu1 %v399_v23, 280  ;;  %428 = vbcast.lane.b32.xlu0 %v418_v25, 272 }
 0x2ab   :  { %424 = vbcast.lane.b32.xlu1 %v418_v25, 264 }
 0x2af   :  { %432 = vbcast.lane.b32.xlu1 %v418_v25, 280 }
 0x311   :  { %v406_v26 = vpop.permute.xlu1 %405  ;;  %v402_v27 = vpop.permute.xlu0 %401 }
 0x312   :  { %v3260_v28 = vmul.f32 %v406_v26, %v3167_v8  ;;  %v3263_v29 = vmul.f32 %v406_v26, %v3169_v9  ;;  %v3266_v30 = vmul.f32 %v402_v27, %v3155_v2  ;;  %v3269_v31 = vmul.f32 %v402_v27, %v3159_v4 }
 0x314   :  { %6268 = vst [vmem:[#allocation14_spill] sm:$0xff] %v3260_v28  ;;  %6269 = vst [vmem:[#allocation15_spill] sm:$0xff] %v3263_v29  ;;  %v450_v8 = vadd.f32 %v3260_v28, %v3266_v30  ;;  %v459_v9 = vadd.f32 %v3263_v29, %v3269_v31  ;;  %v491_v2 = vmax.f32 %v3266_v30, %v3260_v28  ;;  %v3588_v28 = vstv %s3502_s11  ;;  %s3737_s11 = sld [smem:[#allocation2 + $0x56]] }
 0x315   :  { %6270 = vst [vmem:[#allocation16_spill] sm:$0xff] %v3266_v30  ;;  %6271 = vst [vmem:[#allocation17_spill] sm:$0xff] %v3269_v31  ;;  %v410_v32 = vpop.permute.xlu1 %409  ;;  %v421_v35 = vpop.permute.xlu0 %420  ;;  %v500_v4 = vmax.f32 %v3269_v31, %v3263_v29 }
 0x316   :  { %v3272_v33 = vmul.f32 %v410_v32, %v3179_v14  ;;  %v3275_v34 = vmul.f32 %v410_v32, %v3181_v15 }
 0x318   :  { %6272 = vst [vmem:[#allocation18_spill] sm:$0xff] %v3272_v33  ;;  %6273 = vst [vmem:[#allocation19_spill] sm:$0xff] %v3275_v34  ;;  %v451_v36 = vadd.f32 %v450_v8, %v3272_v33  ;;  %v460_v14 = vadd.f32 %v459_v9, %v3275_v34  ;;  %v492_v15 = vmax.f32 %v491_v2, %v3272_v33 }
 0x319   :  { %v414_v37 = vpop.permute.xlu1 %413  ;;  %v501_v38 = vmax.f32 %v500_v4, %v3275_v34  ;;  %v429_v45 = vpop.permute.xlu0 %428  ;;  %v3533_v34 = vstv %s2849_s30  ;;  %s3708_s30 = sld [smem:[#allocation2 + $0x3b]] }
 0x31a   :  { %v3290_v39 = vmul.f32 %v414_v37, %v3191_v20  ;;  %v3293_v40 = vmul.f32 %v414_v37, %v3193_v21  ;;  %v3300_v20 = vmul.f32 %v421_v35, %v3151_v0  ;;  %v3303_v21 = vmul.f32 %v421_v35, %v3153_v1 }
 0x31b   :  { %v3312_v56 = vmul.f32 %v429_v45, %v3175_v12  ;;  %v3315_v57 = vmul.f32 %v429_v45, %v3177_v13 }
 0x31c   :  { %6274 = vst [vmem:[#allocation20_spill] sm:$0xff] %v3290_v39  ;;  %6275 = vst [vmem:[#allocation21_spill] sm:$0xff] %v3293_v40  ;;  %v452_v41 = vadd.f32 %v451_v36, %v3290_v39  ;;  %v461_v42 = vadd.f32 %v460_v14, %v3293_v40  ;;  %v493_v43 = vmax.f32 %v492_v15, %v3290_v39  ;;  %v3529_v39 = vstv %s2839_s0  ;;  %s3683_s0 = sld [smem:[#allocation2 + $0x53]] }
 0x31d   :  { %v502_v44 = vmax.f32 %v501_v38, %v3293_v40  ;;  %v425_v46 = vpop.permute.xlu1 %424  ;;  %6276 = vst [vmem:[#allocation22_spill] sm:$0xff] %v3300_v20  ;;  %6277 = vst [vmem:[#allocation23_spill] sm:$0xff] %v3303_v21  ;;  %v3486_v40 = vstv %s2836_s26  ;;  %s3058_s26 = smov 122  }
 0x31e   :  { %v453_v47 = vrot.slane %v452_v41, 4  ;;  %v462_v48 = vrot.slane %v461_v42, 4  ;;  %v494_v49 = vrot.slane %v493_v43, 4  ;;  %v3306_v52 = vmul.f32 %v425_v46, %v3161_v5  ;;  %6280 = vst [vmem:[#allocation26_spill] sm:$0xff] %v3312_v56  ;;  %6281 = vst [vmem:[#allocation27_spill] sm:$0xff] %v3315_v57 }
 0x31f   :  { %v503_v51 = vrot.slane %v502_v44, 4  ;;  %v3309_v53 = vmul.f32 %v425_v46, %v3163_v6 }
 0x320   :  { %6278 = vst [vmem:[#allocation24_spill] sm:$0xff] %v3306_v52  ;;  %v454_v54 = vadd.f32 %v453_v47, %v452_v41  ;;  %v463_v55 = vadd.f32 %v462_v48, %v461_v42  ;;  %v468_v0 = vadd.f32 %v3306_v52, %v3300_v20  ;;  %v509_v5 = vmax.f32 %v3300_v20, %v3306_v52 }
 0x321   :  { %6279 = vst [vmem:[#allocation25_spill] sm:$0xff] %v3309_v53  ;;  %v477_v1 = vadd.f32 %v3309_v53, %v3303_v21  ;;  %v518_v6 = vmax.f32 %v3303_v21, %v3309_v53  ;;  %v433_v58 = vpop.permute.xlu1 %432  ;;  %v495_v59 = vmax.f32 %v493_v43, %v494_v49  ;;  %v504_v60 = vmax.f32 %v502_v44, %v503_v51 }
 0x322   :  { %v3326_v12 = vmul.f32 %v433_v58, %v3187_v18  ;;  %v3329_v13 = vmul.f32 %v433_v58, %v3189_v19  ;;  %v469_v61 = vadd.f32 %v468_v0, %v3312_v56  ;;  %v510_v63 = vmax.f32 %v509_v5, %v3312_v56 }
 0x323   :  { %v478_v62 = vadd.f32 %v477_v1, %v3315_v57  ;;  %v519_v3 = vmax.f32 %v518_v6, %v3315_v57  ;;  %v505_v16 = vrot.slane %v504_v60, 2  ;;  %v496_v22 = vrot.slane %v495_v59, 2 }
 0x324   :  { %6282 = vst [vmem:[#allocation28_spill] sm:$0xff] %v3326_v12  ;;  %6283 = vst [vmem:[#allocation29_spill] sm:$0xff] %v3329_v13  ;;  %v470_v7 = vadd.f32 %v469_v61, %v3326_v12  ;;  %v511_v11 = vmax.f32 %v510_v63, %v3326_v12  ;;  %v464_v19 = vrot.slane %v463_v55, 2  ;;  %v455_v23 = vrot.slane %v454_v54, 2 }
 0x325   :  { %v479_v10 = vadd.f32 %v478_v62, %v3329_v13  ;;  %v520_v18 = vmax.f32 %v519_v3, %v3329_v13  ;;  %v506_v4 = vmax.f32 %v504_v60, %v505_v16  ;;  %v497_v36 = vmax.f32 %v495_v59, %v496_v22 }
 0x326   :  { %v471_v25 = vrot.slane %v470_v7, 4  ;;  %v512_v27 = vrot.slane %v511_v11, 4  ;;  %v465_v14 = vadd.f32 %v464_v19, %v463_v55  ;;  %v456_v37 = vadd.f32 %v455_v23, %v454_v54 }
 0x327   :  { %v480_v26 = vrot.slane %v479_v10, 4  ;;  %v521_v32 = vrot.slane %v520_v18, 4  ;;  %v507_v47 = vrot.slane %v506_v4, 1  ;;  %v498_v48 = vrot.slane %v497_v36, 1 }
 0x328   :  { %v472_v8 = vadd.f32 %v471_v25, %v470_v7  ;;  %v513_v35 = vmax.f32 %v511_v11, %v512_v27  ;;  %v466_v49 = vrot.slane %v465_v14, 1  ;;  %v457_v51 = vrot.slane %v456_v37, 1 }
 0x329   :  { %v481_v9 = vadd.f32 %v480_v26, %v479_v10  ;;  %v522_v2 = vmax.f32 %v520_v18, %v521_v32  ;;  %v508_v60 = vmax.f32 %v506_v4, %v507_v47  ;;  %v499_v61 = vmax.f32 %v497_v36, %v498_v48  ;;  %v566_v32 = vld [vmem:[%s6030_s1 + $0x10] sm:$0x7f]  ;;  %v564_v36 = vld [vmem:[%s6030_s1] sm:$0x7f] }
 0x32a   :  { %v514_v38 = vrot.slane %v513_v35, 2  ;;  %v473_v42 = vrot.slane %v472_v8, 2  ;;  %v467_v62 = vadd.f32 %v466_v49, %v465_v14  ;;  %v458_v63 = vadd.f32 %v457_v51, %v456_v37  ;;  %v565_v37 = vld [vmem:[%s6030_s1 + $0x8] sm:$0x7f]  ;;  %s2835_s1 = sld [smem:[#allocation2 + $0x33]] }
 0x32b   :  { %v523_v15 = vrot.slane %v522_v2, 2  ;;  %v482_v41 = vrot.slane %v481_v9, 2  ;;  %v677_v4 = vsub.s32 6, %v3227_v50  ;;  %v3374_v47 = vrot.slane %v564_v36, %v3252_v17 }
 0x32c   :  { %v515_v44 = vmax.f32 %v513_v35, %v514_v38  ;;  %v474_v46 = vadd.f32 %v473_v42, %v472_v8  ;;  %v488_v23 = vmul.f32 0.03125, %v467_v62  ;;  %v487_v25 = vmul.f32 0.03125, %v458_v63 }
 0x32d   :  { %v524_v43 = vmax.f32 %v522_v2, %v523_v15  ;;  %v483_v45 = vadd.f32 %v482_v41, %v481_v9  ;;  %v605_v8 = vsub.s32 2, %v3227_v50  ;;  %v623_v9 = vsub.s32 3, %v3227_v50 }
 0x32e   :  { %v516_v1 = vrot.slane %v515_v44, 1  ;;  %v475_v6 = vrot.slane %v474_v46, 1  ;;  %v641_v35 = vsub.s32 4, %v3227_v50  ;;  %v659_v2 = vsub.s32 5, %v3227_v50 }
 0x32f   :  { %v525_v0 = vrot.slane %v524_v43, 1  ;;  %v484_v5 = vrot.slane %v483_v45, 1  ;;  %v3360_v38 = vrot.slane %v566_v32, %v3252_v17  ;;  %v596_v41 = vrot.slane %v566_v32, %v3256_v24 }
 0x330   :  { %v517_v59 = vmax.f32 %v515_v44, %v516_v1  ;;  %v476_v54 = vadd.f32 %v475_v6, %v474_v46  ;;  %v3363_v42 = vrot.slane %v566_v32, %v605_v8  ;;  %v3367_v44 = vrot.slane %v566_v32, %v641_v35 }
 0x331   :  { %v526_v58 = vmax.f32 %v524_v43, %v525_v0  ;;  %v485_v55 = vadd.f32 %v484_v5, %v483_v45  ;;  %v3365_v43 = vrot.slane %v566_v32, %v623_v9  ;;  %v3369_v45 = vrot.slane %v566_v32, %v659_v2 }
 0x332   :  { %v539_v7 = vrot.slane %v517_v59, 7  ;;  %v489_v11 = vmul.f32 0.03125, %v476_v54  ;;  %v3371_v46 = vrot.slane %v566_v32, %v677_v4  ;;  %v3377_v48 = vrot.slane %v565_v37, %v3252_v17 }
 0x333   :  { %v541_v3 = vrot.slane %v526_v58, 7  ;;  %v490_v10 = vmul.f32 0.03125, %v485_v55  ;;  %v588_v49 = vrot.slane %v564_v36, %v3256_v24  ;;  %v592_v51 = vrot.slane %v565_v37, %v3256_v24 }
 0x334   :  { %v540_v16 = vsel %vm175_vm4, %v539_v7, %v499_v61  ;;  %v535_v19 = vrot.slane %v489_v11, 7  ;;  %v606_v0 = vrot.slane %v564_v36, %v605_v8  ;;  %v610_v1 = vrot.slane %v565_v37, %v605_v8 }
 0x335   :  { %v542_v18 = vsel %vm175_vm4, %v541_v3, %v508_v60  ;;  %v537_v22 = vrot.slane %v490_v10, 7  ;;  %547 = vrot.lane.b32.xlu0 %v540_v16, %s3052_s4  ;;  %v3381_v5 = vrot.slane %v564_v36, %v623_v9  ;;  %v628_v55 = vrot.slane %v565_v37, %v623_v9 }
 0x336   :  { %549 = vrot.lane.b32.xlu1 %v542_v18, %s3052_s4  ;;  %v536_v27 = vsel %vm175_vm4, %v535_v19, %v487_v25  ;;  %v3389_v54 = vrot.slane %v564_v36, %v641_v35  ;;  %v646_v60 = vrot.slane %v565_v37, %v641_v35  ;;  %v3391_v61 = vrot.slane %v564_v36, %v659_v2 }
 0x337   :  { %v538_v26 = vsel %vm175_vm4, %v537_v22, %v488_v23  ;;  %v3393_v62 = vrot.slane %v565_v37, %v659_v2  ;;  %v3395_v63 = vrot.slane %v564_v36, %v677_v4  ;;  %v3397_v3 = vrot.slane %v565_v37, %v677_v4 }
 0x338   :  { %v821_v10 = vstv %s3351_s21  ;;  %v860_v20 = vstv %s2835_s1  ;;  %s3057_s21 = smov 123   ;;  %s3657_s1 = sld [smem:[#allocation2 + $0x50]]  ;;  %vm1204_vm4 = vcmask 883712  }
 0x339   :  { %543 = vrot.lane.b32.xlu0 %v536_v27, %s3052_s4 }
 0x33a   :  { %545 = vrot.lane.b32.xlu1 %v538_v26, %s3052_s4  ;;  %s3567_s4 = sld [smem:[#allocation2 + $0x4b]] }
 0x3a7   :  { %v548_v15 = vpop.permute.xlu0 %547 }
 0x3a8   :  { %v550_v14 = vpop.permute.xlu1 %549  ;;  %v3387_v58 = vsel %vm551_vm9, 0.0, %v548_v15 }
 0x3a9   :  { %v3384_v6 = vsel %vm551_vm9, %v548_v15, %v550_v14  ;;  %v3401_v11 = vsel %vm551_vm9, %v550_v14, 0.0  ;;  %v3404_v18 = vmul.f32 %v588_v49, %v3387_v58 }
 0x3aa   :  { %v3407_v16 = vmul.f32 %v592_v51, %v3384_v6  ;;  %v3469_v56 = vmul.f32 %v596_v41, %v3401_v11  ;;  %v3472_v53 = vmul.f32 %v610_v1, %v3384_v6  ;;  %v3553_v33 = vmul.f32 %v3367_v44, %v3401_v11 }
 0x3ab   :  { %v544_v7 = vpop.permute.xlu0 %543  ;;  %v822_v52 = vmul.f32 %v821_v10, %v3404_v18  ;;  %v3602_v30 = vmul.f32 %v3360_v38, %v3401_v11 }
 0x3ac   :  { %v546_v59 = vpop.permute.xlu1 %545  ;;  %v560_v35 = vsel %vm551_vm9, 0.0, %v544_v7  ;;  %v823_v21 = vmul.f32 %v821_v10, %v3407_v16 }
 0x3ad   :  { %v562_v22 = vsel %vm551_vm9, %v546_v59, 0.0  ;;  %v552_v9 = vsel %vm551_vm9, %v544_v7, %v546_v59  ;;  %v3440_v14 = vmul.f32 %v3374_v47, %v560_v35  ;;  %v3442_v37 = vmul.f32 %v588_v49, %v560_v35  ;;  %828 = vrot.lane.b32.xlu1 %v822_v52, %s3053_s28 }
 0x3ae   :  { %v3411_v19 = vmul.f32 %v3360_v38, %v562_v22  ;;  %v3413_v23 = vmul.f32 %v596_v41, %v562_v22  ;;  %v3416_v25 = vmul.f32 %v3363_v42, %v562_v22  ;;  %v3419_v26 = vmul.f32 %v3365_v43, %v562_v22  ;;  %830 = vrot.lane.b32.xlu0 %v823_v21, %s3053_s28 }
 0x3af   :  { %v3422_v27 = vmul.f32 %v3367_v44, %v562_v22  ;;  %v3425_v32 = vmul.f32 %v3369_v45, %v562_v22  ;;  %v3428_v8 = vmul.f32 %v3371_v46, %v562_v22  ;;  %v3433_v2 = vmul.f32 %v3377_v48, %v552_v9  ;;  %6293 = vst [vmem:[#allocation39_spill] sm:$0xff] %v3440_v14 }
 0x3b0   :  { %6284 = vst [vmem:[#allocation30_spill] sm:$0xff] %v3411_v19  ;;  %6285 = vst [vmem:[#allocation31_spill] sm:$0xff] %v3413_v23  ;;  %v3435_v4 = vmul.f32 %v592_v51, %v552_v9  ;;  %v3437_v36 = vmul.f32 %v610_v1, %v552_v9  ;;  %v3444_v15 = vmul.f32 %v606_v0, %v560_v35  ;;  %v3650_v19 = vstv %s3531_s16  ;;  %s6239_s16 = smov 111  }
 0x3b1   :  { %6286 = vst [vmem:[#allocation32_spill] sm:$0xff] %v3416_v25  ;;  %6287 = vst [vmem:[#allocation33_spill] sm:$0xff] %v3419_v26  ;;  %v3447_v22 = vmul.f32 %v3381_v5, %v560_v35  ;;  %v3449_v59 = vmul.f32 %v628_v55, %v552_v9  ;;  %v3452_v7 = vmul.f32 %v3389_v54, %v560_v35  ;;  %v3655_v14 = vstv %s3537_s17  ;;  %s3783_s17 = sld [smem:[#allocation2 + $0x59]] }
 0x3b2   :  { %6288 = vst [vmem:[#allocation34_spill] sm:$0xff] %v3422_v27  ;;  %6289 = vst [vmem:[#allocation35_spill] sm:$0xff] %v3425_v32  ;;  %v3454_v51 = vmul.f32 %v646_v60, %v552_v9  ;;  %v3457_v13 = vmul.f32 %v3391_v61, %v560_v35  ;;  %v3460_v12 = vmul.f32 %v3393_v62, %v552_v9  ;;  %v3706_v25 = vstv %s3585_s19  ;;  %s3815_s19 = sld [smem:[#allocation2 + $0x3e]] }
 0x3b3   :  { %6290 = vst [vmem:[#allocation36_spill] sm:$0xff] %v3428_v8  ;;  %6291 = vst [vmem:[#allocation37_spill] sm:$0xff] %v3433_v2  ;;  %v3463_v49 = vmul.f32 %v3395_v63, %v560_v35  ;;  %v3466_v57 = vmul.f32 %v3397_v3, %v552_v9  ;;  %v3479_v9 = vmul.f32 %v606_v0, %v3387_v58  ;;  %v3666_v8 = vstv %s3549_s18  ;;  %s3799_s18 = sld [smem:[#allocation2 + $0x5a]] }
 0x3b4   :  { %6292 = vst [vmem:[#allocation38_spill] sm:$0xff] %v3435_v4  ;;  %6294 = vst [vmem:[#allocation40_spill] sm:$0xff] %v3442_v37  ;;  %v3482_v41 = vmul.f32 %v628_v55, %v3384_v6  ;;  %v824_v1 = vmul.f32 %v821_v10, %v3469_v56  ;;  %v862_v35 = vmul.f32 %v860_v20, %v3472_v53  ;;  %v3500_v10 = vstv %s2837_s27  ;;  %s3668_s27 = sld [smem:[#allocation2 + $0x51]] }
 0x3b5   :  { %6295 = vst [vmem:[#allocation41_spill] sm:$0xff] %v3444_v15  ;;  %6296 = vst [vmem:[#allocation42_spill] sm:$0xff] %v3447_v22  ;;  %v3492_v21 = vmul.f32 %v3363_v42, %v3401_v11  ;;  %v3495_v52 = vmul.f32 %v646_v60, %v3384_v6  ;;  %v861_v0 = vmul.f32 %v860_v20, %v3479_v9  ;;  %v3510_v42 = vstv %s2838_s29  ;;  %s3670_s29 = sld [smem:[#allocation2 + $0x52]] }
 0x3b6   :  { %6297 = vst [vmem:[#allocation43_spill] sm:$0xff] %v3449_v59  ;;  %6298 = vst [vmem:[#allocation44_spill] sm:$0xff] %v3452_v7  ;;  %832 = vrot.lane.b32.xlu1 %v824_v1, %s3053_s28  ;;  %869 = vrot.lane.b32.xlu0 %v862_v35, %s3054_s9  ;;  %v901_v55 = vmul.f32 %v3486_v40, %v3482_v41  ;;  %v3516_v60 = vmul.f32 %v3381_v5, %v3387_v58  ;;  %v3535_v5 = vstv %s2850_s6  ;;  %s3713_s6 = sld [smem:[#allocation2 + $0x54]]  ;;  %vm6260_vm9 = vcmask 777216  }
 0x3b7   :  { %6299 = vst [vmem:[#allocation45_spill] sm:$0xff] %v3454_v51  ;;  %6300 = vst [vmem:[#allocation46_spill] sm:$0xff] %v3457_v13  ;;  %v3520_v1 = vmul.f32 %v3393_v62, %v3384_v6  ;;  %v863_v35 = vmul.f32 %v860_v20, %v3492_v21  ;;  %v3541_v20 = vmul.f32 %v3389_v54, %v3387_v58  ;;  %v3547_v62 = vstv %s2852_s2  ;;  %s3728_s2 = sld [smem:[#allocation2 + $0x55]] }
 0x3b8   :  { %6301 = vst [vmem:[#allocation47_spill] sm:$0xff] %v3463_v49  ;;  %6302 = vst [vmem:[#allocation48_spill] sm:$0xff] %v3466_v57  ;;  %v3557_v54 = vmul.f32 %v3369_v45, %v3401_v11  ;;  %v3571_v44 = vmul.f32 %v3397_v3, %v3384_v6  ;;  %v900_v45 = vmul.f32 %v3486_v40, %v3516_v60  ;;  %v3711_v15 = vstv %s3590_s20  ;;  %s3828_s20 = sld [smem:[#allocation2 + $0x3f]] }
 0x3b9   :  { %v979_v29 = vmul.f32 %v3510_v42, %v3520_v1  ;;  %v3594_v3 = vmul.f32 %v3535_v5, %v3516_v60  ;;  %v3620_v38 = vmul.f32 %v3377_v48, %v3384_v6  ;;  %v939_v27 = vmul.f32 %v3500_v10, %v3541_v20 }
 0x3ba   :  { %867 = vrot.lane.b32.xlu1 %v861_v0, %s3054_s9  ;;  %908 = vrot.lane.b32.xlu0 %v901_v55, %s3055_s12  ;;  %v940_v0 = vmul.f32 %v3500_v10, %v3495_v52  ;;  %v3527_v55 = vmul.f32 %v3365_v43, %v3401_v11  ;;  %v3545_v43 = vstv %s2851_s10  ;;  %6303 = vst [vmem:[#allocation49_spill] sm:$0xff] %v3571_v44  ;;  %s6251_s10 = smov 112  }
 0x3bb   :  { %6306 = vst [vmem:[#allocation52_spill] sm:$0xff] %v3594_v3  ;;  %v3616_v24 = vmul.f32 %v3545_v43, %v3541_v20  ;;  %6309 = vst [vmem:[#allocation55_spill] sm:$0xff] %v3620_v38  ;;  %v1018_v48 = vmul.f32 %v3529_v39, %v3571_v44  ;;  %v3643_v6 = vmul.f32 %v3547_v62, %v3557_v54 }
 0x3bc   :  { %v3598_v31 = vmul.f32 %v3535_v5, %v3527_v55  ;;  %v902_v50 = vmul.f32 %v3486_v40, %v3527_v55  ;;  %v1057_v7 = vmul.f32 %v3650_v19, %v3620_v38  ;;  %v3703_v22 = vmul.f32 %v3655_v14, %v3516_v60 }
 0x3bd   :  { %6308 = vst [vmem:[#allocation54_spill] sm:$0xff] %v3616_v24  ;;  %6312 = vst [vmem:[#allocation58_spill] sm:$0xff] %v3643_v6  ;;  %v3717_v23 = vmul.f32 %v3655_v14, %v3527_v55  ;;  %v3721_v37 = vmul.f32 %v3666_v8, %v3541_v20  ;;  %v3831_v6 = vstv %s3713_s6  ;;  %s3905_s6 = sld [smem:[#allocation2 + $0x1]] }
 0x3be   :  { %871 = vrot.lane.b32.xlu1 %v863_v35, %s3054_s9  ;;  %947 = vrot.lane.b32.xlu0 %v940_v0, %s3056_s3  ;;  %v3561_v35 = vmul.f32 %v3391_v61, %v3387_v58  ;;  %v3565_v0 = vmul.f32 %v3395_v63, %v3387_v58  ;;  %v3579_v61 = vmul.f32 %v3533_v34, %v3492_v21 }
 0x3bf   :  { %v3583_v63 = vmul.f32 %v3374_v47, %v3387_v58  ;;  %6307 = vst [vmem:[#allocation53_spill] sm:$0xff] %v3598_v31  ;;  %v3607_v47 = vstv %s3506_s13  ;;  %v3610_v58 = vstv %s3508_s14  ;;  %6320 = vst [vmem:[#allocation66_spill] sm:$0xff] %v3703_v22  ;;  %v3726_v22 = vstv %s3612_s22  ;;  %s3754_s13 = sld [smem:[#allocation2 + $0x57]]  ;;  %s3763_s14 = sld [smem:[#allocation2 + $0x3c]] }
 0x3c0   :  { %6304 = vst [vmem:[#allocation50_spill] sm:$0xff] %v3579_v61  ;;  %v3633_v17 = vmul.f32 %v3547_v62, %v3561_v35  ;;  %v3647_v2 = vmul.f32 %v3588_v28, %v3565_v0  ;;  %v3674_v49 = vmul.f32 %v3607_v47, %v3602_v30  ;;  %v3678_v32 = vmul.f32 %v3610_v58, %v3404_v18  ;;  %s3833_s22 = sld [smem:[#allocation2 + $0x5b]] }
 0x3c1   :  { %6305 = vst [vmem:[#allocation51_spill] sm:$0xff] %v3583_v63  ;;  %v3661_v40 = vmul.f32 %v3607_v47, %v3583_v63  ;;  %6321 = vst [vmem:[#allocation67_spill] sm:$0xff] %v3717_v23  ;;  %v3735_v23 = vstv %s3625_s23  ;;  %s6238_s23 = smov 110   ;;  %v3880_v31 = vmul.f32 %v3831_v6, %v3583_v63 }
 0x3c2   :  { %906 = vrot.lane.b32.xlu1 %v900_v45, %s3055_s12  ;;  %986 = vrot.lane.b32.xlu0 %v979_v29, %s3057_s21  ;;  %v3623_v45 = vstv %s3512_s15  ;;  %v3629_v29 = vmul.f32 %v3545_v43, %v3553_v33  ;;  %6311 = vst [vmem:[#allocation57_spill] sm:$0xff] %v3633_v17  ;;  %6313 = vst [vmem:[#allocation59_spill] sm:$0xff] %v3647_v2  ;;  %s3768_s15 = sld [smem:[#allocation2 + $0x58]] }
 0x3c3   :  { %6314 = vst [vmem:[#allocation60_spill] sm:$0xff] %v3661_v40  ;;  %6315 = vst [vmem:[#allocation61_spill] sm:$0xff] %v3674_v49  ;;  %v3691_v13 = vmul.f32 %v3623_v45, %v3479_v9  ;;  %v3699_v26 = vmul.f32 %v3623_v45, %v3492_v21  ;;  %v3787_v49 = vmul.f32 %v3735_v23, %v3404_v18 }
 0x3c4   :  { %6310 = vst [vmem:[#allocation56_spill] sm:$0xff] %v3629_v29  ;;  %6316 = vst [vmem:[#allocation62_spill] sm:$0xff] %v3678_v32  ;;  %v3776_v32 = vmul.f32 %v3726_v22, %v3602_v30  ;;  %v3857_v29 = vstv %s3737_s11  ;;  %s3924_s11 = sld [smem:[#allocation2 + $0x3]] }
 0x3c5   :  { %6318 = vst [vmem:[#allocation64_spill] sm:$0xff] %v3691_v13  ;;  %6319 = vst [vmem:[#allocation65_spill] sm:$0xff] %v3699_v26  ;;  %v3732_v26 = vmul.f32 %v3666_v8, %v3553_v33  ;;  %v1096_v13 = vmul.f32 %v3706_v25, %v3407_v16 }
 0x3c6   :  { %910 = vrot.lane.b32.xlu1 %v902_v50, %s3055_s12  ;;  %1025 = vrot.lane.b32.xlu0 %v1018_v48, %s3058_s26  ;;  %v3681_v50 = vstv %s3567_s4  ;;  %v3687_v48 = vmul.f32 %v3610_v58, %v3469_v56  ;;  %6322 = vst [vmem:[#allocation68_spill] sm:$0xff] %v3721_v37  ;;  %6330 = vst [vmem:[#allocation76_spill] sm:$0xff] %v3776_v32  ;;  %v3794_v32 = vstv %s3670_s29  ;;  %s3813_s4 = sld [smem:[#allocation2 + $0x3d]]  ;;  %s3888_s29 = sld [smem:[#allocation2 + $0x5f]] }
 0x3c7   :  { %6323 = vst [vmem:[#allocation69_spill] sm:$0xff] %v3732_v26  ;;  %v3741_v37 = vmul.f32 %v3681_v50, %v3561_v35  ;;  %v3752_v26 = vstv %s3639_s24  ;;  %6332 = vst [vmem:[#allocation78_spill] sm:$0xff] %v3787_v49  ;;  %v978_v49 = vmul.f32 %v3510_v42, %v3561_v35  ;;  %s3848_s24 = sld [smem:[#allocation2 + $0x5c]] }
 0x3c8   :  { %6317 = vst [vmem:[#allocation63_spill] sm:$0xff] %v3687_v48  ;;  %6326 = vst [vmem:[#allocation72_spill] sm:$0xff] %v3752_v26  ;;  %v3761_v48 = vstv %s3652_s25  ;;  %v3807_v40 = vmul.f32 %v3752_v26, %v3492_v21  ;;  %s3850_s25 = sld [smem:[#allocation2 + $0x5d]]  ;;  %v3886_v3 = vstv %s3768_s15  ;;  %s3956_s15 = sld [smem:[#allocation2 + $0x6]] }
 0x3c9   :  { %6324 = vst [vmem:[#allocation70_spill] sm:$0xff] %v3741_v37  ;;  %v3758_v37 = vmul.f32 %v3711_v15, %v3565_v0  ;;  %6334 = vst [vmem:[#allocation80_spill] sm:$0xff] %v3794_v32 }
 0x3ca   :  { %945 = vrot.lane.b32.xlu1 %v939_v27, %s3056_s3  ;;  %1064 = vrot.lane.b32.xlu0 %v1057_v7, %s6251_s10  ;;  %v3745_v27 = vmul.f32 %v3681_v50, %v3557_v54  ;;  %v941_v7 = vmul.f32 %v3500_v10, %v3553_v33  ;;  %v3772_v10 = vmul.f32 %v3726_v22, %v3583_v63 }
 0x3cb   :  { %6327 = vst [vmem:[#allocation73_spill] sm:$0xff] %v3758_v37  ;;  %v3781_v37 = vstv %s3668_s27  ;;  %6337 = vst [vmem:[#allocation83_spill] sm:$0xff] %v3807_v40  ;;  %v3826_v40 = vstv %s3708_s30  ;;  %s3873_s27 = sld [smem:[#allocation2 + $0x40]]  ;;  %s6233_s30 = smov 109  }
 0x3cc   :  { %6325 = vst [vmem:[#allocation71_spill] sm:$0xff] %v3745_v27  ;;  %v3766_v27 = vstv %s3657_s1  ;;  %6329 = vst [vmem:[#allocation75_spill] sm:$0xff] %v3772_v10  ;;  %v3791_v10 = vmul.f32 %v3735_v23, %v3469_v56  ;;  %v3837_v17 = vmul.f32 %v3781_v37, %v3541_v20  ;;  %s3859_s1 = sld [smem:[#allocation2 + $0x5e]]  ;;  %v1174_v24 = vmul.f32 %v3826_v40, %v3482_v41 }
 0x3cd   :  { %6328 = vst [vmem:[#allocation74_spill] sm:$0xff] %v3766_v27  ;;  %6331 = vst [vmem:[#allocation77_spill] sm:$0xff] %v3781_v37  ;;  %v3819_v2 = vmul.f32 %v3766_v27, %v3516_v60 }
 0x3ce   :  { %949 = vrot.lane.b32.xlu1 %v941_v7, %s3056_s3  ;;  %1103 = vrot.lane.b32.xlu0 %v1096_v13, %s6239_s16  ;;  %6333 = vst [vmem:[#allocation79_spill] sm:$0xff] %v3791_v10  ;;  %v3797_v7 = vstv %s3683_s0  ;;  %v3803_v13 = vmul.f32 %v3752_v26, %v3479_v9  ;;  %v1135_v10 = vmul.f32 %v3761_v48, %v3472_v53  ;;  %6340 = vst [vmem:[#allocation86_spill] sm:$0xff] %v3831_v6  ;;  %s3890_s0 = sld [smem:[#allocation2 + $0x60]] }
 0x3cf   :  { %6335 = vst [vmem:[#allocation81_spill] sm:$0xff] %v3797_v7  ;;  %6338 = vst [vmem:[#allocation84_spill] sm:$0xff] %v3819_v2  ;;  %v3841_v2 = vmul.f32 %v3781_v37, %v3553_v33 }
 0x3d0   :  { %6336 = vst [vmem:[#allocation82_spill] sm:$0xff] %v3803_v13  ;;  %v3823_v13 = vmul.f32 %v3766_v27, %v3527_v55  ;;  %6341 = vst [vmem:[#allocation87_spill] sm:$0xff] %v3837_v17  ;;  %v3854_v17 = vmul.f32 %v3794_v32, %v3561_v35 }
 0x3d1   :  { %6342 = vst [vmem:[#allocation88_spill] sm:$0xff] %v3841_v2  ;;  %6345 = vst [vmem:[#allocation91_spill] sm:$0xff] %v3857_v29  ;;  %v980_v2 = vmul.f32 %v3510_v42, %v3557_v54  ;;  %v3894_v42 = vmul.f32 %v3831_v6, %v3602_v30  ;;  %v3928_v6 = vmul.f32 %v3857_v29, %v3492_v21 }
 0x3d2   :  { %6339 = vst [vmem:[#allocation85_spill] sm:$0xff] %v3823_v13  ;;  %984 = vrot.lane.b32.xlu1 %v978_v49, %s3057_s21  ;;  %1142 = vrot.lane.b32.xlu0 %v1135_v10, %s6238_s23  ;;  %v3846_v13 = vstv %s3728_s2  ;;  %6344 = vst [vmem:[#allocation90_spill] sm:$0xff] %v3854_v17  ;;  %v3863_v49 = vmul.f32 %v3794_v32, %v3557_v54  ;;  %v3867_v10 = vmul.f32 %v3797_v7, %v3565_v0  ;;  %s3907_s2 = sld [smem:[#allocation2 + $0x2]] }
 0x3d3   :  { %6343 = vst [vmem:[#allocation89_spill] sm:$0xff] %v3846_v13  ;;  %v3876_v17 = vstv %s3754_s13  ;;  %6349 = vst [vmem:[#allocation95_spill] sm:$0xff] %v3880_v31  ;;  %v3903_v31 = vstv %s3783_s17  ;;  %s3938_s13 = sld [smem:[#allocation2 + $0x4]]  ;;  %s6232_s17 = smov 108  }
 0x3d4   :  { %6346 = vst [vmem:[#allocation92_spill] sm:$0xff] %v3863_v49  ;;  %6347 = vst [vmem:[#allocation93_spill] sm:$0xff] %v3867_v10  ;;  %v3883_v49 = vstv %s3763_s14  ;;  %v3898_v10 = vmul.f32 %v3846_v13, %v3404_v18  ;;  %s3954_s14 = sld [smem:[#allocation2 + $0x5]] }
 0x3d5   :  { %6348 = vst [vmem:[#allocation94_spill] sm:$0xff] %v3876_v17  ;;  %6350 = vst [vmem:[#allocation96_spill] sm:$0xff] %v3886_v3 }
 0x3d6   :  { %6351 = vst [vmem:[#allocation97_spill] sm:$0xff] %v3894_v42  ;;  %6352 = vst [vmem:[#allocation98_spill] sm:$0xff] %v3898_v10  ;;  %988 = vrot.lane.b32.xlu1 %v980_v2, %s3057_s21  ;;  %1181 = vrot.lane.b32.xlu0 %v1174_v24, %s6233_s30  ;;  %v3911_v42 = vmul.f32 %v3846_v13, %v3469_v56  ;;  %v3915_v10 = vmul.f32 %v3857_v29, %v3479_v9  ;;  %v3922_v24 = vstv %s3799_s18  ;;  %s3974_s18 = sld [smem:[#allocation2 + $0x8]] }
 0x3d7   :  { %6353 = vst [vmem:[#allocation99_spill] sm:$0xff] %v3903_v31  ;;  %v3919_v2 = vmul.f32 %v3371_v46, %v3401_v11  ;;  %6357 = vst [vmem:[#allocation103_spill] sm:$0xff] %v3922_v24  ;;  %v1213_v46 = vmul.f32 %v3883_v49, %v3495_v52  ;;  %v3942_v11 = vmul.f32 %v3876_v17, %v3527_v55  ;;  %v3952_v29 = vstv %s3833_s22  ;;  %s3991_s22 = sld [smem:[#allocation2 + $0xa]] }
 0x3d8   :  { %6354 = vst [vmem:[#allocation100_spill] sm:$0xff] %v3911_v42  ;;  %6355 = vst [vmem:[#allocation101_spill] sm:$0xff] %v3915_v10  ;;  %v3932_v42 = vmul.f32 %v3876_v17, %v3516_v60  ;;  %v1017_v10 = vmul.f32 %v3529_v39, %v3565_v0  ;;  %v3960_v13 = vmul.f32 %v3886_v3, %v3553_v33  ;;  %v3972_v17 = vstv %s3848_s24  ;;  %s4019_s24 = sld [smem:[#allocation2 + $0xd]] }
 0x3d9   :  { %6356 = vst [vmem:[#allocation102_spill] sm:$0xff] %v3919_v2  ;;  %6358 = vst [vmem:[#allocation104_spill] sm:$0xff] %v3928_v6  ;;  %v3946_v6 = vmul.f32 %v3886_v3, %v3541_v20  ;;  %v3989_v3 = vstv %s3859_s1  ;;  %v1019_v7 = vmul.f32 %v3529_v39, %v3919_v2  ;;  %v4009_v32 = vmul.f32 %v3952_v29, %v3602_v30  ;;  %s4037_s1 = sld [smem:[#allocation2 + $0xf]] }
 0x3da   :  { %6359 = vst [vmem:[#allocation105_spill] sm:$0xff] %v3932_v42  ;;  %6360 = vst [vmem:[#allocation106_spill] sm:$0xff] %v3942_v11  ;;  %v3949_v42 = vstv %s3813_s4  ;;  %v3964_v11 = vmul.f32 %v3903_v31, %v3561_v35  ;;  %1023 = vrot.lane.b32.xlu1 %v1017_v10, %s3058_s26  ;;  %1220 = vrot.lane.b32.xlu0 %v1213_v46, %s6232_s17  ;;  %s3976_s4 = sld [smem:[#allocation2 + $0x9]]  ;;  %v3986_v10 = vstv %s3850_s25  ;;  %s6147_s25 = smov 107  }
 0x3db   :  { %6361 = vst [vmem:[#allocation107_spill] sm:$0xff] %v3946_v6  ;;  %6362 = vst [vmem:[#allocation108_spill] sm:$0xff] %v3952_v29  ;;  %v3969_v6 = vstv %s3815_s19  ;;  %v3995_v46 = vmul.f32 %v3922_v24, %v3565_v0  ;;  %s4001_s19 = sld [smem:[#allocation2 + $0xb]]  ;;  %v4012_v24 = vstv %s3873_s27  ;;  %v4023_v39 = vmul.f32 %v3972_v17, %v3404_v18  ;;  %s4039_s27 = sld [smem:[#allocation2 + $0x10]] }
 0x3dc   :  { %6363 = vst [vmem:[#allocation109_spill] sm:$0xff] %v3960_v13  ;;  %6364 = vst [vmem:[#allocation110_spill] sm:$0xff] %v3964_v11  ;;  %v3980_v13 = vmul.f32 %v3903_v31, %v3557_v54  ;;  %v3983_v11 = vstv %s3828_s20  ;;  %v4005_v31 = vmul.f32 %v3952_v29, %v3583_v63  ;;  %s4017_s20 = sld [smem:[#allocation2 + $0xc]]  ;;  %v4035_v29 = vstv %s3905_s6  ;;  %s4071_s6 = sld [smem:[#allocation2 + $0x13]] }
 0x3dd   :  { %6365 = vst [vmem:[#allocation111_spill] sm:$0xff] %v3972_v17  ;;  %6367 = vst [vmem:[#allocation113_spill] sm:$0xff] %v3986_v10  ;;  %v4063_v61 = vmul.f32 %v3989_v3, %v3527_v55  ;;  %v4115_v27 = vstv %s3991_s22  ;;  %s6139_s22 = smov 96  }
 0x3de   :  { %6366 = vst [vmem:[#allocation112_spill] sm:$0xff] %v3980_v13  ;;  %6368 = vst [vmem:[#allocation114_spill] sm:$0xff] %v3989_v3  ;;  %v1252_v13 = vmul.f32 %v3949_v42, %v3520_v1  ;;  %1027 = vrot.lane.b32.xlu1 %v1019_v7, %s3058_s26  ;;  %v4047_v7 = vmul.f32 %v3986_v10, %v3492_v21 }
 0x3df   :  { %6369 = vst [vmem:[#allocation115_spill] sm:$0xff] %v3995_v46  ;;  %6370 = vst [vmem:[#allocation116_spill] sm:$0xff] %v4005_v31  ;;  %v4015_v46 = vstv %s3888_s29  ;;  %v4027_v31 = vmul.f32 %v3972_v17, %v3469_v56  ;;  %s4055_s29 = sld [smem:[#allocation2 + $0x11]]  ;;  %v4059_v17 = vmul.f32 %v3989_v3, %v3516_v60  ;;  %v4082_v3 = vstv %s3938_s13  ;;  %s4107_s13 = sld [smem:[#allocation2 + $0x17]] }
 0x3e0   :  { %6371 = vst [vmem:[#allocation117_spill] sm:$0xff] %v4009_v32  ;;  %6372 = vst [vmem:[#allocation118_spill] sm:$0xff] %v4015_v46  ;;  %1259 = vrot.lane.b32.xlu0 %v1252_v13, %s6147_s25  ;;  %v4032_v32 = vstv %s3890_s0  ;;  %v4053_v13 = vstv %s3924_s11  ;;  %s4069_s0 = sld [smem:[#allocation2 + $0x12]]  ;;  %s4089_s11 = sld [smem:[#allocation2 + $0x16]] }
 0x3e1   :  { %6373 = vst [vmem:[#allocation119_spill] sm:$0xff] %v4023_v39  ;;  %6374 = vst [vmem:[#allocation120_spill] sm:$0xff] %v4027_v31  ;;  %v4043_v39 = vmul.f32 %v3986_v10, %v3479_v9  ;;  %v4050_v31 = vstv %s3907_s2  ;;  %v4085_v10 = vstv %s3954_s14  ;;  %s4087_s2 = sld [smem:[#allocation2 + $0x14]]  ;;  %v4093_v37 = vmul.f32 %v4032_v32, %v3561_v35  ;;  %s4109_s14 = sld [smem:[#allocation2 + $0x18]] }
 0x3e2   :  { %6375 = vst [vmem:[#allocation121_spill] sm:$0xff] %v4032_v32  ;;  %6376 = vst [vmem:[#allocation122_spill] sm:$0xff] %v4035_v29  ;;  %v4133_v26 = vmul.f32 %v4053_v13, %v3449_v59 }
 0x3e3   :  { %6377 = vst [vmem:[#allocation123_spill] sm:$0xff] %v4043_v39  ;;  %6378 = vst [vmem:[#allocation124_spill] sm:$0xff] %v4047_v7  ;;  %v1056_v39 = vmul.f32 %v3650_v19, %v3583_v63  ;;  %v1291_v7 = vmul.f32 %v3969_v6, %v3571_v44 }
 0x3e4   :  { %6379 = vst [vmem:[#allocation125_spill] sm:$0xff] %v4050_v31  ;;  %6380 = vst [vmem:[#allocation126_spill] sm:$0xff] %v4053_v13 }
 0x3e5   :  { %6381 = vst [vmem:[#allocation127_spill] sm:$0xff] %v4059_v17  ;;  %6382 = vst [vmem:[#allocation128_spill] sm:$0xff] %v4063_v61  ;;  %v4075_v17 = vmul.f32 %v4015_v46, %v3541_v20  ;;  %v4079_v61 = vmul.f32 %v4015_v46, %v3553_v33  ;;  %1062 = vrot.lane.b32.xlu1 %v1056_v39, %s6251_s10  ;;  %1298 = vrot.lane.b32.xlu0 %v1291_v7, %s6143_s7  ;;  %v4105_v46 = vstv %s3974_s18  ;;  %s4151_s18 = sld [smem:[#allocation2 + $0x1b]] }
 0x3e6   :  { %6385 = vst [vmem:[#allocation131_spill] sm:$0xff] %v4082_v3  ;;  %6386 = vst [vmem:[#allocation132_spill] sm:$0xff] %v4085_v10  ;;  %v4119_v39 = vmul.f32 %v4035_v29, %v3435_v4  ;;  %v4125_v7 = vmul.f32 %v4050_v31, %v3437_v36  ;;  %v4145_v31 = vstv %s4017_s20  ;;  %s4173_s20 = sld [smem:[#allocation2 + $0x1f]] }
 0x3e7   :  { %6383 = vst [vmem:[#allocation129_spill] sm:$0xff] %v4075_v17  ;;  %6384 = vst [vmem:[#allocation130_spill] sm:$0xff] %v4079_v61  ;;  %v4097_v17 = vmul.f32 %v4032_v32, %v3557_v54  ;;  %v4102_v61 = vstv %s3956_s15  ;;  %v1330_v32 = vmul.f32 %v3983_v11, %v3620_v38  ;;  %s4135_s15 = sld [smem:[#allocation2 + $0x1a]] }
 0x3e8   :  { %6387 = vst [vmem:[#allocation133_spill] sm:$0xff] %v4093_v37  ;;  %6389 = vst [vmem:[#allocation135_spill] sm:$0xff] %v4102_v61  ;;  %v4112_v37 = vstv %s3976_s4  ;;  %s4157_s4 = sld [smem:[#allocation2 + $0x1d]] }
 0x3e9   :  { %6388 = vst [vmem:[#allocation134_spill] sm:$0xff] %v4097_v17  ;;  %6390 = vst [vmem:[#allocation136_spill] sm:$0xff] %v4105_v46  ;;  %v1058_v17 = vmul.f32 %v3650_v19, %v3602_v30  ;;  %v4149_v19 = vmul.f32 %v4085_v10, %v3460_v12  ;;  %1337 = vrot.lane.b32.xlu0 %v1330_v32, %s6139_s22  ;;  %v4165_v10 = vstv %s4037_s1  ;;  %s4216_s1 = sld [smem:[#allocation2 + $0x21]] }
 0x3ea   :  { %6391 = vst [vmem:[#allocation137_spill] sm:$0xff] %v4112_v37  ;;  %6392 = vst [vmem:[#allocation138_spill] sm:$0xff] %v4115_v27  ;;  %v4183_v32 = vmul.f32 %v4112_v37, %v3437_v36  ;;  %v4210_v37 = vstv %s4087_s2  ;;  %s6161_s2 = smov 90  }
 0x3eb   :  { %6393 = vst [vmem:[#allocation139_spill] sm:$0xff] %v4119_v39  ;;  %6394 = vst [vmem:[#allocation140_spill] sm:$0xff] %v4125_v7  ;;  %v4139_v39 = vmul.f32 %v4082_v3, %v3454_v51  ;;  %v4142_v7 = vstv %s4001_s19  ;;  %1066 = vrot.lane.b32.xlu1 %v1058_v17, %s6251_s10  ;;  %s4171_s19 = sld [smem:[#allocation2 + $0x1e]]  ;;  %v4179_v17 = vstv %s4055_s29  ;;  %v4260_v29 = vstv %s4151_s18  ;;  %s6149_s29 = smov 93  }
 0x3ec   :  { %6395 = vst [vmem:[#allocation141_spill] sm:$0xff] %v4133_v26  ;;  %6397 = vst [vmem:[#allocation143_spill] sm:$0xff] %v4142_v7  ;;  %v4155_v26 = vmul.f32 %v4102_v61, %v3466_v57  ;;  %v4187_v61 = vmul.f32 %v4115_v27, %v3449_v59  ;;  %v4197_v3 = vmul.f32 %v4142_v7, %v3454_v51  ;;  %v4204_v27 = vstv %s4069_s0  ;;  %s6153_s0 = smov 92   ;;  %s3077_s18 = smov 76  }
 0x3ed   :  { %6396 = vst [vmem:[#allocation142_spill] sm:$0xff] %v4139_v39  ;;  %6398 = vst [vmem:[#allocation144_spill] sm:$0xff] %v4145_v31  ;;  %v4162_v39 = vstv %s4019_s24  ;;  %s4189_s24 = sld [smem:[#allocation2 + $0x20]]  ;;  %v1097_v7 = vmul.f32 %v3706_v25, %v3469_v56 }
 0x3ee   :  { %6399 = vst [vmem:[#allocation145_spill] sm:$0xff] %v4149_v19  ;;  %6400 = vst [vmem:[#allocation146_spill] sm:$0xff] %v4155_v26  ;;  %v4169_v19 = vmul.f32 %v4105_v46, %v3435_v4  ;;  %v4176_v26 = vstv %s4039_s27  ;;  %v1369_v46 = vmul.f32 %v4012_v24, %v3407_v16  ;;  %v4214_v13 = vmul.f32 %v4162_v39, %v3466_v57  ;;  %s6141_s27 = smov 95  }
 0x3ef   :  { %6401 = vst [vmem:[#allocation147_spill] sm:$0xff] %v4162_v39  ;;  %6402 = vst [vmem:[#allocation148_spill] sm:$0xff] %v4165_v10  ;;  %v4234_v39 = vstv %s4121_s8  ;;  %s6145_s8 = smov 94  }
 0x3f0   :  { %6403 = vst [vmem:[#allocation149_spill] sm:$0xff] %v4169_v19  ;;  %6404 = vst [vmem:[#allocation150_spill] sm:$0xff] %v4176_v26  ;;  %v1095_v19 = vmul.f32 %v3706_v25, %v3404_v18  ;;  %1376 = vrot.lane.b32.xlu0 %v1369_v46, %s6141_s27  ;;  %v4242_v46 = vmul.f32 %v4179_v17, %v3449_v59  ;;  %v4269_v25 = vstv %s4157_s4  ;;  %s3078_s4 = smov 75  }
 0x3f1   :  { %6405 = vst [vmem:[#allocation151_spill] sm:$0xff] %v4183_v32  ;;  %6406 = vst [vmem:[#allocation152_spill] sm:$0xff] %v4187_v61  ;;  %v4201_v32 = vmul.f32 %v4145_v31, %v3460_v12  ;;  %v4207_v61 = vstv %s4071_s6  ;;  %v4228_v31 = vmul.f32 %v4165_v10, %v3435_v4  ;;  %v4250_v10 = vmul.f32 %v4204_v27, %v3454_v51  ;;  %s6157_s6 = smov 91  }
 0x3f2   :  { %6407 = vst [vmem:[#allocation153_spill] sm:$0xff] %v4197_v3  ;;  %6409 = vst [vmem:[#allocation155_spill] sm:$0xff] %v4207_v61  ;;  %1101 = vrot.lane.b32.xlu1 %v1095_v19, %s6239_s16  ;;  %v4224_v3 = vstv %s4107_s13  ;;  %v4238_v19 = vmul.f32 %v4176_v26, %v3437_v36  ;;  %v4254_v26 = vmul.f32 %v4207_v61, %v3460_v12  ;;  %s6175_s13 = smov 79  }
 0x3f3   :  { %6408 = vst [vmem:[#allocation154_spill] sm:$0xff] %v4201_v32  ;;  %6410 = vst [vmem:[#allocation156_spill] sm:$0xff] %v4210_v37  ;;  %v4221_v32 = vstv %s4089_s11  ;;  %v4280_v61 = vmul.f32 %v4224_v3, %v3437_v36  ;;  %s6169_s11 = smov 80  }
 0x3f4   :  { %6411 = vst [vmem:[#allocation157_spill] sm:$0xff] %v4214_v13  ;;  %6412 = vst [vmem:[#allocation158_spill] sm:$0xff] %v4221_v32  ;;  %v4231_v13 = vstv %s4109_s14  ;;  %s3075_s14 = smov 78  }
 0x3f5   :  { %6413 = vst [vmem:[#allocation159_spill] sm:$0xff] %v4224_v3  ;;  %6414 = vst [vmem:[#allocation160_spill] sm:$0xff] %v4228_v31  ;;  %v1408_v31 = vmul.f32 %v3533_v34, %v3472_v53  ;;  %v4306_v3 = vmul.f32 %v4260_v29, %v3466_v57 }
 0x3f6   :  { %6415 = vst [vmem:[#allocation161_spill] sm:$0xff] %v4231_v13  ;;  %6416 = vst [vmem:[#allocation162_spill] sm:$0xff] %v4238_v19  ;;  %v4257_v19 = vstv %s4135_s15  ;;  %1105 = vrot.lane.b32.xlu1 %v1097_v7, %s6239_s16  ;;  %v4290_v7 = vmul.f32 %v4231_v13, %v3449_v59  ;;  %v4309_v13 = vstv %s4216_s1  ;;  %s3076_s15 = smov 77   ;;  %s6226_s1 = smov 62  }
 0x3f7   :  { %6417 = vst [vmem:[#allocation163_spill] sm:$0xff] %v4242_v46  ;;  %6418 = vst [vmem:[#allocation164_spill] sm:$0xff] %v4250_v10  ;;  %v4264_v46 = vmul.f32 %v4210_v37, %v3466_v57  ;;  %1415 = vrot.lane.b32.xlu0 %v1408_v31, %s6145_s8  ;;  %v4272_v10 = vstv %s4171_s19  ;;  %v4283_v37 = vstv %s4173_s20  ;;  %v4294_v31 = vmul.f32 %v4234_v39, %v3454_v51  ;;  %s6192_s19 = smov 74   ;;  %s6244_s20 = smov 64  }
 0x3f8   :  { %6419 = vst [vmem:[#allocation165_spill] sm:$0xff] %v4254_v26  ;;  %v4276_v26 = vmul.f32 %v4221_v32, %v3435_v4  ;;  %6422 = vst [vmem:[#allocation168_spill] sm:$0xff] %v4280_v61  ;;  %v1134_v32 = vmul.f32 %v3761_v48, %v3479_v9  ;;  %v4302_v61 = vmul.f32 %v4257_v19, %v3460_v12 }
 0x3f9   :  { %6420 = vst [vmem:[#allocation166_spill] sm:$0xff] %v4264_v46  ;;  %v4286_v46 = vstv %s4189_s24  ;;  %6423 = vst [vmem:[#allocation169_spill] sm:$0xff] %v4290_v7  ;;  %v4313_v7 = vmul.f32 %v4269_v25, %v3435_v4  ;;  %v1136_v4 = vmul.f32 %v3761_v48, %v3492_v21  ;;  %v1175_v21 = vmul.f32 %v3826_v40, %v3527_v55  ;;  %s6236_s24 = smov 63  }
 0x3fa   :  { %6421 = vst [vmem:[#allocation167_spill] sm:$0xff] %v4276_v26  ;;  %v1447_v26 = vmul.f32 %v3535_v5, %v3482_v41  ;;  %6424 = vst [vmem:[#allocation170_spill] sm:$0xff] %v4302_v61  ;;  %1140 = vrot.lane.b32.xlu1 %v1134_v32, %s6238_s23  ;;  %v4319_v5 = vmul.f32 %v4272_v10, %v3437_v36  ;;  %v4323_v61 = vmul.f32 %v4283_v37, %v3449_v59 }
 0x3fb   :  { %v4327_v57 = vmul.f32 %v4286_v46, %v3454_v51  ;;  %v1486_v32 = vmul.f32 %v3545_v43, %v3495_v52  ;;  %v1173_v59 = vmul.f32 %v3826_v40, %v3516_v60  ;;  %v1525_v51 = vmul.f32 %v3547_v62, %v3520_v1 }
 0x3fc   :  { %1454 = vrot.lane.b32.xlu0 %v1447_v26, %s6149_s29  ;;  %v4335_v26 = vmul.f32 %v4309_v13, %v3460_v12  ;;  %v1212_v60 = vmul.f32 %v3883_v49, %v3541_v20  ;;  %v1642_v55 = vmul.f32 %v3610_v58, %v3407_v16  ;;  %v1251_v20 = vmul.f32 %v3949_v42, %v3561_v35 }
 0x3fd   :  { %v1681_v43 = vmul.f32 %v3623_v45, %v3472_v53  ;;  %v1720_v62 = vmul.f32 %v3655_v14, %v3482_v41  ;;  %v1290_v35 = vmul.f32 %v3969_v6, %v3565_v0  ;;  %v1798_v14 = vmul.f32 %v3681_v50, %v3520_v1 }
 0x3fe   :  { %1144 = vrot.lane.b32.xlu1 %v1136_v4, %s6238_s23  ;;  %v1564_v4 = vmul.f32 %v3588_v28, %v3571_v44  ;;  %v1329_v58 = vmul.f32 %v3983_v11, %v3583_v63  ;;  %v1331_v45 = vmul.f32 %v3983_v11, %v3602_v30  ;;  %v1368_v40 = vmul.f32 %v4012_v24, %v3404_v18 }
 0x3ff   :  { %v1915_v50 = vmul.f32 %v3735_v23, %v3407_v16  ;;  %v1407_v11 = vmul.f32 %v3533_v34, %v3479_v9 }
 0x400   :  { %1493 = vrot.lane.b32.xlu0 %v1486_v32, %s6153_s0  ;;  %v6430_v32 = vld [vmem:[#allocation74_spill] sm:$0xff] }
 0x402   :  { %1179 = vrot.lane.b32.xlu1 %v1173_v59, %s6233_s30  ;;  %v1603_v59 = vmul.f32 %v3607_v47, %v3620_v38  ;;  %v1759_v47 = vmul.f32 %v3666_v8, %v3495_v52  ;;  %v1837_v8 = vmul.f32 %v3711_v15, %v3571_v44 }
 0x404   :  { %1532 = vrot.lane.b32.xlu0 %v1525_v51, %s6157_s6  ;;  %v1214_v51 = vmul.f32 %v3883_v49, %v3553_v33  ;;  %v1253_v33 = vmul.f32 %v3949_v42, %v3557_v54  ;;  %v1292_v54 = vmul.f32 %v3969_v6, %v3919_v2  ;;  %v1876_v6 = vmul.f32 %v3726_v22, %v3620_v38  ;;  %v6427_v49 = vld [vmem:[#allocation72_spill] sm:$0xff] }
 0x405   :  { %v1370_v22 = vmul.f32 %v4012_v24, %v3469_v56  ;;  %v1954_v42 = vmul.f32 %v6427_v49, %v3472_v53  ;;  %v6450_v49 = vld [vmem:[#allocation56_spill] sm:$0xff] }
 0x406   :  { %1183 = vrot.lane.b32.xlu1 %v1175_v21, %s6233_s30  ;;  %v1993_v21 = vmul.f32 %v6430_v32, %v3482_v41  ;;  %v6453_v32 = vld [vmem:[#allocation91_spill] sm:$0xff] }
 0x408   :  { %1571 = vrot.lane.b32.xlu0 %v1564_v4, %s6161_s2  ;;  %v6433_v4 = vld [vmem:[#allocation77_spill] sm:$0xff] }
 0x40a   :  { %1218 = vrot.lane.b32.xlu1 %v1212_v60, %s6232_s17  ;;  %v2032_v60 = vmul.f32 %v6433_v4, %v3495_v52  ;;  %v6454_v4 = vld [vmem:[#allocation57_spill] sm:$0xff] }
 0x40c   :  { %1610 = vrot.lane.b32.xlu0 %v1603_v59, %s6169_s11  ;;  %v6434_v59 = vld [vmem:[#allocation50_spill] sm:$0xff] }
 0x40e   :  { %1222 = vrot.lane.b32.xlu1 %v1214_v51, %s6232_s17  ;;  %v6437_v51 = vld [vmem:[#allocation80_spill] sm:$0xff] }
 0x410   :  { %1649 = vrot.lane.b32.xlu0 %v1642_v55, %s6175_s13  ;;  %v2071_v55 = vmul.f32 %v6437_v51, %v3520_v1  ;;  %v6457_v51 = vld [vmem:[#allocation94_spill] sm:$0xff] }
 0x412   :  { %1257 = vrot.lane.b32.xlu1 %v1251_v20, %s6147_s25  ;;  %v6438_v20 = vld [vmem:[#allocation52_spill] sm:$0xff] }
 0x414   :  { %1688 = vrot.lane.b32.xlu0 %v1681_v43, %s3075_s14 }
 0x416   :  { %1261 = vrot.lane.b32.xlu1 %v1253_v33, %s6147_s25  ;;  %s6151_s25 = smov 48  }
 0x418   :  { %1727 = vrot.lane.b32.xlu0 %v1720_v62, %s3076_s15  ;;  %v6441_v62 = vld [vmem:[#allocation81_spill] sm:$0xff] }
 0x41a   :  { %1296 = vrot.lane.b32.xlu1 %v1290_v35, %s6143_s7  ;;  %v2110_v35 = vmul.f32 %v6441_v62, %v3571_v44 }
 0x41c   :  { %1766 = vrot.lane.b32.xlu0 %v1759_v47, %s3077_s18  ;;  %v6442_v47 = vld [vmem:[#allocation53_spill] sm:$0xff] }
 0x41e   :  { %1300 = vrot.lane.b32.xlu1 %v1292_v54, %s6143_s7  ;;  %s6212_s7 = smov 59  }
 0x41f   :  { %v4405_v30 = vpop.permute.xlu1 %828 }
 0x420   :  { %1805 = vrot.lane.b32.xlu0 %v1798_v14, %s3078_s4  ;;  %6425 = vst [vmem:[#allocation171_spill] sm:$0xff] %v4405_v30  ;;  %v4407_v48 = vpop.permute.xlu0 %830 }
 0x421   :  { %6426 = vst [vmem:[#allocation172_spill] sm:$0xff] %v4407_v48 }
 0x422   :  { %1335 = vrot.lane.b32.xlu1 %v1329_v58, %s6139_s22  ;;  %v6445_v58 = vld [vmem:[#allocation86_spill] sm:$0xff] }
 0x424   :  { %1844 = vrot.lane.b32.xlu0 %v1837_v8, %s6192_s19  ;;  %v2149_v8 = vmul.f32 %v6445_v58, %v3620_v38  ;;  %v6461_v58 = vld [vmem:[#allocation96_spill] sm:$0xff] }
 0x426   :  { %1339 = vrot.lane.b32.xlu1 %v1331_v45, %s6139_s22  ;;  %s6218_s22 = smov 61   ;;  %v6446_v45 = vld [vmem:[#allocation54_spill] sm:$0xff] }
 0x428   :  { %1883 = vrot.lane.b32.xlu0 %v1876_v6, %s6244_s20  ;;  %v4415_v18 = vpop.permute.xlu1 %832  ;;  %v4417_v23 = vpop.permute.xlu0 %869 }
 0x429   :  { %6428 = vst [vmem:[#allocation72_spill] sm:$0xff] %v4415_v18  ;;  %6429 = vst [vmem:[#allocation173_spill] sm:$0xff] %v4417_v23 }
 0x42a   :  { %1374 = vrot.lane.b32.xlu1 %v1368_v40, %s6141_s27 }
 0x42c   :  { %1922 = vrot.lane.b32.xlu0 %v1915_v50, %s6236_s24  ;;  %v4425_v56 = vpop.permute.xlu1 %867  ;;  %v4427_v24 = vpop.permute.xlu0 %908  ;;  %v6449_v50 = vld [vmem:[#allocation89_spill] sm:$0xff] }
 0x42d   :  { %6431 = vst [vmem:[#allocation74_spill] sm:$0xff] %v4425_v56  ;;  %6432 = vst [vmem:[#allocation174_spill] sm:$0xff] %v4427_v24 }
 0x42e   :  { %1378 = vrot.lane.b32.xlu1 %v1370_v22, %s6141_s27  ;;  %s6215_s27 = smov 60   ;;  %v2188_v22 = vmul.f32 %v6449_v50, %v3407_v16 }
 0x430   :  { %1961 = vrot.lane.b32.xlu0 %v1954_v42, %s6226_s1  ;;  %v4434_v34 = vpop.permute.xlu1 %871  ;;  %v4436_v9 = vpop.permute.xlu0 %947 }
 0x431   :  { %6435 = vst [vmem:[#allocation77_spill] sm:$0xff] %v4434_v34  ;;  %6436 = vst [vmem:[#allocation50_spill] sm:$0xff] %v4436_v9 }
 0x432   :  { %1413 = vrot.lane.b32.xlu1 %v1407_v11, %s6145_s8 }
 0x434   :  { %2000 = vrot.lane.b32.xlu0 %v1993_v21, %s6218_s22  ;;  %v4443_v43 = vpop.permute.xlu1 %906  ;;  %v4445_v33 = vpop.permute.xlu0 %986  ;;  %v2227_v21 = vmul.f32 %v6453_v32, %v3472_v53  ;;  %v6465_v32 = vld [vmem:[#allocation99_spill] sm:$0xff] }
 0x435   :  { %6439 = vst [vmem:[#allocation80_spill] sm:$0xff] %v4443_v43  ;;  %6440 = vst [vmem:[#allocation52_spill] sm:$0xff] %v4445_v33 }
 0x436   :  { %1417 = vrot.lane.b32.xlu1 %v6434_v59, %s6145_s8  ;;  %s6209_s8 = smov 58  }
 0x438   :  { %2039 = vrot.lane.b32.xlu0 %v2032_v60, %s6215_s27  ;;  %v4452_v54 = vpop.permute.xlu1 %910  ;;  %v4454_v14 = vpop.permute.xlu0 %1025 }
 0x439   :  { %6443 = vst [vmem:[#allocation81_spill] sm:$0xff] %v4452_v54  ;;  %6444 = vst [vmem:[#allocation53_spill] sm:$0xff] %v4454_v14  ;;  %v6553_v14 = vld [vmem:[#allocation30_spill] sm:$0xff] }
 0x43a   :  { %1452 = vrot.lane.b32.xlu1 %v6438_v20, %s6149_s29  ;;  %v6458_v20 = vld [vmem:[#allocation58_spill] sm:$0xff] }
 0x43c   :  { %2078 = vrot.lane.b32.xlu0 %v2071_v55, %s6212_s7  ;;  %v4461_v6 = vpop.permute.xlu1 %945  ;;  %v4463_v40 = vpop.permute.xlu0 %1064  ;;  %v2266_v55 = vmul.f32 %v6457_v51, %v3482_v41 }
 0x43d   :  { %6447 = vst [vmem:[#allocation86_spill] sm:$0xff] %v4461_v6  ;;  %6448 = vst [vmem:[#allocation54_spill] sm:$0xff] %v4463_v40  ;;  %v6541_v40 = vld [vmem:[#allocation135_spill] sm:$0xff] }
 0x43e   :  { %1456 = vrot.lane.b32.xlu1 %v6442_v47, %s6149_s29  ;;  %s6221_s29 = smov 47  }
 0x440   :  { %2117 = vrot.lane.b32.xlu0 %v2110_v35, %s6209_s8  ;;  %v4470_v42 = vpop.permute.xlu1 %949  ;;  %v4472_v11 = vpop.permute.xlu0 %1103 }
 0x441   :  { %6451 = vst [vmem:[#allocation89_spill] sm:$0xff] %v4470_v42  ;;  %6452 = vst [vmem:[#allocation56_spill] sm:$0xff] %v4472_v11  ;;  %v6524_v11 = vld [vmem:[#allocation131_spill] sm:$0xff] }
 0x442   :  { %1491 = vrot.lane.b32.xlu1 %v6446_v45, %s6153_s0  ;;  %v6462_v45 = vld [vmem:[#allocation59_spill] sm:$0xff] }
 0x444   :  { %2156 = vrot.lane.b32.xlu0 %v2149_v8, %s6151_s25  ;;  %s6155_s25 = smov 46   ;;  %v4479_v60 = vpop.permute.xlu1 %984  ;;  %v4481_v59 = vpop.permute.xlu0 %1142  ;;  %v2305_v8 = vmul.f32 %v6461_v58, %v3495_v52  ;;  %v6469_v58 = vld [vmem:[#allocation60_spill] sm:$0xff] }
 0x445   :  { %6455 = vst [vmem:[#allocation91_spill] sm:$0xff] %v4479_v60  ;;  %6456 = vst [vmem:[#allocation57_spill] sm:$0xff] %v4481_v59 }
 0x446   :  { %1495 = vrot.lane.b32.xlu1 %v6450_v49, %s6153_s0  ;;  %s6229_s0 = smov 45   ;;  %v1565_v49 = vmul.f32 %v3588_v28, %v3919_v2 }
 0x448   :  { %2195 = vrot.lane.b32.xlu0 %v2188_v22, %s6221_s29  ;;  %v4488_v35 = vpop.permute.xlu1 %988  ;;  %v4490_v47 = vpop.permute.xlu0 %1181 }
 0x449   :  { %6459 = vst [vmem:[#allocation94_spill] sm:$0xff] %v4488_v35  ;;  %6460 = vst [vmem:[#allocation58_spill] sm:$0xff] %v4490_v47  ;;  %v6481_v47 = vld [vmem:[#allocation63_spill] sm:$0xff] }
 0x44a   :  { %1530 = vrot.lane.b32.xlu1 %v6454_v4, %s6157_s6 }
 0x44c   :  { %2234 = vrot.lane.b32.xlu0 %v2227_v21, %s6155_s25  ;;  %s6159_s25 = smov 44   ;;  %v4497_v50 = vpop.permute.xlu1 %1023  ;;  %v4499_v22 = vpop.permute.xlu0 %1220  ;;  %v2344_v21 = vmul.f32 %v6465_v32, %v3520_v1  ;;  %v6473_v32 = vld [vmem:[#allocation61_spill] sm:$0xff] }
 0x44d   :  { %6463 = vst [vmem:[#allocation96_spill] sm:$0xff] %v4497_v50  ;;  %6464 = vst [vmem:[#allocation59_spill] sm:$0xff] %v4499_v22  ;;  %v6477_v22 = vld [vmem:[#allocation62_spill] sm:$0xff] }
 0x44e   :  { %1534 = vrot.lane.b32.xlu1 %v6458_v20, %s6157_s6  ;;  %s6234_s6 = smov 43  }
 0x450   :  { %2273 = vrot.lane.b32.xlu0 %v2266_v55, %s6229_s0  ;;  %v4507_v4 = vpop.permute.xlu1 %1027  ;;  %v6468_v55 = vld [vmem:[#allocation103_spill] sm:$0xff] }
 0x451   :  { %6466 = vst [vmem:[#allocation99_spill] sm:$0xff] %v4507_v4  ;;  %v2383_v20 = vmul.f32 %v6468_v55, %v3571_v44  ;;  %v6545_v4 = vld [vmem:[#allocation36_spill] sm:$0xff] }
 0x452   :  { %1569 = vrot.lane.b32.xlu1 %v6462_v45, %s6161_s2  ;;  %v4509_v51 = vpop.permute.xlu0 %1259  ;;  %v6472_v45 = vld [vmem:[#allocation108_spill] sm:$0xff] }
 0x453   :  { %6467 = vst [vmem:[#allocation175_spill] sm:$0xff] %v4509_v51 }
 0x454   :  { %2312 = vrot.lane.b32.xlu0 %v2305_v8, %s6159_s25  ;;  %s6165_s25 = smov 42  }
 0x456   :  { %1573 = vrot.lane.b32.xlu1 %v1565_v49, %s6161_s2  ;;  %v2421_v49 = vmul.f32 %v6472_v45, %v3620_v38  ;;  %s6241_s2 = smov 32  }
 0x457   :  { %v4516_v28 = vpop.permute.xlu1 %1062  ;;  %v4518_v8 = vpop.permute.xlu0 %1298 }
 0x458   :  { %2351 = vrot.lane.b32.xlu0 %v2344_v21, %s6234_s6  ;;  %6470 = vst [vmem:[#allocation103_spill] sm:$0xff] %v4516_v28  ;;  %6471 = vst [vmem:[#allocation60_spill] sm:$0xff] %v4518_v8 }
 0x45a   :  { %1608 = vrot.lane.b32.xlu1 %v6469_v58, %s6169_s11  ;;  %v6476_v58 = vld [vmem:[#allocation111_spill] sm:$0xff] }
 0x45b   :  { %v4527_v51 = vpop.permute.xlu0 %1337 }
 0x45c   :  { %2390 = vrot.lane.b32.xlu0 %v2383_v20, %s6165_s25  ;;  %6475 = vst [vmem:[#allocation61_spill] sm:$0xff] %v4527_v51  ;;  %v2460_v20 = vmul.f32 %v6476_v58, %v3407_v16  ;;  %s6172_s25 = smov 31   ;;  %v6485_v51 = vld [vmem:[#allocation64_spill] sm:$0xff] }
 0x45d   :  { %v4525_v21 = vpop.permute.xlu1 %1066 }
 0x45e   :  { %1612 = vrot.lane.b32.xlu1 %v6473_v32, %s6169_s11  ;;  %6474 = vst [vmem:[#allocation108_spill] sm:$0xff] %v4525_v21  ;;  %v6480_v32 = vld [vmem:[#allocation113_spill] sm:$0xff]  ;;  %s6246_s11 = smov 30   ;;  %v6531_v21 = vld [vmem:[#allocation46_spill] sm:$0xff] }
 0x460   :  { %2428 = vrot.lane.b32.xlu0 %v2421_v49, %s6241_s2  ;;  %v2499_v49 = vmul.f32 %v6480_v32, %v3472_v53 }
 0x462   :  { %1647 = vrot.lane.b32.xlu1 %v6477_v22, %s6175_s13  ;;  %v4536_v8 = vpop.permute.xlu0 %1376  ;;  %v6484_v22 = vld [vmem:[#allocation114_spill] sm:$0xff] }
 0x463   :  { %6479 = vst [vmem:[#allocation62_spill] sm:$0xff] %v4536_v8  ;;  %v6489_v8 = vld [vmem:[#allocation65_spill] sm:$0xff] }
 0x464   :  { %2467 = vrot.lane.b32.xlu0 %v2460_v20, %s6172_s25  ;;  %v4534_v45 = vpop.permute.xlu1 %1101  ;;  %v2538_v20 = vmul.f32 %v6484_v22, %v3482_v41  ;;  %s6178_s25 = smov 29  }
 0x465   :  { %6478 = vst [vmem:[#allocation111_spill] sm:$0xff] %v4534_v45 }
 0x466   :  { %1651 = vrot.lane.b32.xlu1 %v6481_v47, %s6175_s13  ;;  %v6488_v47 = vld [vmem:[#allocation118_spill] sm:$0xff]  ;;  %s6253_s13 = smov 28  }
 0x468   :  { %2506 = vrot.lane.b32.xlu0 %v2499_v49, %s6246_s11  ;;  %v4543_v16 = vpop.permute.xlu1 %1105  ;;  %v2577_v49 = vmul.f32 %v6488_v47, %v3495_v52 }
 0x469   :  { %6482 = vst [vmem:[#allocation113_spill] sm:$0xff] %v4543_v16  ;;  %v4545_v58 = vpop.permute.xlu0 %1415  ;;  %v6514_v16 = vld [vmem:[#allocation42_spill] sm:$0xff] }
 0x46a   :  { %6483 = vst [vmem:[#allocation63_spill] sm:$0xff] %v4545_v58  ;;  %1686 = vrot.lane.b32.xlu1 %v6485_v51, %s3075_s14  ;;  %v6492_v51 = vld [vmem:[#allocation121_spill] sm:$0xff]  ;;  %v6493_v58 = vld [vmem:[#allocation66_spill] sm:$0xff] }
 0x46c   :  { %2545 = vrot.lane.b32.xlu0 %v2538_v20, %s6178_s25  ;;  %v4552_v53 = vpop.permute.xlu1 %1140  ;;  %v2616_v20 = vmul.f32 %v6492_v51, %v3520_v1  ;;  %s3099_s25 = smov 27  }
 0x46d   :  { %6486 = vst [vmem:[#allocation114_spill] sm:$0xff] %v4552_v53  ;;  %v6505_v53 = vld [vmem:[#allocation41_spill] sm:$0xff] }
 0x46e   :  { %v4554_v32 = vpop.permute.xlu0 %1454  ;;  %1690 = vrot.lane.b32.xlu1 %v6489_v8, %s3075_s14  ;;  %v6496_v8 = vld [vmem:[#allocation40_spill] sm:$0xff] }
 0x46f   :  { %6487 = vst [vmem:[#allocation64_spill] sm:$0xff] %v4554_v32  ;;  %v6497_v32 = vld [vmem:[#allocation122_spill] sm:$0xff] }
 0x470   :  { %2584 = vrot.lane.b32.xlu0 %v2577_v49, %s6253_s13  ;;  %v4561_v41 = vpop.permute.xlu1 %1144  ;;  %v802_v49 = vmul.f32 %v6497_v32, %v6496_v8 }
 0x471   :  { %6490 = vst [vmem:[#allocation118_spill] sm:$0xff] %v4561_v41  ;;  %v6498_v41 = vld [vmem:[#allocation67_spill] sm:$0xff] }
 0x472   :  { %v4563_v22 = vpop.permute.xlu0 %1493  ;;  %1725 = vrot.lane.b32.xlu1 %v6493_v58, %s3076_s15  ;;  %v6501_v58 = vld [vmem:[#allocation31_spill] sm:$0xff] }
 0x473   :  { %6491 = vst [vmem:[#allocation65_spill] sm:$0xff] %v4563_v22  ;;  %v804_v51 = vmul.f32 %v6497_v32, %v6501_v58 }
 0x474   :  { %2623 = vrot.lane.b32.xlu0 %v2616_v20, %s3099_s25  ;;  %v4570_v52 = vpop.permute.xlu1 %1179  ;;  %v6502_v20 = vld [vmem:[#allocation68_spill] sm:$0xff] }
 0x475   :  { %6494 = vst [vmem:[#allocation121_spill] sm:$0xff] %v4570_v52 }
 0x476   :  { %v4572_v47 = vpop.permute.xlu0 %1532  ;;  %1729 = vrot.lane.b32.xlu1 %v6498_v41, %s3076_s15  ;;  %v6506_v41 = vld [vmem:[#allocation125_spill] sm:$0xff] }
 0x477   :  { %6495 = vst [vmem:[#allocation66_spill] sm:$0xff] %v4572_v47  ;;  %v841_v59 = vmul.f32 %v6506_v41, %v6505_v53 }
 0x478   :  { %808 = vrot.lane.b32.xlu0 %v802_v49, %s3053_s28  ;;  %v4579_v22 = vpop.permute.xlu1 %1183  ;;  %v6507_v49 = vld [vmem:[#allocation69_spill] sm:$0xff] }
 0x479   :  { %6499 = vst [vmem:[#allocation40_spill] sm:$0xff] %v4579_v22  ;;  %v6510_v22 = vld [vmem:[#allocation32_spill] sm:$0xff] }
 0x47a   :  { %v4581_v1 = vpop.permute.xlu0 %1571  ;;  %1764 = vrot.lane.b32.xlu1 %v6502_v20, %s3077_s18  ;;  %v843_v20 = vmul.f32 %v6506_v41, %v6510_v22 }
 0x47b   :  { %6500 = vst [vmem:[#allocation122_spill] sm:$0xff] %v4581_v1 }
 0x47c   :  { %812 = vrot.lane.b32.xlu0 %v804_v51, %s3053_s28  ;;  %v4588_v47 = vpop.permute.xlu1 %1218  ;;  %v6511_v51 = vld [vmem:[#allocation70_spill] sm:$0xff] }
 0x47d   :  { %6503 = vst [vmem:[#allocation67_spill] sm:$0xff] %v4588_v47 }
 0x47e   :  { %v4590_v52 = vpop.permute.xlu0 %1610  ;;  %1768 = vrot.lane.b32.xlu1 %v6507_v49, %s3077_s18  ;;  %v6515_v49 = vld [vmem:[#allocation126_spill] sm:$0xff] }
 0x47f   :  { %6504 = vst [vmem:[#allocation31_spill] sm:$0xff] %v4590_v52  ;;  %v880_v45 = vmul.f32 %v6515_v49, %v6514_v16 }
 0x480   :  { %847 = vrot.lane.b32.xlu0 %v841_v59, %s3054_s9  ;;  %v4597_v1 = vpop.permute.xlu1 %1222  ;;  %v6516_v59 = vld [vmem:[#allocation71_spill] sm:$0xff] }
 0x481   :  { %6508 = vst [vmem:[#allocation68_spill] sm:$0xff] %v4597_v1  ;;  %v6519_v1 = vld [vmem:[#allocation33_spill] sm:$0xff] }
 0x482   :  { %v4599_v32 = vpop.permute.xlu0 %1649  ;;  %1803 = vrot.lane.b32.xlu1 %v6511_v51, %s3078_s4  ;;  %v882_v51 = vmul.f32 %v6515_v49, %v6519_v1 }
 0x483   :  { %6509 = vst [vmem:[#allocation41_spill] sm:$0xff] %v4599_v32 }
 0x484   :  { %851 = vrot.lane.b32.xlu0 %v843_v20, %s3054_s9  ;;  %v4606_v52 = vpop.permute.xlu1 %1257  ;;  %v6520_v20 = vld [vmem:[#allocation73_spill] sm:$0xff] }
 0x485   :  { %6512 = vst [vmem:[#allocation125_spill] sm:$0xff] %v4606_v52 }
 0x486   :  { %v4608_v47 = vpop.permute.xlu0 %1688  ;;  %1807 = vrot.lane.b32.xlu1 %v6516_v59, %s3078_s4  ;;  %v1838_v59 = vmul.f32 %v3711_v15, %v3919_v2 }
 0x487   :  { %6513 = vst [vmem:[#allocation69_spill] sm:$0xff] %v4608_v47 }
 0x488   :  { %886 = vrot.lane.b32.xlu0 %v880_v45, %s3055_s12  ;;  %v4615_v32 = vpop.permute.xlu1 %1261  ;;  %v6523_v45 = vld [vmem:[#allocation44_spill] sm:$0xff] }
 0x489   :  { %6517 = vst [vmem:[#allocation32_spill] sm:$0xff] %v4615_v32  ;;  %v919_v32 = vmul.f32 %v6524_v11, %v6523_v45 }
 0x48a   :  { %v4617_v41 = vpop.permute.xlu0 %1727  ;;  %1842 = vrot.lane.b32.xlu1 %v6520_v20, %s6192_s19  ;;  %v6527_v20 = vld [vmem:[#allocation34_spill] sm:$0xff] }
 0x48b   :  { %6518 = vst [vmem:[#allocation70_spill] sm:$0xff] %v4617_v41 }
 0x48c   :  { %890 = vrot.lane.b32.xlu0 %v882_v51, %s3055_s12  ;;  %v4624_v47 = vpop.permute.xlu1 %1296  ;;  %v921_v51 = vmul.f32 %v6524_v11, %v6527_v20 }
 0x48d   :  { %6521 = vst [vmem:[#allocation42_spill] sm:$0xff] %v4624_v47  ;;  %v6528_v47 = vld [vmem:[#allocation75_spill] sm:$0xff] }
 0x48e   :  { %v4626_v52 = vpop.permute.xlu0 %1766  ;;  %1846 = vrot.lane.b32.xlu1 %v1838_v59, %s6192_s19  ;;  %v6532_v59 = vld [vmem:[#allocation132_spill] sm:$0xff]  ;;  %s2791_s19 = sld [smem:[#allocation2 + $0x7]] }
 0x48f   :  { %6522 = vst [vmem:[#allocation126_spill] sm:$0xff] %v4626_v52  ;;  %v958_v28 = vmul.f32 %v6532_v59, %v6531_v21 }
 0x490   :  { %925 = vrot.lane.b32.xlu0 %v919_v32, %s3056_s3  ;;  %v4634_v49 = vpop.permute.xlu1 %1300  ;;  %v6533_v32 = vld [vmem:[#allocation76_spill] sm:$0xff] }
 0x491   :  { %6525 = vst [vmem:[#allocation71_spill] sm:$0xff] %v4634_v49  ;;  %v6536_v49 = vld [vmem:[#allocation35_spill] sm:$0xff] }
 0x492   :  { %v4636_v41 = vpop.permute.xlu0 %1805  ;;  %1881 = vrot.lane.b32.xlu1 %v6528_v47, %s6244_s20  ;;  %v960_v47 = vmul.f32 %v6532_v59, %v6536_v49 }
 0x493   :  { %6526 = vst [vmem:[#allocation33_spill] sm:$0xff] %v4636_v41 }
 0x494   :  { %929 = vrot.lane.b32.xlu0 %v921_v51, %s3056_s3  ;;  %v4643_v15 = vpop.permute.xlu1 %1335  ;;  %v6537_v51 = vld [vmem:[#allocation78_spill] sm:$0xff] }
 0x495   :  { %6529 = vst [vmem:[#allocation73_spill] sm:$0xff] %v4643_v15 }
 0x496   :  { %v4645_v52 = vpop.permute.xlu0 %1844  ;;  %1885 = vrot.lane.b32.xlu1 %v6533_v32, %s6244_s20  ;;  %v6540_v32 = vld [vmem:[#allocation47_spill] sm:$0xff]  ;;  %s6646_s20 = smov 80  }
 0x497   :  { %6530 = vst [vmem:[#allocation44_spill] sm:$0xff] %v4645_v52 }
 0x498   :  { %964 = vrot.lane.b32.xlu0 %v958_v28, %s3057_s21  ;;  %v4652_v41 = vpop.permute.xlu1 %1339  ;;  %v997_v28 = vmul.f32 %v6541_v40, %v6540_v32 }
 0x499   :  { %6534 = vst [vmem:[#allocation131_spill] sm:$0xff] %v4652_v41  ;;  %v6542_v41 = vld [vmem:[#allocation79_spill] sm:$0xff] }
 0x49a   :  { %v4654_v11 = vpop.permute.xlu0 %1883  ;;  %1920 = vrot.lane.b32.xlu1 %v6537_v51, %s6236_s24  ;;  %v999_v51 = vmul.f32 %v6541_v40, %v6545_v4 }
 0x49b   :  { %6535 = vst [vmem:[#allocation34_spill] sm:$0xff] %v4654_v11 }
 0x49c   :  { %968 = vrot.lane.b32.xlu0 %v960_v47, %s3057_s21  ;;  %v4661_v52 = vpop.permute.xlu1 %1374  ;;  %v4676_v47 = vstv %s2791_s19  ;;  %s6581_s19 = smov 48  }
 0x49d   :  { %6538 = vst [vmem:[#allocation75_spill] sm:$0xff] %v4661_v52  ;;  %v6546_v52 = vld [vmem:[#allocation82_spill] sm:$0xff] }
 0x49e   :  { %v4663_v15 = vpop.permute.xlu0 %1922  ;;  %1924 = vrot.lane.b32.xlu1 %v6542_v41, %s6236_s24  ;;  %v6549_v41 = vld [vmem:[#allocation39_spill] sm:$0xff]  ;;  %s6634_s24 = smov 91  }
 0x49f   :  { %6539 = vst [vmem:[#allocation46_spill] sm:$0xff] %v4663_v15 }
 0x4a0   :  { %1003 = vrot.lane.b32.xlu0 %v997_v28, %s3058_s26  ;;  %v4670_v11 = vpop.permute.xlu1 %1378  ;;  %v1036_v28 = vmul.f32 %v4676_v47, %v6549_v41 }
 0x4a1   :  { %6543 = vst [vmem:[#allocation132_spill] sm:$0xff] %v4670_v11  ;;  %v6550_v11 = vld [vmem:[#allocation83_spill] sm:$0xff] }
 0x4a2   :  { %v4672_v59 = vpop.permute.xlu0 %1961  ;;  %1959 = vrot.lane.b32.xlu1 %v6546_v52, %s6226_s1  ;;  %v1038_v52 = vmul.f32 %v4676_v47, %v6553_v14 }
 0x4a3   :  { %6544 = vst [vmem:[#allocation76_spill] sm:$0xff] %v4672_v59 }
 0x4a4   :  { %1007 = vrot.lane.b32.xlu0 %v999_v51, %s3058_s26  ;;  %v4681_v15 = vpop.permute.xlu1 %1413  ;;  %v6554_v51 = vld [vmem:[#allocation84_spill] sm:$0xff] }
 0x4a5   :  { %6547 = vst [vmem:[#allocation35_spill] sm:$0xff] %v4681_v15 }
 0x4a6   :  { %v4683_v50 = vpop.permute.xlu0 %2000  ;;  %1963 = vrot.lane.b32.xlu1 %v6550_v11, %s6226_s1  ;;  %v6557_v11 = vld [vmem:[#allocation136_spill] sm:$0xff]  ;;  %s6613_s1 = smov 44  }
 0x4a7   :  { %6548 = vst [vmem:[#allocation78_spill] sm:$0xff] %v4683_v50  ;;  %v1075_v35 = vmul.f32 %v6557_v11, %v6496_v8 }
 0x4a8   :  { %1042 = vrot.lane.b32.xlu0 %v1036_v28, %s6251_s10  ;;  %v4690_v40 = vpop.permute.xlu1 %1417  ;;  %v6558_v28 = vld [vmem:[#allocation85_spill] sm:$0xff] }
 0x4a9   :  { %6551 = vst [vmem:[#allocation47_spill] sm:$0xff] %v4690_v40 }
 0x4aa   :  { %v4692_v59 = vpop.permute.xlu0 %2039  ;;  %1998 = vrot.lane.b32.xlu1 %v6554_v51, %s6218_s22  ;;  %v1077_v51 = vmul.f32 %v6557_v11, %v6501_v58 }
 0x4ab   :  { %6552 = vst [vmem:[#allocation135_spill] sm:$0xff] %v4692_v59 }
 0x4ac   :  { %1046 = vrot.lane.b32.xlu0 %v1038_v52, %s6251_s10  ;;  %v4699_v50 = vpop.permute.xlu1 %1452  ;;  %v6561_v52 = vld [vmem:[#allocation87_spill] sm:$0xff]  ;;  %s2881_s10 = sld [smem:[#allocation2 + $0x61]] }
 0x4ad   :  { %6555 = vst [vmem:[#allocation79_spill] sm:$0xff] %v4699_v50 }
 0x4ae   :  { %v4701_v15 = vpop.permute.xlu0 %2078  ;;  %2002 = vrot.lane.b32.xlu1 %v6558_v28, %s6218_s22  ;;  %v6564_v28 = vld [vmem:[#allocation137_spill] sm:$0xff]  ;;  %s6598_s22 = smov 46  }
 0x4af   :  { %6556 = vst [vmem:[#allocation36_spill] sm:$0xff] %v4701_v15  ;;  %v1114_v60 = vmul.f32 %v6564_v28, %v6505_v53 }
 0x4b0   :  { %1081 = vrot.lane.b32.xlu0 %v1075_v35, %s6239_s16  ;;  %v4708_v59 = vpop.permute.xlu1 %1456  ;;  %v6565_v35 = vld [vmem:[#allocation88_spill] sm:$0xff] }
 0x4b1   :  { %6559 = vst [vmem:[#allocation82_spill] sm:$0xff] %v4708_v59 }
 0x4b2   :  { %v4710_v40 = vpop.permute.xlu0 %2117  ;;  %2037 = vrot.lane.b32.xlu1 %v6561_v52, %s6215_s27  ;;  %v1116_v52 = vmul.f32 %v6564_v28, %v6510_v22 }
 0x4b3   :  { %6560 = vst [vmem:[#allocation39_spill] sm:$0xff] %v4710_v40 }
 0x4b4   :  { %1085 = vrot.lane.b32.xlu0 %v1077_v51, %s6239_s16  ;;  %v4717_v15 = vpop.permute.xlu1 %1491  ;;  %v6568_v51 = vld [vmem:[#allocation90_spill] sm:$0xff]  ;;  %s6636_s16 = smov 31  }
 0x4b5   :  { %6562 = vst [vmem:[#allocation83_spill] sm:$0xff] %v4717_v15 }
 0x4b6   :  { %v4719_v50 = vpop.permute.xlu0 %2156  ;;  %2041 = vrot.lane.b32.xlu1 %v6565_v35, %s6215_s27  ;;  %v6571_v35 = vld [vmem:[#allocation138_spill] sm:$0xff]  ;;  %s6595_s27 = smov 106  }
 0x4b7   :  { %6563 = vst [vmem:[#allocation30_spill] sm:$0xff] %v4719_v50  ;;  %v1153_v59 = vmul.f32 %v6571_v35, %v6514_v16 }
 0x4b8   :  { %1120 = vrot.lane.b32.xlu0 %v1114_v60, %s6238_s23  ;;  %v4726_v40 = vpop.permute.xlu1 %1495  ;;  %v6572_v60 = vld [vmem:[#allocation92_spill] sm:$0xff] }
 0x4b9   :  { %6566 = vst [vmem:[#allocation84_spill] sm:$0xff] %v4726_v40 }
 0x4ba   :  { %v4728_v11 = vpop.permute.xlu0 %2195  ;;  %2076 = vrot.lane.b32.xlu1 %v6568_v51, %s6212_s7  ;;  %v1155_v51 = vmul.f32 %v6571_v35, %v6519_v1 }
 0x4bb   :  { %6567 = vst [vmem:[#allocation136_spill] sm:$0xff] %v4728_v11 }
 0x4bc   :  { %1124 = vrot.lane.b32.xlu0 %v1116_v52, %s6238_s23  ;;  %v4735_v50 = vpop.permute.xlu1 %1530  ;;  %v6575_v52 = vld [vmem:[#allocation93_spill] sm:$0xff]  ;;  %s2805_s23 = sld [smem:[#allocation2 + $0x15]] }
 0x4bd   :  { %6569 = vst [vmem:[#allocation85_spill] sm:$0xff] %v4735_v50 }
 0x4be   :  { %v4737_v15 = vpop.permute.xlu0 %2234  ;;  %2080 = vrot.lane.b32.xlu1 %v6572_v60, %s6212_s7  ;;  %v2111_v60 = vmul.f32 %v6441_v62, %v3919_v2  ;;  %s2798_s7 = sld [smem:[#allocation2 + $0xe]] }
 0x4bf   :  { %6570 = vst [vmem:[#allocation87_spill] sm:$0xff] %v4737_v15 }
 0x4c0   :  { %1159 = vrot.lane.b32.xlu0 %v1153_v59, %s6233_s30  ;;  %v4744_v11 = vpop.permute.xlu1 %1534  ;;  %v6578_v59 = vld [vmem:[#allocation143_spill] sm:$0xff] }
 0x4c1   :  { %6573 = vst [vmem:[#allocation137_spill] sm:$0xff] %v4744_v11  ;;  %v1192_v11 = vmul.f32 %v6578_v59, %v6523_v45 }
 0x4c2   :  { %v4746_v28 = vpop.permute.xlu0 %2273  ;;  %2115 = vrot.lane.b32.xlu1 %v6575_v52, %s6209_s8  ;;  %v6582_v52 = vld [vmem:[#allocation95_spill] sm:$0xff] }
 0x4c3   :  { %6574 = vst [vmem:[#allocation88_spill] sm:$0xff] %v4746_v28 }
 0x4c4   :  { %1163 = vrot.lane.b32.xlu0 %v1155_v51, %s6233_s30  ;;  %v4753_v15 = vpop.permute.xlu1 %1569  ;;  %v1194_v51 = vmul.f32 %v6578_v59, %v6527_v20  ;;  %s6625_s30 = smov 42  }
 0x4c5   :  { %6576 = vst [vmem:[#allocation90_spill] sm:$0xff] %v4753_v15 }
 0x4c6   :  { %v4755_v50 = vpop.permute.xlu0 %2312  ;;  %2119 = vrot.lane.b32.xlu1 %v2111_v60, %s6209_s8  ;;  %v6585_v60 = vld [vmem:[#allocation144_spill] sm:$0xff]  ;;  %s6587_s8 = smov 107  }
 0x4c7   :  { %6577 = vst [vmem:[#allocation138_spill] sm:$0xff] %v4755_v50  ;;  %v1231_v15 = vmul.f32 %v6585_v60, %v6531_v21 }
 0x4c8   :  { %1198 = vrot.lane.b32.xlu0 %v1192_v11, %s6232_s17  ;;  %v4763_v35 = vpop.permute.xlu1 %1573  ;;  %v6586_v11 = vld [vmem:[#allocation97_spill] sm:$0xff] }
 0x4c9   :  { %6579 = vst [vmem:[#allocation92_spill] sm:$0xff] %v4763_v35 }
 0x4ca   :  { %v4765_v28 = vpop.permute.xlu0 %2351  ;;  %2154 = vrot.lane.b32.xlu1 %v6582_v52, %s6581_s19  ;;  %v1233_v52 = vmul.f32 %v6585_v60, %v6536_v49 }
 0x4cb   :  { %6580 = vst [vmem:[#allocation93_spill] sm:$0xff] %v4765_v28 }
 0x4cc   :  { %1202 = vrot.lane.b32.xlu0 %v1194_v51, %s6232_s17  ;;  %v4772_v62 = vpop.permute.xlu1 %1608  ;;  %v6590_v51 = vld [vmem:[#allocation98_spill] sm:$0xff]  ;;  %s6623_s17 = smov 93  }
 0x4cd   :  { %6583 = vst [vmem:[#allocation143_spill] sm:$0xff] %v4772_v62 }
 0x4ce   :  { %v4774_v50 = vpop.permute.xlu0 %2390  ;;  %2158 = vrot.lane.b32.xlu1 %v6586_v11, %s6581_s19  ;;  %v6593_v11 = vld [vmem:[#allocation147_spill] sm:$0xff] }
 0x4cf   :  { %6584 = vst [vmem:[#allocation95_spill] sm:$0xff] %v4774_v50 }
 0x4d0   :  { %1237 = vrot.lane.b32.xlu0 %v1231_v15, %s6587_s8  ;;  %v4781_v28 = vpop.permute.xlu1 %1612  ;;  %v1270_v15 = vmul.f32 %v6593_v11, %v6540_v32 }
 0x4d1   :  { %6588 = vst [vmem:[#allocation144_spill] sm:$0xff] %v4781_v28  ;;  %v6594_v28 = vld [vmem:[#allocation100_spill] sm:$0xff] }
 0x4d2   :  { %v4783_v59 = vpop.permute.xlu0 %2428  ;;  %2193 = vrot.lane.b32.xlu1 %v6590_v51, %s6221_s29  ;;  %v1272_v51 = vmul.f32 %v6593_v11, %v6545_v4 }
 0x4d3   :  { %6589 = vst [vmem:[#allocation97_spill] sm:$0xff] %v4783_v59 }
 0x4d4   :  { %1241 = vrot.lane.b32.xlu0 %v1233_v52, %s6587_s8  ;;  %v4790_v50 = vpop.permute.xlu1 %1647  ;;  %v4805_v52 = vstv %s2798_s7  ;;  %s6611_s7 = smov 95  }
 0x4d5   :  { %6591 = vst [vmem:[#allocation98_spill] sm:$0xff] %v4790_v50  ;;  %v6599_v50 = vld [vmem:[#allocation101_spill] sm:$0xff] }
 0x4d6   :  { %v4792_v62 = vpop.permute.xlu0 %2467  ;;  %2197 = vrot.lane.b32.xlu1 %v6594_v28, %s6221_s29  ;;  %v1309_v28 = vmul.f32 %v4805_v52, %v6549_v41  ;;  %s6603_s29 = smov 96  }
 0x4d7   :  { %6592 = vst [vmem:[#allocation176_spill] sm:$0xff] %v4792_v62 }
 0x4d8   :  { %1276 = vrot.lane.b32.xlu0 %v1270_v15, %s6595_s27  ;;  %v4799_v59 = vpop.permute.xlu1 %1651  ;;  %v6602_v15 = vld [vmem:[#allocation104_spill] sm:$0xff] }
 0x4d9   :  { %6596 = vst [vmem:[#allocation147_spill] sm:$0xff] %v4799_v59 }
 0x4da   :  { %v4801_v60 = vpop.permute.xlu0 %2506  ;;  %2232 = vrot.lane.b32.xlu1 %v6599_v50, %s6598_s22  ;;  %v1311_v50 = vmul.f32 %v4805_v52, %v6553_v14 }
 0x4db   :  { %6597 = vst [vmem:[#allocation100_spill] sm:$0xff] %v4801_v60 }
 0x4dc   :  { %1280 = vrot.lane.b32.xlu0 %v1272_v51, %s6595_s27  ;;  %v4810_v62 = vpop.permute.xlu1 %1686  ;;  %v6606_v51 = vld [vmem:[#allocation105_spill] sm:$0xff] }
 0x4dd   :  { %6600 = vst [vmem:[#allocation101_spill] sm:$0xff] %v4810_v62 }
 0x4de   :  { %v4812_v35 = vpop.permute.xlu0 %2545  ;;  %2236 = vrot.lane.b32.xlu1 %v6602_v15, %s6598_s22  ;;  %v6609_v15 = vld [vmem:[#allocation148_spill] sm:$0xff] }
 0x4df   :  { %6601 = vst [vmem:[#allocation177_spill] sm:$0xff] %v4812_v35  ;;  %v1348_v59 = vmul.f32 %v6609_v15, %v6496_v8 }
 0x4e0   :  { %1315 = vrot.lane.b32.xlu0 %v1309_v28, %s6603_s29  ;;  %v4819_v11 = vpop.permute.xlu1 %1690  ;;  %v6610_v28 = vld [vmem:[#allocation106_spill] sm:$0xff] }
 0x4e1   :  { %6604 = vst [vmem:[#allocation104_spill] sm:$0xff] %v4819_v11 }
 0x4e2   :  { %v4821_v60 = vpop.permute.xlu0 %2584  ;;  %2271 = vrot.lane.b32.xlu1 %v6606_v51, %s6229_s0  ;;  %v1350_v51 = vmul.f32 %v6609_v15, %v6501_v58 }
 0x4e3   :  { %6605 = vst [vmem:[#allocation178_spill] sm:$0xff] %v4821_v60 }
 0x4e4   :  { %1319 = vrot.lane.b32.xlu0 %v1311_v50, %s6603_s29  ;;  %v4828_v35 = vpop.permute.xlu1 %1725  ;;  %v6614_v50 = vld [vmem:[#allocation107_spill] sm:$0xff] }
 0x4e5   :  { %6607 = vst [vmem:[#allocation105_spill] sm:$0xff] %v4828_v35 }
 0x4e6   :  { %v4830_v62 = vpop.permute.xlu0 %2623  ;;  %2275 = vrot.lane.b32.xlu1 %v6610_v28, %s6229_s0  ;;  %v6616_v28 = vld [vmem:[#allocation150_spill] sm:$0xff]  ;;  %s6618_s0 = smov 94  }
 0x4e7   :  { %6608 = vst [vmem:[#allocation179_spill] sm:$0xff] %v4830_v62  ;;  %v1387_v40 = vmul.f32 %v6616_v28, %v6505_v53 }
 0x4e8   :  { %1354 = vrot.lane.b32.xlu0 %v1348_v59, %s6611_s7  ;;  %v4837_v60 = vpop.permute.xlu1 %1729  ;;  %v6617_v59 = vld [vmem:[#allocation109_spill] sm:$0xff] }
 0x4e9   :  { %6612 = vst [vmem:[#allocation148_spill] sm:$0xff] %v4837_v60 }
 0x4ea   :  { %v4839_v11 = vpop.permute.xlu0 %808  ;;  %2310 = vrot.lane.b32.xlu1 %v6614_v50, %s6613_s1  ;;  %v1389_v50 = vmul.f32 %v6616_v28, %v6510_v22 }
 0x4ec   :  { %1358 = vrot.lane.b32.xlu0 %v1350_v51, %s6611_s7  ;;  %v4846_v62 = vpop.permute.xlu1 %1764  ;;  %v6620_v51 = vld [vmem:[#allocation110_spill] sm:$0xff] }
 0x4ed   :  { %6615 = vst [vmem:[#allocation106_spill] sm:$0xff] %v4846_v62 }
 0x4ee   :  { %v4848_v35 = vpop.permute.xlu0 %812  ;;  %2314 = vrot.lane.b32.xlu1 %v6617_v59, %s6613_s1  ;;  %v1426_v59 = vmul.f32 %v4179_v17, %v6514_v16 }
 0x4f0   :  { %1393 = vrot.lane.b32.xlu0 %v1387_v40, %s6618_s0  ;;  %v4855_v60 = vpop.permute.xlu1 %1768  ;;  %v6622_v40 = vld [vmem:[#allocation112_spill] sm:$0xff] }
 0x4f1   :  { %6619 = vst [vmem:[#allocation107_spill] sm:$0xff] %v4855_v60 }
 0x4f2   :  { %v4857_v15 = vpop.permute.xlu0 %847  ;;  %2349 = vrot.lane.b32.xlu1 %v6620_v51, %s6234_s6  ;;  %v1428_v51 = vmul.f32 %v4179_v17, %v6519_v1 }
 0x4f4   :  { %1397 = vrot.lane.b32.xlu0 %v1389_v50, %s6618_s0  ;;  %v4864_v62 = vpop.permute.xlu1 %1803  ;;  %v6626_v50 = vld [vmem:[#allocation115_spill] sm:$0xff] }
 0x4f5   :  { %6621 = vst [vmem:[#allocation150_spill] sm:$0xff] %v4864_v62 }
 0x4f6   :  { %v4866_v33 = vpop.permute.xlu0 %851  ;;  %2353 = vrot.lane.b32.xlu1 %v6622_v40, %s6234_s6  ;;  %v2384_v40 = vmul.f32 %v6468_v55, %v3919_v2  ;;  %s6628_s6 = smov 92  }
 0x4f8   :  { %1432 = vrot.lane.b32.xlu0 %v1426_v59, %s6623_s17  ;;  %v4873_v60 = vpop.permute.xlu1 %1807  ;;  %v1465_v59 = vmul.f32 %v4204_v27, %v6523_v45 }
 0x4f9   :  { %6624 = vst [vmem:[#allocation109_spill] sm:$0xff] %v4873_v60 }
 0x4fa   :  { %v4875_v28 = vpop.permute.xlu0 %886  ;;  %2388 = vrot.lane.b32.xlu1 %v6626_v50, %s6625_s30  ;;  %v6630_v50 = vld [vmem:[#allocation116_spill] sm:$0xff] }
 0x4fc   :  { %1436 = vrot.lane.b32.xlu0 %v1428_v51, %s6623_s17  ;;  %v4882_v62 = vpop.permute.xlu1 %1842  ;;  %v1467_v51 = vmul.f32 %v4204_v27, %v6527_v20 }
 0x4fd   :  { %6627 = vst [vmem:[#allocation110_spill] sm:$0xff] %v4882_v62 }
 0x4fe   :  { %v4884_v42 = vpop.permute.xlu0 %890  ;;  %2392 = vrot.lane.b32.xlu1 %v2384_v40, %s6625_s30  ;;  %v6632_v40 = vld [vmem:[#allocation155_spill] sm:$0xff] }
 0x4ff   :  { %v1504_v6 = vmul.f32 %v6632_v40, %v6531_v21 }
 0x500   :  { %1471 = vrot.lane.b32.xlu0 %v1465_v59, %s6628_s6  ;;  %v4892_v17 = vpop.permute.xlu1 %1846  ;;  %v6633_v59 = vld [vmem:[#allocation117_spill] sm:$0xff] }
 0x501   :  { %6629 = vst [vmem:[#allocation112_spill] sm:$0xff] %v4892_v17 }
 0x502   :  { %v4894_v60 = vpop.permute.xlu0 %925  ;;  %2426 = vrot.lane.b32.xlu1 %v6630_v50, %s6241_s2  ;;  %v1506_v50 = vmul.f32 %v6632_v40, %v6536_v49 }
 0x504   :  { %1475 = vrot.lane.b32.xlu0 %v1467_v51, %s6628_s6  ;;  %v4901_v55 = vpop.permute.xlu1 %1881  ;;  %v6637_v51 = vld [vmem:[#allocation119_spill] sm:$0xff] }
 0x505   :  { %6631 = vst [vmem:[#allocation115_spill] sm:$0xff] %v4901_v55 }
 0x506   :  { %v4903_v62 = vpop.permute.xlu0 %929  ;;  %2430 = vrot.lane.b32.xlu1 %v6633_v59, %s6241_s2  ;;  %v6639_v59 = vld [vmem:[#allocation156_spill] sm:$0xff]  ;;  %s6641_s2 = smov 90  }
 0x508   :  { %1510 = vrot.lane.b32.xlu0 %v1504_v6, %s6634_s24  ;;  %v4910_v17 = vpop.permute.xlu1 %1885  ;;  %v1543_v6 = vmul.f32 %v6639_v59, %v6540_v32 }
 0x509   :  { %6635 = vst [vmem:[#allocation116_spill] sm:$0xff] %v4910_v17  ;;  %v6640_v17 = vld [vmem:[#allocation120_spill] sm:$0xff] }
 0x50a   :  { %v4912_v27 = vpop.permute.xlu0 %964  ;;  %2465 = vrot.lane.b32.xlu1 %v6637_v51, %s6636_s16  ;;  %v1545_v51 = vmul.f32 %v6639_v59, %v6545_v4 }
 0x50c   :  { %1514 = vrot.lane.b32.xlu0 %v1506_v50, %s6634_s24  ;;  %v4919_v55 = vpop.permute.xlu1 %1920  ;;  %v4934_v50 = vstv %s2805_s23  ;;  %s6648_s23 = smov 29  }
 0x50d   :  { %6638 = vst [vmem:[#allocation155_spill] sm:$0xff] %v4919_v55  ;;  %v6643_v55 = vld [vmem:[#allocation123_spill] sm:$0xff] }
 0x50e   :  { %v4921_v9 = vpop.permute.xlu0 %968  ;;  %2469 = vrot.lane.b32.xlu1 %v6640_v17, %s6636_s16  ;;  %v1582_v17 = vmul.f32 %v4934_v50, %v6549_v41 }
 0x510   :  { %1549 = vrot.lane.b32.xlu0 %v1543_v6, %s6641_s2  ;;  %v4928_v54 = vpop.permute.xlu1 %1924  ;;  %v6645_v6 = vld [vmem:[#allocation124_spill] sm:$0xff] }
 0x511   :  { %6642 = vst [vmem:[#allocation117_spill] sm:$0xff] %v4928_v54 }
 0x512   :  { %v4930_v40 = vpop.permute.xlu0 %1003  ;;  %2504 = vrot.lane.b32.xlu1 %v6643_v55, %s6246_s11  ;;  %v1584_v55 = vmul.f32 %v4934_v50, %v6553_v14 }
 0x514   :  { %1553 = vrot.lane.b32.xlu0 %v1545_v51, %s6641_s2  ;;  %v4939_v43 = vpop.permute.xlu1 %1959  ;;  %v6649_v51 = vld [vmem:[#allocation127_spill] sm:$0xff] }
 0x515   :  { %6644 = vst [vmem:[#allocation119_spill] sm:$0xff] %v4939_v43 }
 0x516   :  { %v4941_v24 = vpop.permute.xlu0 %1007  ;;  %2508 = vrot.lane.b32.xlu1 %v6645_v6, %s6246_s11  ;;  %v6651_v6 = vld [vmem:[#allocation158_spill] sm:$0xff]  ;;  %s6653_s11 = smov 79  }
 0x517   :  { %v1621_v56 = vmul.f32 %v6651_v6, %v6496_v8 }
 0x518   :  { %1588 = vrot.lane.b32.xlu0 %v1582_v17, %s6646_s20  ;;  %v4948_v59 = vpop.permute.xlu1 %1963  ;;  %v6652_v17 = vld [vmem:[#allocation128_spill] sm:$0xff] }
 0x519   :  { %6647 = vst [vmem:[#allocation156_spill] sm:$0xff] %v4948_v59 }
 0x51a   :  { %v4950_v54 = vpop.permute.xlu0 %1042  ;;  %2543 = vrot.lane.b32.xlu1 %v6649_v51, %s6648_s23  ;;  %v1623_v51 = vmul.f32 %v6651_v6, %v6501_v58 }
 0x51c   :  { %1592 = vrot.lane.b32.xlu0 %v1584_v55, %s6646_s20  ;;  %v4957_v43 = vpop.permute.xlu1 %1998  ;;  %v6655_v55 = vld [vmem:[#allocation129_spill] sm:$0xff] }
 0x51d   :  { %6650 = vst [vmem:[#allocation120_spill] sm:$0xff] %v4957_v43 }
 0x51e   :  { %v4959_v34 = vpop.permute.xlu0 %1046  ;;  %2547 = vrot.lane.b32.xlu1 %v6652_v17, %s6648_s23  ;;  %v6657_v17 = vld [vmem:[#allocation159_spill] sm:$0xff] }
 0x51f   :  { %v1660_v63 = vmul.f32 %v6657_v17, %v6505_v53 }
 0x520   :  { %1627 = vrot.lane.b32.xlu0 %v1621_v56, %s6653_s11  ;;  %v4966_v59 = vpop.permute.xlu1 %2002  ;;  %v6658_v56 = vld [vmem:[#allocation130_spill] sm:$0xff] }
 0x521   :  { %6654 = vst [vmem:[#allocation123_spill] sm:$0xff] %v4966_v59 }
 0x522   :  { %v4968_v23 = vpop.permute.xlu0 %1081  ;;  %2582 = vrot.lane.b32.xlu1 %v6655_v55, %s6253_s13  ;;  %v6660_v55 = vld [vmem:[#allocation133_spill] sm:$0xff] }
 0x524   :  { %1631 = vrot.lane.b32.xlu0 %v1623_v51, %s6653_s11  ;;  %v4975_v43 = vpop.permute.xlu1 %2037  ;;  %v1662_v51 = vmul.f32 %v6657_v17, %v6510_v22 }
 0x525   :  { %6656 = vst [vmem:[#allocation124_spill] sm:$0xff] %v4975_v43 }
 0x526   :  { %v4977_v38 = vpop.permute.xlu0 %1085  ;;  %2586 = vrot.lane.b32.xlu1 %v6658_v56, %s6253_s13  ;;  %v6662_v56 = vld [vmem:[#allocation161_spill] sm:$0xff]  ;;  %s3100_s13 = smov 26  }
 0x527   :  { %v1699_v30 = vmul.f32 %v6662_v56, %v6514_v16 }
 0x528   :  { %1666 = vrot.lane.b32.xlu0 %v1660_v63, %s3075_s14  ;;  %v4984_v59 = vpop.permute.xlu1 %2041  ;;  %v4999_v63 = vstv %s2881_s10  ;;  %s6693_s10 = smov 63  }
 0x529   :  { %6659 = vst [vmem:[#allocation127_spill] sm:$0xff] %v4984_v59  ;;  %6663 = vst [vmem:[#allocation128_spill] sm:$0xff] %v4999_v63  ;;  %v6664_v59 = vld [vmem:[#allocation134_spill] sm:$0xff] }
 0x52a   :  { %v4986_v6 = vpop.permute.xlu0 %1120  ;;  %2621 = vrot.lane.b32.xlu1 %v6660_v55, %s3099_s25  ;;  %v1701_v55 = vmul.f32 %v6662_v56, %v6519_v1 }
 0x52c   :  { %1670 = vrot.lane.b32.xlu0 %v1662_v51, %s3075_s14  ;;  %v4993_v43 = vpop.permute.xlu1 %2076  ;;  %v2654_v51 = vmul.f32 %v4999_v63, %v3565_v0 }
 0x52d   :  { %6661 = vst [vmem:[#allocation158_spill] sm:$0xff] %v4993_v43 }
 0x52e   :  { %v4995_v18 = vpop.permute.xlu0 %1124  ;;  %2625 = vrot.lane.b32.xlu1 %v6664_v59, %s3099_s25 }
 0x530   :  { %1705 = vrot.lane.b32.xlu0 %v1699_v30, %s3076_s15  ;;  %v5004_v17 = vpop.permute.xlu1 %2080  ;;  %v1738_v30 = vmul.f32 %v4234_v39, %v6523_v45 }
 0x531   :  { %6665 = vst [vmem:[#allocation129_spill] sm:$0xff] %v5004_v17  ;;  %v6667_v17 = vld [vmem:[#allocation139_spill] sm:$0xff] }
 0x532   :  { %v5006_v48 = vpop.permute.xlu0 %1159  ;;  %2660 = vrot.lane.b32.xlu1 %v2654_v51, %s3100_s13  ;;  %v1740_v51 = vmul.f32 %v4234_v39, %v6527_v20 }
 0x534   :  { %1709 = vrot.lane.b32.xlu0 %v1701_v55, %s3076_s15  ;;  %v5014_v43 = vpop.permute.xlu1 %2115  ;;  %v6669_v55 = vld [vmem:[#allocation140_spill] sm:$0xff] }
 0x535   :  { %6666 = vst [vmem:[#allocation159_spill] sm:$0xff] %v5014_v43 }
 0x536   :  { %v5016_v59 = vpop.permute.xlu0 %1163  ;;  %810 = vrot.lane.b32.xlu1 %v6667_v17, %s3053_s28  ;;  %v1777_v17 = vmul.f32 %v4257_v19, %v6531_v21  ;;  %s2812_s28 = sld [smem:[#allocation2 + $0x1c]] }
 0x538   :  { %1744 = vrot.lane.b32.xlu0 %v1738_v30, %s3077_s18  ;;  %v5023_v0 = vpop.permute.xlu1 %2119  ;;  %v6671_v30 = vld [vmem:[#allocation141_spill] sm:$0xff] }
 0x539   :  { %6668 = vst [vmem:[#allocation130_spill] sm:$0xff] %v5023_v0 }
 0x53a   :  { %v5025_v56 = vpop.permute.xlu0 %1198  ;;  %849 = vrot.lane.b32.xlu1 %v6669_v55, %s3054_s9  ;;  %v1779_v55 = vmul.f32 %v4257_v19, %v6536_v49  ;;  %s6677_s9 = smov 74  }
 0x53c   :  { %1748 = vrot.lane.b32.xlu0 %v1740_v51, %s3077_s18  ;;  %v5032_v43 = vpop.permute.xlu1 %2154  ;;  %v6673_v51 = vld [vmem:[#allocation142_spill] sm:$0xff] }
 0x53d   :  { %6670 = vst [vmem:[#allocation133_spill] sm:$0xff] %v5032_v43 }
 0x53e   :  { %v5034_v44 = vpop.permute.xlu0 %1202  ;;  %888 = vrot.lane.b32.xlu1 %v6671_v30, %s3055_s12  ;;  %v6676_v30 = vld [vmem:[#allocation145_spill] sm:$0xff]  ;;  %s6683_s12 = smov 112  }
 0x540   :  { %1783 = vrot.lane.b32.xlu0 %v1777_v17, %s3078_s4  ;;  %v5041_v0 = vpop.permute.xlu1 %2158  ;;  %v1816_v17 = vmul.f32 %v4260_v29, %v6540_v32 }
 0x541   :  { %6672 = vst [vmem:[#allocation161_spill] sm:$0xff] %v5041_v0 }
 0x542   :  { %v5043_v39 = vpop.permute.xlu0 %1237  ;;  %927 = vrot.lane.b32.xlu1 %v6673_v51, %s3056_s3  ;;  %v1818_v51 = vmul.f32 %v4260_v29, %v6545_v4  ;;  %s6684_s3 = smov 64  }
 0x544   :  { %1787 = vrot.lane.b32.xlu0 %v1779_v55, %s3078_s4  ;;  %v5050_v43 = vpop.permute.xlu1 %2193  ;;  %v5065_v55 = vstv %s2812_s28  ;;  %s6696_s28 = smov 109  }
 0x545   :  { %6674 = vst [vmem:[#allocation134_spill] sm:$0xff] %v5050_v43  ;;  %v6680_v43 = vld [vmem:[#allocation146_spill] sm:$0xff] }
 0x546   :  { %v5052_v63 = vpop.permute.xlu0 %1241  ;;  %966 = vrot.lane.b32.xlu1 %v6676_v30, %s3057_s21  ;;  %v6682_v30 = vld [vmem:[#allocation37_spill] sm:$0xff]  ;;  %s6687_s21 = smov 111  }
 0x547   :  { %6675 = vst [vmem:[#allocation139_spill] sm:$0xff] %v5052_v63 }
 0x548   :  { %1822 = vrot.lane.b32.xlu0 %v1816_v17, %s6677_s9  ;;  %v5059_v0 = vpop.permute.xlu1 %2197  ;;  %v1037_v17 = vmul.f32 %v4676_v47, %v6682_v30 }
 0x549   :  { %6678 = vst [vmem:[#allocation140_spill] sm:$0xff] %v5059_v0  ;;  %v1855_v0 = vmul.f32 %v5065_v55, %v6549_v41 }
 0x54a   :  { %v5061_v19 = vpop.permute.xlu0 %1276  ;;  %1005 = vrot.lane.b32.xlu1 %v6680_v43, %s3058_s26  ;;  %v1857_v43 = vmul.f32 %v5065_v55, %v6553_v14  ;;  %s6691_s26 = smov 110  }
 0x54b   :  { %6679 = vst [vmem:[#allocation141_spill] sm:$0xff] %v5061_v19 }
 0x54c   :  { %1826 = vrot.lane.b32.xlu0 %v1818_v51, %s6677_s9  ;;  %v5070_v2 = vpop.permute.xlu1 %2232  ;;  %v6688_v51 = vld [vmem:[#allocation149_spill] sm:$0xff] }
 0x54d   :  { %6681 = vst [vmem:[#allocation142_spill] sm:$0xff] %v5070_v2 }
 0x54e   :  { %v5072_v63 = vpop.permute.xlu0 %1280  ;;  %1044 = vrot.lane.b32.xlu1 %v1037_v17, %s6683_s12  ;;  %v1894_v17 = vmul.f32 %v4269_v25, %v6496_v8  ;;  %s6700_s12 = smov 108  }
 0x550   :  { %1861 = vrot.lane.b32.xlu0 %v1855_v0, %s6684_s3  ;;  %v5080_v29 = vpop.permute.xlu1 %2236  ;;  %v6692_v0 = vld [vmem:[#allocation151_spill] sm:$0xff] }
 0x551   :  { %6685 = vst [vmem:[#allocation145_spill] sm:$0xff] %v5080_v29 }
 0x552   :  { %v5082_v19 = vpop.permute.xlu0 %1315  ;;  %1083 = vrot.lane.b32.xlu1 %v6688_v51, %s6687_s21  ;;  %v1896_v51 = vmul.f32 %v4269_v25, %v6501_v58  ;;  %s6702_s21 = smov 62  }
 0x553   :  { %6686 = vst [vmem:[#allocation146_spill] sm:$0xff] %v5082_v19 }
 0x554   :  { %1865 = vrot.lane.b32.xlu0 %v1857_v43, %s6684_s3  ;;  %v5089_v47 = vpop.permute.xlu1 %2271  ;;  %v6697_v43 = vld [vmem:[#allocation152_spill] sm:$0xff] }
 0x555   :  { %6689 = vst [vmem:[#allocation37_spill] sm:$0xff] %v5089_v47 }
 0x556   :  { %v5091_v2 = vpop.permute.xlu0 %1319  ;;  %1122 = vrot.lane.b32.xlu1 %v6692_v0, %s6691_s26  ;;  %v1933_v0 = vmul.f32 %v4272_v10, %v6505_v53  ;;  %s6709_s26 = smov 61  }
 0x557   :  { %6690 = vst [vmem:[#allocation149_spill] sm:$0xff] %v5091_v2 }
 0x558   :  { %1900 = vrot.lane.b32.xlu0 %v1894_v17, %s6693_s10  ;;  %v5098_v29 = vpop.permute.xlu1 %2275  ;;  %v6701_v17 = vld [vmem:[#allocation153_spill] sm:$0xff] }
 0x559   :  { %6694 = vst [vmem:[#allocation151_spill] sm:$0xff] %v5098_v29 }
 0x55a   :  { %v5100_v19 = vpop.permute.xlu0 %1354  ;;  %1161 = vrot.lane.b32.xlu1 %v6697_v43, %s6696_s28  ;;  %v1935_v43 = vmul.f32 %v4272_v10, %v6510_v22  ;;  %s6764_s28 = smov 30  }
 0x55b   :  { %6695 = vst [vmem:[#allocation180_spill] sm:$0xff] %v5100_v19 }
 0x55c   :  { %1904 = vrot.lane.b32.xlu0 %v1896_v51, %s6693_s10  ;;  %v5107_v47 = vpop.permute.xlu1 %2310  ;;  %v6705_v51 = vld [vmem:[#allocation154_spill] sm:$0xff] }
 0x55d   :  { %6698 = vst [vmem:[#allocation152_spill] sm:$0xff] %v5107_v47 }
 0x55e   :  { %v5109_v2 = vpop.permute.xlu0 %1358  ;;  %1200 = vrot.lane.b32.xlu1 %v6701_v17, %s6700_s12  ;;  %v1972_v17 = vmul.f32 %v4283_v37, %v6514_v16  ;;  %s2831_s12 = sld [smem:[#allocation2 + $0x2f]] }
 0x55f   :  { %6699 = vst [vmem:[#allocation181_spill] sm:$0xff] %v5109_v2 }
 0x560   :  { %1939 = vrot.lane.b32.xlu0 %v1933_v0, %s6702_s21  ;;  %v5116_v29 = vpop.permute.xlu1 %2314  ;;  %v6708_v0 = vld [vmem:[#allocation157_spill] sm:$0xff] }
 0x561   :  { %6703 = vst [vmem:[#allocation153_spill] sm:$0xff] %v5116_v29 }
 0x562   :  { %v5118_v25 = vpop.permute.xlu0 %1393  ;;  %1239 = vrot.lane.b32.xlu1 %v6705_v51, %s6587_s8  ;;  %v1310_v51 = vmul.f32 %v4805_v52, %v6682_v30  ;;  %s2818_s8 = sld [smem:[#allocation2 + $0x22]] }
 0x563   :  { %6704 = vst [vmem:[#allocation182_spill] sm:$0xff] %v5118_v25 }
 0x564   :  { %1943 = vrot.lane.b32.xlu0 %v1935_v43, %s6702_s21  ;;  %v5125_v47 = vpop.permute.xlu1 %2349  ;;  %v1974_v43 = vmul.f32 %v4283_v37, %v6519_v1  ;;  %v2013_v37 = vmul.f32 %v4286_v46, %v6527_v20 }
 0x565   :  { %6706 = vst [vmem:[#allocation154_spill] sm:$0xff] %v5125_v47 }
 0x566   :  { %v5127_v2 = vpop.permute.xlu0 %1397  ;;  %1278 = vrot.lane.b32.xlu1 %v6708_v0, %s6595_s27  ;;  %v6714_v0 = vld [vmem:[#allocation160_spill] sm:$0xff]  ;;  %s6715_s27 = smov 60  }
 0x567   :  { %6707 = vst [vmem:[#allocation183_spill] sm:$0xff] %v5127_v2 }
 0x568   :  { %1978 = vrot.lane.b32.xlu0 %v1972_v17, %s6709_s26  ;;  %v5134_v29 = vpop.permute.xlu1 %2353  ;;  %v2011_v17 = vmul.f32 %v4286_v46, %v6523_v45 }
 0x569   :  { %6710 = vst [vmem:[#allocation157_spill] sm:$0xff] %v5134_v29 }
 0x56a   :  { %v5136_v10 = vpop.permute.xlu0 %1432  ;;  %1317 = vrot.lane.b32.xlu1 %v1310_v51, %s6603_s29  ;;  %v6718_v51 = vld [vmem:[#allocation162_spill] sm:$0xff]  ;;  %s6722_s29 = smov 59  }
 0x56b   :  { %6711 = vst [vmem:[#allocation184_spill] sm:$0xff] %v5136_v10 }
 0x56c   :  { %1982 = vrot.lane.b32.xlu0 %v1974_v43, %s6709_s26  ;;  %v5144_v47 = vpop.permute.xlu1 %2388 }
 0x56d   :  { %6712 = vst [vmem:[#allocation185_spill] sm:$0xff] %v5144_v47 }
 0x56e   :  { %v5146_v2 = vpop.permute.xlu0 %1436  ;;  %1356 = vrot.lane.b32.xlu1 %v6714_v0, %s6611_s7  ;;  %v6721_v0 = vld [vmem:[#allocation163_spill] sm:$0xff]  ;;  %s6758_s7 = smov 43  }
 0x56f   :  { %6713 = vst [vmem:[#allocation186_spill] sm:$0xff] %v5146_v2 }
 0x570   :  { %2017 = vrot.lane.b32.xlu0 %v2011_v17, %s6715_s27  ;;  %v5153_v52 = vpop.permute.xlu1 %2392  ;;  %v2050_v17 = vmul.f32 %v4309_v13, %v6531_v21 }
 0x571   :  { %6716 = vst [vmem:[#allocation160_spill] sm:$0xff] %v5153_v52 }
 0x572   :  { %v5155_v29 = vpop.permute.xlu0 %1471  ;;  %1395 = vrot.lane.b32.xlu1 %v6718_v51, %s6618_s0  ;;  %v2052_v51 = vmul.f32 %v4309_v13, %v6536_v49  ;;  %s2819_s0 = sld [smem:[#allocation2 + $0x23]] }
 0x573   :  { %6717 = vst [vmem:[#allocation187_spill] sm:$0xff] %v5155_v29 }
 0x574   :  { %2021 = vrot.lane.b32.xlu0 %v2013_v37, %s6715_s27  ;;  %v5162_v43 = vpop.permute.xlu1 %2426  ;;  %v5177_v37 = vstv %s2818_s8 }
 0x575   :  { %6719 = vst [vmem:[#allocation162_spill] sm:$0xff] %v5162_v43  ;;  %v6725_v43 = vld [vmem:[#allocation164_spill] sm:$0xff] }
 0x576   :  { %v5164_v47 = vpop.permute.xlu0 %1475  ;;  %1434 = vrot.lane.b32.xlu1 %v6721_v0, %s6623_s17  ;;  %s6729_s17 = smov 58  }
 0x577   :  { %6720 = vst [vmem:[#allocation188_spill] sm:$0xff] %v5164_v47 }
 0x578   :  { %2056 = vrot.lane.b32.xlu0 %v2050_v17, %s6722_s29  ;;  %v5171_v52 = vpop.permute.xlu1 %2430  ;;  %v2089_v17 = vmul.f32 %v5177_v37, %v6540_v32 }
 0x579   :  { %6723 = vst [vmem:[#allocation163_spill] sm:$0xff] %v5171_v52  ;;  %v6728_v52 = vld [vmem:[#allocation165_spill] sm:$0xff] }
 0x57a   :  { %v5173_v46 = vpop.permute.xlu0 %1510  ;;  %1473 = vrot.lane.b32.xlu1 %v6725_v43, %s6628_s6  ;;  %v2091_v43 = vmul.f32 %v5177_v37, %v6545_v4  ;;  %s2820_s6 = sld [smem:[#allocation2 + $0x24]] }
 0x57b   :  { %6724 = vst [vmem:[#allocation189_spill] sm:$0xff] %v5173_v46 }
 0x57c   :  { %2060 = vrot.lane.b32.xlu0 %v2052_v51, %s6722_s29  ;;  %v5182_v47 = vpop.permute.xlu1 %2465  ;;  %v5197_v51 = vstv %s2819_s0 }
 0x57d   :  { %6726 = vst [vmem:[#allocation164_spill] sm:$0xff] %v5182_v47  ;;  %v6732_v47 = vld [vmem:[#allocation166_spill] sm:$0xff] }
 0x57e   :  { %v5184_v0 = vpop.permute.xlu0 %1514  ;;  %1512 = vrot.lane.b32.xlu1 %v6728_v52, %s6634_s24  ;;  %s2825_s24 = sld [smem:[#allocation2 + $0x29]] }
 0x57f   :  { %6727 = vst [vmem:[#allocation190_spill] sm:$0xff] %v5184_v0 }
 0x580   :  { %2095 = vrot.lane.b32.xlu0 %v2089_v17, %s6729_s17  ;;  %v5191_v13 = vpop.permute.xlu1 %2469  ;;  %v1583_v17 = vmul.f32 %v4934_v50, %v6682_v30 }
 0x581   :  { %6730 = vst [vmem:[#allocation165_spill] sm:$0xff] %v5191_v13  ;;  %v2128_v13 = vmul.f32 %v5197_v51, %v6549_v41 }
 0x582   :  { %v5193_v46 = vpop.permute.xlu0 %1549  ;;  %1551 = vrot.lane.b32.xlu1 %v6732_v47, %s6641_s2  ;;  %v2130_v47 = vmul.f32 %v5197_v51, %v6553_v14  ;;  %s2821_s2 = sld [smem:[#allocation2 + $0x25]] }
 0x583   :  { %6731 = vst [vmem:[#allocation191_spill] sm:$0xff] %v5193_v46 }
 0x584   :  { %2099 = vrot.lane.b32.xlu0 %v2091_v43, %s6729_s17  ;;  %v5202_v0 = vpop.permute.xlu1 %2504  ;;  %v5218_v43 = vstv %s2820_s6 }
 0x585   :  { %6733 = vst [vmem:[#allocation166_spill] sm:$0xff] %v5202_v0  ;;  %v6737_v0 = vld [vmem:[#allocation167_spill] sm:$0xff] }
 0x586   :  { %v5204_v52 = vpop.permute.xlu0 %1553  ;;  %1590 = vrot.lane.b32.xlu1 %v1583_v17, %s6646_s20  ;;  %s6741_s20 = smov 47  }
 0x587   :  { %6734 = vst [vmem:[#allocation192_spill] sm:$0xff] %v5204_v52 }
 0x588   :  { %2134 = vrot.lane.b32.xlu0 %v2128_v13, %s6581_s19  ;;  %v5212_v46 = vpop.permute.xlu1 %2508  ;;  %v2167_v13 = vmul.f32 %v5218_v43, %v6496_v8 }
 0x589   :  { %6735 = vst [vmem:[#allocation193_spill] sm:$0xff] %v5212_v46  ;;  %v6740_v46 = vld [vmem:[#allocation168_spill] sm:$0xff] }
 0x58a   :  { %v5214_v29 = vpop.permute.xlu0 %1588  ;;  %1629 = vrot.lane.b32.xlu1 %v6737_v0, %s6653_s11  ;;  %v2169_v0 = vmul.f32 %v5218_v43, %v6501_v58  ;;  %s2822_s11 = sld [smem:[#allocation2 + $0x26]] }
 0x58b   :  { %6736 = vst [vmem:[#allocation194_spill] sm:$0xff] %v5214_v29 }
 0x58c   :  { %2138 = vrot.lane.b32.xlu0 %v2130_v47, %s6581_s19  ;;  %v5223_v50 = vpop.permute.xlu1 %2543  ;;  %v5238_v47 = vstv %s2821_s2 }
 0x58d   :  { %6738 = vst [vmem:[#allocation167_spill] sm:$0xff] %v5223_v50  ;;  %v6744_v50 = vld [vmem:[#allocation169_spill] sm:$0xff] }
 0x58e   :  { %v5225_v17 = vpop.permute.xlu0 %1592  ;;  %1668 = vrot.lane.b32.xlu1 %v6740_v46, %s3075_s14  ;;  %s2823_s14 = sld [smem:[#allocation2 + $0x27]] }
 0x58f   :  { %6739 = vst [vmem:[#allocation195_spill] sm:$0xff] %v5225_v17 }
 0x590   :  { %2173 = vrot.lane.b32.xlu0 %v2167_v13, %s6741_s20  ;;  %v5232_v29 = vpop.permute.xlu1 %2547  ;;  %v2206_v13 = vmul.f32 %v5238_v47, %v6505_v53 }
 0x591   :  { %6742 = vst [vmem:[#allocation168_spill] sm:$0xff] %v5232_v29 }
 0x592   :  { %v5234_v52 = vpop.permute.xlu0 %1627  ;;  %1707 = vrot.lane.b32.xlu1 %v6744_v50, %s3076_s15  ;;  %v2208_v50 = vmul.f32 %v5238_v47, %v6510_v22  ;;  %s6752_s15 = smov 45  }
 0x593   :  { %6743 = vst [vmem:[#allocation196_spill] sm:$0xff] %v5234_v52 }
 0x594   :  { %2177 = vrot.lane.b32.xlu0 %v2169_v0, %s6741_s20  ;;  %v5243_v17 = vpop.permute.xlu1 %2582  ;;  %v5258_v0 = vstv %s2822_s11 }
 0x595   :  { %6745 = vst [vmem:[#allocation169_spill] sm:$0xff] %v5243_v17  ;;  %v6749_v17 = vld [vmem:[#allocation170_spill] sm:$0xff] }
 0x596   :  { %v5245_v46 = vpop.permute.xlu0 %1631  ;;  %1746 = vrot.lane.b32.xlu1 %v4294_v31, %s3077_s18  ;;  %s693_s18 = sld [smem:[#allocation2]] }
 0x597   :  { %6746 = vst [vmem:[#allocation197_spill] sm:$0xff] %v5245_v46 }
 0x598   :  { %2212 = vrot.lane.b32.xlu0 %v2206_v13, %s6598_s22  ;;  %v5252_v29 = vpop.permute.xlu1 %2586  ;;  %v2245_v13 = vmul.f32 %v5258_v0, %v6514_v16 }
 0x599   :  { %6747 = vst [vmem:[#allocation198_spill] sm:$0xff] %v5252_v29 }
 0x59a   :  { %v5254_v52 = vpop.permute.xlu0 %1666  ;;  %1785 = vrot.lane.b32.xlu1 %v6749_v17, %s3078_s4  ;;  %v1856_v17 = vmul.f32 %v5065_v55, %v6682_v30  ;;  %s2824_s4 = sld [smem:[#allocation2 + $0x28]] }
 0x59b   :  { %6748 = vst [vmem:[#allocation199_spill] sm:$0xff] %v5254_v52 }
 0x59c   :  { %2216 = vrot.lane.b32.xlu0 %v2208_v50, %s6598_s22  ;;  %v5263_v46 = vpop.permute.xlu1 %2621  ;;  %v2247_v50 = vmul.f32 %v5258_v0, %v6519_v1  ;;  %v791_v55 = vstv %s693_s18 }
 0x59d   :  { %6750 = vst [vmem:[#allocation170_spill] sm:$0xff] %v5263_v46  ;;  %v5280_v46 = vstv %s2823_s14 }
 0x59e   :  { %v5265_v31 = vpop.permute.xlu0 %1670  ;;  %1824 = vrot.lane.b32.xlu1 %v4306_v3, %s6677_s9  ;;  %s2826_s9 = sld [smem:[#allocation2 + $0x2a]] }
 0x59f   :  { %6751 = vst [vmem:[#allocation200_spill] sm:$0xff] %v5265_v31 }
 0x5a0   :  { %2251 = vrot.lane.b32.xlu0 %v2245_v13, %s6752_s15  ;;  %v5272_v29 = vpop.permute.xlu1 %2625 }
 0x5a1   :  { %6753 = vst [vmem:[#allocation201_spill] sm:$0xff] %v5272_v29  ;;  %v2284_v29 = vmul.f32 %v5280_v46, %v6523_v45 }
 0x5a2   :  { %v5274_v52 = vpop.permute.xlu0 %1705  ;;  %1863 = vrot.lane.b32.xlu1 %v1856_v17, %s6684_s3  ;;  %v2286_v17 = vmul.f32 %v5280_v46, %v6527_v20  ;;  %s2827_s3 = sld [smem:[#allocation2 + $0x2b]] }
 0x5a3   :  { %6754 = vst [vmem:[#allocation202_spill] sm:$0xff] %v5274_v52 }
 0x5a4   :  { %2255 = vrot.lane.b32.xlu0 %v2247_v50, %s6752_s15  ;;  %v5284_v3 = vpop.permute.xlu1 %2660 }
 0x5a5   :  { %6755 = vst [vmem:[#allocation203_spill] sm:$0xff] %v5284_v3 }
 0x5a6   :  { %v5286_v13 = vpop.permute.xlu0 %1709  ;;  %1902 = vrot.lane.b32.xlu1 %v4313_v7, %s6693_s10  ;;  %v792_v7 = vmul.f32 %v791_v55, %v6549_v41  ;;  %s6760_s10 = smov 32  }
 0x5a7   :  { %6756 = vst [vmem:[#allocation204_spill] sm:$0xff] %v5286_v13  ;;  %v5301_v13 = vstv %s2824_s4 }
 0x5a8   :  { %2290 = vrot.lane.b32.xlu0 %v2284_v29, %s6613_s1  ;;  %v811_v52 = vpop.permute.xlu1 %810  ;;  %v793_v29 = vmul.f32 %v791_v55, %v6682_v30 }
 0x5a9   :  { %v815_v50 = vsel %vm814_vm10, %v4839_v11, %v811_v52  ;;  %v816_v3 = vsel %vm814_vm10, %v811_v52, %v4848_v35  ;;  %v2323_v35 = vmul.f32 %v5301_v13, %v6531_v21 }
 0x5aa   :  { %v5293_v31 = vpop.permute.xlu0 %1744  ;;  %1941 = vrot.lane.b32.xlu1 %v4319_v5, %s6702_s21  ;;  %v820_v2 = vadd.f32 %v816_v3, %v793_v29  ;;  %s2832_s21 = sld [smem:[#allocation2 + $0x30]] }
 0x5ab   :  { %6757 = vst [vmem:[#allocation205_spill] sm:$0xff] %v5293_v31  ;;  %v819_v31 = vadd.f32 %v815_v50, %v792_v7 }
 0x5ac   :  { %2294 = vrot.lane.b32.xlu0 %v2286_v17, %s6613_s1  ;;  %v850_v10 = vpop.permute.xlu1 %849  ;;  %v2325_v17 = vmul.f32 %v5301_v13, %v6536_v49 }
 0x5ad   :  { %v854_v52 = vsel %vm853_vm11, %v4857_v15, %v850_v10  ;;  %v855_v55 = vsel %vm853_vm11, %v850_v10, %v4866_v33  ;;  %v5327_v10 = vstv %s2825_s24 }
 0x5ae   :  { %v5308_v11 = vpop.permute.xlu0 %1748  ;;  %v858_v25 = vadd.f32 %v854_v52, %v819_v31  ;;  %v859_v19 = vadd.f32 %v855_v55, %v820_v2  ;;  %1980 = vrot.lane.b32.xlu1 %v4323_v61, %s6709_s26 }
 0x5b0   :  { %2329 = vrot.lane.b32.xlu0 %v2323_v35, %s6758_s7  ;;  %v889_v5 = vpop.permute.xlu1 %888  ;;  %v6759_v35 = vld [vmem:[#allocation48_spill] sm:$0xff] }
 0x5b1   :  { %v893_v15 = vsel %vm892_vm12, %v4875_v28, %v889_v5  ;;  %v894_v33 = vsel %vm892_vm12, %v889_v5, %v4884_v42  ;;  %v2362_v28 = vmul.f32 %v5327_v10, %v6540_v32  ;;  %v2090_v52 = vmul.f32 %v5177_v37, %v6759_v35 }
 0x5b2   :  { %v5319_v3 = vpop.permute.xlu0 %1783  ;;  %v897_v2 = vadd.f32 %v893_v15, %v858_v25  ;;  %v898_v61 = vadd.f32 %v894_v33, %v859_v19  ;;  %2019 = vrot.lane.b32.xlu1 %v4327_v57, %s6715_s27  ;;  %v5353_v5 = vstv %s2826_s9  ;;  %v2129_v33 = vmul.f32 %v5197_v51, %v6682_v30  ;;  %v6761_v51 = vld [vmem:[#allocation38_spill] sm:$0xff] }
 0x5b4   :  { %2333 = vrot.lane.b32.xlu0 %v2325_v17, %s6758_s7  ;;  %v928_v31 = vpop.permute.xlu1 %927 }
 0x5b5   :  { %v932_v42 = vsel %vm931_vm13, %v4894_v60, %v928_v31  ;;  %v933_v7 = vsel %vm931_vm13, %v928_v31, %v4903_v62  ;;  %v2364_v60 = vmul.f32 %v5327_v10, %v6545_v4 }
 0x5b6   :  { %v5332_v50 = vpop.permute.xlu0 %1787  ;;  %v936_v25 = vadd.f32 %v932_v42, %v897_v2  ;;  %v937_v19 = vadd.f32 %v933_v7, %v898_v61  ;;  %2058 = vrot.lane.b32.xlu1 %v4335_v26, %s6722_s29  ;;  %v2168_v7 = vmul.f32 %v5218_v43, %v6761_v51 }
 0x5b8   :  { %2368 = vrot.lane.b32.xlu0 %v2362_v28, %s6625_s30  ;;  %v967_v57 = vpop.permute.xlu1 %966 }
 0x5b9   :  { %v971_v62 = vsel %vm970_vm14, %v4912_v27, %v967_v57  ;;  %v972_v55 = vsel %vm970_vm14, %v967_v57, %v4921_v9  ;;  %v2401_v27 = vmul.f32 %v5353_v5, %v6549_v41  ;;  %v2403_v41 = vmul.f32 %v5353_v5, %v6553_v14 }
 0x5ba   :  { %v5343_v29 = vpop.permute.xlu0 %1822  ;;  %v975_v26 = vadd.f32 %v971_v62, %v936_v25  ;;  %v976_v17 = vadd.f32 %v972_v55, %v937_v19  ;;  %2097 = vrot.lane.b32.xlu1 %v2090_v52, %s6729_s17  ;;  %v5379_v25 = vstv %s2827_s3  ;;  %v2207_v14 = vmul.f32 %v5238_v47, %v3437_v36  ;;  %v6762_v47 = vld [vmem:[#allocation43_spill] sm:$0xff] }
 0x5bc   :  { %2372 = vrot.lane.b32.xlu0 %v2364_v60, %s6625_s30  ;;  %v1006_v37 = vpop.permute.xlu1 %1005 }
 0x5bd   :  { %v1010_v9 = vsel %vm1009_vm15, %v4930_v40, %v1006_v37  ;;  %v1011_v2 = vsel %vm1009_vm15, %v1006_v37, %v4941_v24  ;;  %v2246_v37 = vmul.f32 %v5258_v0, %v6762_v47 }
 0x5be   :  { %v5357_v15 = vpop.permute.xlu0 %1826  ;;  %v1014_v61 = vadd.f32 %v1010_v9, %v975_v26  ;;  %v1015_v31 = vadd.f32 %v1011_v2, %v976_v17  ;;  %2136 = vrot.lane.b32.xlu1 %v2129_v33, %s6581_s19  ;;  %s2828_s19 = sld [smem:[#allocation2 + $0x2c]] }
 0x5c0   :  { %2407 = vrot.lane.b32.xlu0 %v2401_v27, %s6760_s10  ;;  %v1045_v28 = vpop.permute.xlu1 %1044 }
 0x5c1   :  { %v1049_v40 = vsel %vm1048_vm0, %v4950_v54, %v1045_v28  ;;  %v1050_v24 = vsel %vm1048_vm0, %v1045_v28, %v4959_v34  ;;  %v2439_v54 = vmul.f32 %v5379_v25, %v6496_v8  ;;  %v2441_v8 = vmul.f32 %v5379_v25, %v6501_v58  ;;  %v6763_v58 = vld [vmem:[#allocation45_spill] sm:$0xff] }
 0x5c2   :  { %v5369_v42 = vpop.permute.xlu0 %1861  ;;  %v1053_v19 = vadd.f32 %v1049_v40, %v1014_v61  ;;  %v1054_v57 = vadd.f32 %v1050_v24, %v1015_v31  ;;  %2175 = vrot.lane.b32.xlu1 %v2168_v7, %s6741_s20  ;;  %v2285_v61 = vmul.f32 %v5280_v46, %v6763_v58  ;;  %v2324_v46 = vmul.f32 %v5301_v13, %v3460_v12 }
 0x5c4   :  { %2411 = vrot.lane.b32.xlu0 %v2403_v41, %s6760_s10  ;;  %v1084_v43 = vpop.permute.xlu1 %1083  ;;  %v5405_v33 = vstv %s2828_s19 }
 0x5c5   :  { %v1088_v34 = vsel %vm1087_vm1, %v4968_v23, %v1084_v43  ;;  %v1089_v60 = vsel %vm1087_vm1, %v1084_v43, %v4977_v38 }
 0x5c6   :  { %v5383_v52 = vpop.permute.xlu0 %1865  ;;  %v1092_v62 = vadd.f32 %v1088_v34, %v1053_v19  ;;  %v1093_v55 = vadd.f32 %v1089_v60, %v1054_v57  ;;  %2214 = vrot.lane.b32.xlu1 %v2207_v14, %s6598_s22  ;;  %s2829_s22 = sld [smem:[#allocation2 + $0x2d]]  ;;  %v6765_v14 = vld [vmem:[#allocation139_spill] sm:$0xff] }
 0x5c8   :  { %2445 = vrot.lane.b32.xlu0 %v2439_v54, %s6636_s16  ;;  %v1123_v26 = vpop.permute.xlu1 %1122 }
 0x5c9   :  { %v1127_v23 = vsel %vm1126_vm2, %v4986_v6, %v1123_v26  ;;  %v1128_v38 = vsel %vm1126_vm2, %v1123_v26, %v4995_v18  ;;  %v2478_v6 = vmul.f32 %v5405_v33, %v6505_v53  ;;  %v2480_v53 = vmul.f32 %v5405_v33, %v6510_v22  ;;  %v6766_v26 = vld [vmem:[#allocation141_spill] sm:$0xff] }
 0x5ca   :  { %v5395_v17 = vpop.permute.xlu0 %1900  ;;  %v1131_v27 = vadd.f32 %v1127_v23, %v1092_v62  ;;  %v1132_v9 = vadd.f32 %v1128_v38, %v1093_v55  ;;  %2253 = vrot.lane.b32.xlu1 %v2246_v37, %s6752_s15  ;;  %v2363_v22 = vmul.f32 %v5327_v10, %v6759_v35  ;;  %v2402_v10 = vmul.f32 %v5353_v5, %v6682_v30  ;;  %v6767_v5 = vld [vmem:[#allocation146_spill] sm:$0xff] }
 0x5cc   :  { %2449 = vrot.lane.b32.xlu0 %v2441_v8, %s6636_s16  ;;  %v1162_v0 = vpop.permute.xlu1 %1161  ;;  %v2516_v24 = vstv %s2829_s22 }
 0x5cd   :  { %v1166_v18 = vsel %vm1165_vm3, %v5006_v48, %v1162_v0  ;;  %v1167_v31 = vsel %vm1165_vm3, %v1162_v0, %v5016_v59  ;;  %v6768_v0 = vld [vmem:[#allocation149_spill] sm:$0xff] }
 0x5ce   :  { %v5409_v2 = vpop.permute.xlu0 %1904  ;;  %v1170_v28 = vadd.f32 %v1166_v18, %v1131_v27  ;;  %v1171_v7 = vadd.f32 %v1167_v31, %v1132_v9  ;;  %2292 = vrot.lane.b32.xlu1 %v2285_v61, %s6613_s1  ;;  %s2830_s1 = sld [smem:[#allocation2 + $0x2e]] }
 0x5d0   :  { %2484 = vrot.lane.b32.xlu0 %v2478_v6, %s6764_s28  ;;  %v1201_v41 = vpop.permute.xlu1 %1200 }
 0x5d1   :  { %v1205_v48 = vsel %vm1204_vm4, %v5025_v56, %v1201_v41  ;;  %v1206_v59 = vsel %vm1204_vm4, %v1201_v41, %v5034_v44  ;;  %v2517_v56 = vmul.f32 %v2516_v24, %v6514_v16  ;;  %v2519_v16 = vmul.f32 %v2516_v24, %v6519_v1  ;;  %v6771_v41 = vld [vmem:[#allocation181_spill] sm:$0xff] }
 0x5d2   :  { %v5421_v40 = vpop.permute.xlu0 %1939  ;;  %v1209_v19 = vadd.f32 %v1205_v48, %v1170_v28  ;;  %v1210_v57 = vadd.f32 %v1206_v59, %v1171_v7  ;;  %2331 = vrot.lane.b32.xlu1 %v2324_v46, %s6758_s7  ;;  %v2440_v1 = vmul.f32 %v5379_v25, %v6761_v51  ;;  %v2479_v51 = vmul.f32 %v5405_v33, %v3437_v36  ;;  %v6770_v25 = vld [vmem:[#allocation180_spill] sm:$0xff]  ;;  %v6772_v33 = vld [vmem:[#allocation182_spill] sm:$0xff] }
 0x5d3   :  { %v2518_v36 = vmul.f32 %v2516_v24, %v6762_v47  ;;  %v6774_v24 = vld [vmem:[#allocation184_spill] sm:$0xff] }
 0x5d4   :  { %2488 = vrot.lane.b32.xlu0 %v2480_v53, %s6764_s28  ;;  %v1240_v43 = vpop.permute.xlu1 %1239  ;;  %v2555_v8 = vstv %s2830_s1  ;;  %v2594_v53 = vstv %s2831_s12 }
 0x5d5   :  { %v1244_v44 = vsel %vm1243_vm5, %v5043_v39, %v1240_v43  ;;  %v1245_v54 = vsel %vm1243_vm5, %v1240_v43, %v6765_v14  ;;  %v2556_v30 = vmul.f32 %v2555_v8, %v6523_v45  ;;  %v2558_v45 = vmul.f32 %v2555_v8, %v6527_v20 }
 0x5d6   :  { %v5433_v13 = vpop.permute.xlu0 %1943  ;;  %v1248_v34 = vadd.f32 %v1244_v44, %v1209_v19  ;;  %v1249_v60 = vadd.f32 %v1245_v54, %v1210_v57  ;;  %2370 = vrot.lane.b32.xlu1 %v2363_v22, %s6625_s30  ;;  %s6769_s30 = smov 28   ;;  %v2595_v20 = vmul.f32 %v2594_v53, %v6531_v21  ;;  %v6773_v22 = vld [vmem:[#allocation183_spill] sm:$0xff]  ;;  %v2557_v47 = vmul.f32 %v2555_v8, %v6763_v58 }
 0x5d7   :  { %v2597_v21 = vmul.f32 %v2594_v53, %v6536_v49  ;;  %v2596_v58 = vmul.f32 %v2594_v53, %v3460_v12  ;;  %v6776_v8 = vld [vmem:[#allocation187_spill] sm:$0xff] }
 0x5d8   :  { %2523 = vrot.lane.b32.xlu0 %v2517_v56, %s6648_s23  ;;  %v1279_v62 = vpop.permute.xlu1 %1278 }
 0x5d9   :  { %v1283_v39 = vsel %vm1282_vm6, %v6766_v26, %v1279_v62  ;;  %v1284_v37 = vsel %vm1282_vm6, %v1279_v62, %v5072_v63  ;;  %v6775_v62 = vld [vmem:[#allocation186_spill] sm:$0xff] }
 0x5da   :  { %v5444_v55 = vpop.permute.xlu0 %1978  ;;  %v1287_v23 = vadd.f32 %v1283_v39, %v1248_v34  ;;  %v1288_v38 = vadd.f32 %v1284_v37, %v1249_v60  ;;  %2409 = vrot.lane.b32.xlu1 %v2402_v10, %s6760_s10 }
 0x5dc   :  { %2527 = vrot.lane.b32.xlu0 %v2519_v16, %s6648_s23  ;;  %v1318_v27 = vpop.permute.xlu1 %1317  ;;  %v2633_v16 = vstv %s2832_s21 }
 0x5dd   :  { %v1322_v63 = vsel %vm1321_vm8, %v6767_v5, %v1318_v27  ;;  %v1323_v61 = vsel %vm1321_vm8, %v1318_v27, %v6768_v0  ;;  %v2634_v49 = vmul.f32 %v2633_v16, %v6540_v32  ;;  %v6777_v27 = vld [vmem:[#allocation188_spill] sm:$0xff]  ;;  %v2635_v12 = vmul.f32 %v2633_v16, %v6759_v35 }
 0x5de   :  { %v5455_v9 = vpop.permute.xlu0 %1982  ;;  %v1326_v6 = vadd.f32 %v1322_v63, %v1287_v23  ;;  %v1327_v18 = vadd.f32 %v1323_v61, %v1288_v38  ;;  %2447 = vrot.lane.b32.xlu1 %v2440_v1, %s6636_s16  ;;  %v2636_v32 = vmul.f32 %v2633_v16, %v6545_v4  ;;  %s2833_s16 = sld [smem:[#allocation2 + $0x31]] }
 0x5e0   :  { %2562 = vrot.lane.b32.xlu0 %v2556_v30, %s6769_s30  ;;  %v1357_v31 = vpop.permute.xlu1 %1356 }
 0x5e1   :  { %v1361_v7 = vsel %vm6260_vm9, %v6770_v25, %v1357_v31  ;;  %v1362_v46 = vsel %vm6260_vm9, %v1357_v31, %v6771_v41  ;;  %vm1438_vm9 = vcmask 760832   ;;  %v6779_v31 = vld [vmem:[#allocation128_spill] sm:$0xff] }
 0x5e2   :  { %v5466_v28 = vpop.permute.xlu0 %2017  ;;  %v1365_v48 = vadd.f32 %v1361_v7, %v1326_v6  ;;  %v1366_v59 = vadd.f32 %v1362_v46, %v1327_v18  ;;  %2486 = vrot.lane.b32.xlu1 %v2479_v51, %s6764_s28  ;;  %v6778_v18 = vld [vmem:[#allocation102_spill] sm:$0xff] }
 0x5e3   :  { %v2656_v51 = vmul.f32 %v6779_v31, %v6778_v18 }
 0x5e4   :  { %2566 = vrot.lane.b32.xlu0 %v2558_v45, %s6769_s30  ;;  %v1396_v19 = vpop.permute.xlu1 %1395  ;;  %v6780_v45 = vld [vmem:[#allocation49_spill] sm:$0xff]  ;;  %v796_v46 = vstv %s2833_s16 }
 0x5e5   :  { %v1400_v43 = vsel %vm6261_vm7, %v6772_v33, %v1396_v19  ;;  %v1401_v56 = vsel %vm6261_vm7, %v1396_v19, %v6773_v22  ;;  %vm1477_vm7 = vcmask 752640   ;;  %v2655_v25 = vmul.f32 %v6779_v31, %v6780_v45  ;;  %v6782_v19 = vld [vmem:[#allocation171_spill] sm:$0xff] }
 0x5e6   :  { %v5477_v57 = vpop.permute.xlu0 %2021  ;;  %v1404_v44 = vadd.f32 %v1400_v43, %v1365_v48  ;;  %v1405_v14 = vadd.f32 %v1401_v56, %v1366_v59  ;;  %2525 = vrot.lane.b32.xlu1 %v2518_v36, %s6648_s23  ;;  %v6781_v59 = vld [vmem:[#allocation172_spill] sm:$0xff]  ;;  %v6784_v43 = vld [vmem:[#allocation51_spill] sm:$0xff] }
 0x5e7   :  { %v834_v36 = vsel %vm814_vm10, %v6782_v19, %v6781_v59  ;;  %v797_v22 = vmul.f32 %v796_v46, %v6784_v43  ;;  %v6785_v56 = vld [vmem:[#allocation55_spill] sm:$0xff]  ;;  %v6796_v19 = vld [vmem:[#allocation52_spill] sm:$0xff] }
 0x5e8   :  { %2601 = vrot.lane.b32.xlu0 %v2595_v20, %s3099_s25  ;;  %v1435_v54 = vpop.permute.xlu1 %1434  ;;  %v6783_v20 = vld [vmem:[#allocation72_spill] sm:$0xff] }
 0x5e9   :  { %v1439_v60 = vsel %vm1438_vm9, %v6774_v24, %v1435_v54  ;;  %v1440_v10 = vsel %vm1438_vm9, %v1435_v54, %v6775_v62  ;;  %v835_v33 = vsel %vm814_vm10, %v6781_v59, %v6783_v20  ;;  %v6787_v54 = vld [vmem:[#allocation74_spill] sm:$0xff]  ;;  %vm1516_vm10 = vcmask 744448  }
 0x5ea   :  { %v5487_v34 = vpop.permute.xlu0 %2056  ;;  %v1443_v26 = vadd.f32 %v1439_v60, %v1404_v44  ;;  %v1444_v39 = vadd.f32 %v1440_v10, %v1405_v14  ;;  %2564 = vrot.lane.b32.xlu1 %v2557_v47, %s6769_s30  ;;  %v798_v44 = vmul.f32 %v796_v46, %v6785_v56  ;;  %v6786_v14 = vld [vmem:[#allocation173_spill] sm:$0xff]  ;;  %v838_v10 = vadd.f32 %v834_v36, %v797_v22  ;;  %v6795_v46 = vld [vmem:[#allocation190_spill] sm:$0xff]  ;;  %v6797_v36 = vld [vmem:[#allocation91_spill] sm:$0xff] }
 0x5eb   :  { %v873_v47 = vsel %vm853_vm11, %v6787_v54, %v6786_v14  ;;  %v990_v20 = vsel %vm970_vm14, %v6797_v36, %v6796_v19  ;;  %v6800_v54 = vld [vmem:[#allocation192_spill] sm:$0xff] }
 0x5ec   :  { %2605 = vrot.lane.b32.xlu0 %v2597_v21, %s3099_s25  ;;  %v1474_v37 = vpop.permute.xlu1 %1473  ;;  %v6788_v21 = vld [vmem:[#allocation77_spill] sm:$0xff]  ;;  %v839_v16 = vadd.f32 %v835_v33, %v798_v44  ;;  %v6798_v33 = vld [vmem:[#allocation94_spill] sm:$0xff]  ;;  %v6810_v36 = vld [vmem:[#allocation108_spill] sm:$0xff] }
 0x5ed   :  { %v1478_v38 = vsel %vm1477_vm7, %v6776_v8, %v1474_v37  ;;  %v1479_v1 = vsel %vm1477_vm7, %v1474_v37, %v6777_v27  ;;  %v874_v24 = vsel %vm853_vm11, %v6786_v14, %v6788_v21  ;;  %v877_v8 = vadd.f32 %v873_v47, %v838_v10  ;;  %v6792_v27 = vld [vmem:[#allocation50_spill] sm:$0xff]  ;;  %v6799_v44 = vld [vmem:[#allocation189_spill] sm:$0xff] }
 0x5ee   :  { %v5497_v23 = vpop.permute.xlu0 %2060  ;;  %v5505_v30 = vadd.f32 %v1478_v38, %v1443_v26  ;;  %v1483_v5 = vadd.f32 %v1479_v1, %v1444_v39  ;;  %2603 = vrot.lane.b32.xlu1 %v2596_v58, %s3099_s25  ;;  %v6789_v26 = vld [vmem:[#allocation174_spill] sm:$0xff]  ;;  %v6790_v39 = vld [vmem:[#allocation80_spill] sm:$0xff]  ;;  %v6791_v58 = vld [vmem:[#allocation81_spill] sm:$0xff]  ;;  %v878_v38 = vadd.f32 %v874_v24, %v839_v16  ;;  %v991_v43 = vsel %vm970_vm14, %v6796_v19, %v6798_v33  ;;  %s3102_s25 = smov [#allocation7]  }
 0x5ef   :  { %v912_v37 = vsel %vm892_vm12, %v6790_v39, %v6789_v26  ;;  %v6793_v1 = vld [vmem:[#allocation86_spill] sm:$0xff]  ;;  %vm1555_vm11 = vcmask 736256   ;;  %v6801_v21 = vld [vmem:[#allocation53_spill] sm:$0xff]  ;;  %v6802_v24 = vld [vmem:[#allocation96_spill] sm:$0xff]  ;;  %vm1672_vm14 = vcmask 637952  }
 0x5f0   :  { %2640 = vrot.lane.b32.xlu0 %v2634_v49, %s3100_s13  ;;  %v1513_v63 = vpop.permute.xlu1 %1512  ;;  %v913_v49 = vsel %vm892_vm12, %v6789_v26, %v6791_v58  ;;  %v916_v45 = vadd.f32 %v912_v37, %v877_v8  ;;  %v1029_v10 = vsel %vm1009_vm15, %v6802_v24, %v6801_v21  ;;  %vm1594_vm12 = vcmask 654336  }
 0x5f1   :  { %v1518_v59 = vsel %vm1516_vm10, %v1513_v63, %v6795_v46  ;;  %v1517_v14 = vsel %vm1516_vm10, %v6799_v44, %v1513_v63  ;;  %v6811_v44 = vld [vmem:[#allocation196_spill] sm:$0xff] }
 0x5f2   :  { %v5509_v0 = vpop.permute.xlu0 %2095  ;;  %2642 = vrot.lane.b32.xlu1 %v2635_v12, %s3100_s13  ;;  %v951_v12 = vsel %vm931_vm13, %v6793_v1, %v6792_v27  ;;  %v1522_v16 = vadd.f32 %v1518_v59, %v1483_v5  ;;  %v6809_v59 = vld [vmem:[#allocation103_spill] sm:$0xff] }
 0x5f3   :  { %v955_v22 = vadd.f32 %v951_v12, %v916_v45  ;;  %v1521_v12 = vadd.f32 %v1517_v14, %v5505_v30  ;;  %v6812_v14 = vld [vmem:[#allocation200_spill] sm:$0xff] }
 0x5f4   :  { %2644 = vrot.lane.b32.xlu0 %v2636_v32, %s3100_s13  ;;  %v1552_v61 = vpop.permute.xlu1 %1551  ;;  %v6794_v32 = vld [vmem:[#allocation89_spill] sm:$0xff] }
 0x5f5   :  { %v952_v18 = vsel %vm931_vm13, %v6792_v27, %v6794_v32  ;;  %v1557_v47 = vsel %vm1555_vm11, %v1552_v61, %v6800_v54  ;;  %v994_v37 = vadd.f32 %v990_v20, %v955_v22  ;;  %v6805_v27 = vld [vmem:[#allocation99_spill] sm:$0xff]  ;;  %vm1633_vm13 = vcmask 646144  }
 0x5f6   :  { %v5515_v6 = vpop.permute.xlu0 %2099  ;;  %2664 = vrot.lane.b32.xlu1 %v2656_v51, %s3100_s13  ;;  %v1030_v1 = vsel %vm1009_vm15, %v6801_v21, %v6805_v27  ;;  %v1561_v32 = vadd.f32 %v1557_v47, %v1522_v16  ;;  %vm1711_vm15 = vcmask 629760   ;;  %v6813_v47 = vld [vmem:[#allocation56_spill] sm:$0xff]  ;;  %v6814_v21 = vld [vmem:[#allocation111_spill] sm:$0xff] }
 0x5f7   :  { %v1033_v5 = vadd.f32 %v1029_v10, %v994_v37  ;;  %v1107_v24 = vsel %vm1087_vm1, %v6814_v21, %v6813_v47  ;;  %v6815_v10 = vld [vmem:[#allocation113_spill] sm:$0xff] }
 0x5f8   :  { %2662 = vrot.lane.b32.xlu0 %v2655_v25, %s3100_s13  ;;  %v1591_v35 = vpop.permute.xlu1 %1590  ;;  %v917_v25 = vadd.f32 %v913_v49, %v878_v38  ;;  %v6803_v49 = vld [vmem:[#allocation191_spill] sm:$0xff]  ;;  %v1108_v16 = vsel %vm1087_vm1, %v6813_v47, %v6815_v10  ;;  %vm6262_vm1 = vcmask 613376   ;;  %s2768_s13 = sshll.u32 %s3102_s25, 4  ;;  %s2769_s13 = int_to_ptr.vmem [resolvable:$true] %s2768_s13 }
 0x5f9   :  { %v1556_v8 = vsel %vm1555_vm11, %v6803_v49, %v1552_v61  ;;  %v6804_v38 = vld [vmem:[#allocation195_spill] sm:$0xff]  ;;  %v6808_v61 = vld [vmem:[#allocation54_spill] sm:$0xff]  ;;  %s3017_s23 = scalar_lea.vmem %s2769_s13, 2048  ;;  %p3022_p0 = scmp.lt.s32.totalorder %s2769_s13, %s2769_s13 }
 0x5fa   :  { %v5523_v4 = vpop.permute.xlu0 %2134  ;;  %v956_v56 = vadd.f32 %v952_v18, %v917_v25  ;;  %v1596_v63 = vsel %vm1594_vm12, %v1591_v35, %v6804_v38  ;;  %v6806_v18 = vld [vmem:[#allocation194_spill] sm:$0xff]  ;;  %v6807_v25 = vld [vmem:[#allocation197_spill] sm:$0xff]  ;;  %v1068_v19 = vsel %vm1048_vm0, %v6809_v59, %v6808_v61  ;;  %v1069_v20 = vsel %vm1048_vm0, %v6808_v61, %v6810_v36  ;;  %v6816_v38 = vld [vmem:[#allocation199_spill] sm:$0xff]  ;;  %p3018_p13 = scmp.ne.s32.totalorder %s2769_s13, %s3017_s23  ;;  %p3023_p1 = scmp.lt.s32.totalorder %s3017_s23, %s3017_s23 }
 0x5fb   :  { %v1595_v45 = vsel %vm1594_vm12, %v6806_v18, %v1591_v35  ;;  %v1560_v33 = vadd.f32 %v1556_v8, %v1521_v12  ;;  %v1072_v8 = vadd.f32 %v1068_v19, %v1033_v5  ;;  %v6819_v12 = vld [vmem:[#allocation114_spill] sm:$0xff]  ;;  %vm1750_vm0 = vcmask 621568  }
 0x5fc   :  { %v1630_v7 = vpop.permute.xlu1 %1629  ;;  %v995_v58 = vadd.f32 %v991_v43, %v956_v56  ;;  %v1600_v43 = vadd.f32 %v1596_v63, %v1561_v32  ;;  %v6817_v63 = vld [vmem:[#allocation204_spill] sm:$0xff]  ;;  %v6820_v59 = vld [vmem:[#allocation202_spill] sm:$0xff]  ;;  %p3024_p2 = por %p3023_p1, %p3022_p0 }
 0x5fd   :  { %v1635_v46 = vsel %vm1633_vm13, %v1630_v7, %v6807_v25  ;;  %v1634_v35 = vsel %vm1633_vm13, %v6811_v44, %v1630_v7  ;;  %v1599_v37 = vadd.f32 %v1595_v45, %v1560_v33  ;;  %v1111_v5 = vadd.f32 %v1107_v24, %v1072_v8  ;;  %v6821_v36 = vld [vmem:[#allocation118_spill] sm:$0xff]  ;;  %v6826_v8 = vld [vmem:[#allocation59_spill] sm:$0xff] }
 0x5fe   :  { %v5525_v41 = vpop.permute.xlu0 %2138  ;;  %v1034_v56 = vadd.f32 %v1030_v1, %v995_v58  ;;  %v1639_v49 = vadd.f32 %v1635_v46, %v1600_v43  ;;  %v6818_v1 = vld [vmem:[#allocation57_spill] sm:$0xff]  ;;  %v6822_v44 = vld [vmem:[#allocation58_spill] sm:$0xff]  ;;  %p3025_p3 = pnand %p3024_p2, %p3018_p13 }
 0x5ff   :  { %v1146_v32 = vsel %vm1126_vm2, %v6819_v12, %v6818_v1  ;;  %v1638_v18 = vadd.f32 %v1634_v35, %v1599_v37  ;;  %v6823_v35 = vld [vmem:[#allocation121_spill] sm:$0xff] }
 0x600   :  { %v5527_v53 = vpop.permute.xlu1 %1668  ;;  %v1073_v58 = vadd.f32 %v1069_v20, %v1034_v56  ;;  %v1147_v20 = vsel %vm1126_vm2, %v6818_v1, %v6821_v36  ;;  %v1150_v56 = vadd.f32 %v1146_v32, %v1111_v5  ;;  %vm1828_vm2 = vcmask 605184   ;;  %v6829_v5 = vld [vmem:[#allocation175_spill] sm:$0xff] }
 0x601   :  { %v1674_v54 = vsel %vm1672_vm14, %v5527_v53, %v6812_v14  ;;  %v1673_v7 = vsel %vm1672_vm14, %v6816_v38, %v5527_v53  ;;  %v1185_v14 = vsel %vm1165_vm3, %v6823_v35, %v6822_v44  ;;  %v6833_v35 = vld [vmem:[#allocation42_spill] sm:$0xff] }
 0x602   :  { %v5529_v48 = vpop.permute.xlu0 %2173  ;;  %v1678_v25 = vadd.f32 %v1674_v54, %v1639_v49  ;;  %v1112_v46 = vadd.f32 %v1108_v16, %v1073_v58  ;;  %v1677_v33 = vadd.f32 %v1673_v7, %v1638_v18  ;;  %v6824_v54 = vld [vmem:[#allocation205_spill] sm:$0xff]  ;;  %v6827_v58 = vld [vmem:[#allocation67_spill] sm:$0xff]  ;;  %v6828_v7 = vld [vmem:[#allocation68_spill] sm:$0xff]  ;;  %v1189_v12 = vadd.f32 %v1185_v14, %v1150_v56 }
 0x603   :  { %v1224_v38 = vsel %vm1204_vm4, %v6827_v58, %v6826_v8 }
 0x604   :  { %v5545_v60 = vpop.permute.xlu1 %1707  ;;  %v1151_v49 = vadd.f32 %v1147_v20, %v1112_v46 }
 0x605   :  { %v1713_v27 = vsel %vm1711_vm15, %v5545_v60, %v6817_v63  ;;  %v1712_v53 = vsel %vm1711_vm15, %v6820_v59, %v5545_v60  ;;  %v1225_v63 = vsel %vm1204_vm4, %v6826_v8, %v6828_v7  ;;  %vm6264_vm4 = vcmask 506880  }
 0x606   :  { %v5547_v62 = vpop.permute.xlu0 %2177  ;;  %v1717_v43 = vadd.f32 %v1713_v27, %v1678_v25  ;;  %v1716_v24 = vadd.f32 %v1712_v53, %v1677_v33 }
 0x608   :  { %v5561_v31 = vpop.permute.xlu1 %1746 }
 0x609   :  { %v1752_v19 = vsel %vm1750_vm0, %v5561_v31, %v5308_v11  ;;  %v1751_v60 = vsel %vm1750_vm0, %v6824_v54, %v5561_v31  ;;  %v6825_v11 = vld [vmem:[#allocation40_spill] sm:$0xff] }
 0x60a   :  { %v5563_v51 = vpop.permute.xlu0 %2212  ;;  %v1186_v21 = vsel %vm1165_vm3, %v6822_v44, %v6825_v11  ;;  %v1756_v10 = vadd.f32 %v1752_v19, %v1717_v43  ;;  %vm6263_vm3 = vcmask 523264   ;;  %v1755_v27 = vadd.f32 %v1751_v60, %v1716_v24  ;;  %v6832_v44 = vld [vmem:[#allocation60_spill] sm:$0xff] }
 0x60b   :  { %v1190_v32 = vadd.f32 %v1186_v21, %v1151_v49  ;;  %v1228_v19 = vadd.f32 %v1224_v38, %v1189_v12  ;;  %v1302_v14 = vsel %vm1282_vm6, %v6833_v35, %v6832_v44  ;;  %v6836_v49 = vld [vmem:[#allocation73_spill] sm:$0xff] }
 0x60c   :  { %v1786_v26 = vpop.permute.xlu1 %1785 }
 0x60d   :  { %v1791_v47 = vsel %vm6262_vm1, %v1786_v26, %v5332_v50  ;;  %v1790_v31 = vsel %vm6262_vm1, %v5319_v3, %v1786_v26  ;;  %v6830_v3 = vld [vmem:[#allocation125_spill] sm:$0xff]  ;;  %vm1906_vm1 = vcmask 515072   ;;  %v1229_v36 = vadd.f32 %v1225_v63, %v1190_v32  ;;  %v6838_v63 = vld [vmem:[#allocation62_spill] sm:$0xff] }
 0x60e   :  { %v5580_v39 = vpop.permute.xlu0 %2216  ;;  %v1795_v1 = vadd.f32 %v1791_v47, %v1756_v10  ;;  %v1263_v26 = vsel %vm1243_vm5, %v6830_v3, %v6829_v5  ;;  %v6835_v10 = vld [vmem:[#allocation61_spill] sm:$0xff] }
 0x60f   :  { %v1267_v56 = vadd.f32 %v1263_v26, %v1228_v19  ;;  %v1341_v8 = vsel %vm1321_vm8, %v6836_v49, %v6835_v10  ;;  %v6843_v26 = vld [vmem:[#allocation63_spill] sm:$0xff] }
 0x610   :  { %v1825_v30 = vpop.permute.xlu1 %1824 }
 0x611   :  { %v1830_v50 = vsel %vm1828_vm2, %v1825_v30, %v5357_v15  ;;  %v1829_v18 = vsel %vm1828_vm2, %v5343_v29, %v1825_v30  ;;  %v1794_v15 = vadd.f32 %v1790_v31, %v1755_v27  ;;  %v6831_v30 = vld [vmem:[#allocation32_spill] sm:$0xff]  ;;  %v6839_v27 = vld [vmem:[#allocation75_spill] sm:$0xff] }
 0x612   :  { %v5600_v22 = vpop.permute.xlu0 %2251  ;;  %v1834_v46 = vadd.f32 %v1830_v50, %v1795_v1  ;;  %v6837_v50 = vld [vmem:[#allocation131_spill] sm:$0xff] }
 0x613   :  { %v1833_v33 = vadd.f32 %v1829_v18, %v1794_v15  ;;  %v1342_v7 = vsel %vm1321_vm8, %v6835_v10, %v6837_v50  ;;  %v6844_v15 = vld [vmem:[#allocation35_spill] sm:$0xff]  ;;  %vm6845_vm8 = vcmask 769024  }
 0x614   :  { %v1864_v61 = vpop.permute.xlu1 %1863 }
 0x615   :  { %v1869_v25 = vsel %vm6263_vm3, %v1864_v61, %v5383_v52  ;;  %v1868_v20 = vsel %vm6263_vm3, %v5369_v42, %v1864_v61  ;;  %v1264_v52 = vsel %vm1243_vm5, %v6829_v5, %v6831_v30  ;;  %v6834_v61 = vld [vmem:[#allocation71_spill] sm:$0xff]  ;;  %vm1984_vm3 = vcmask 498688   ;;  %v6841_v5 = vld [vmem:[#allocation132_spill] sm:$0xff] }
 0x616   :  { %v5622_v45 = vpop.permute.xlu0 %2255  ;;  %v1873_v43 = vadd.f32 %v1869_v25, %v1834_v46  ;;  %v1872_v60 = vadd.f32 %v1868_v20, %v1833_v33  ;;  %v1268_v24 = vadd.f32 %v1264_v52, %v1229_v36  ;;  %vm6840_vm5 = vcmask 777216   ;;  %v6846_v30 = vld [vmem:[#allocation47_spill] sm:$0xff]  ;;  %v6848_v33 = vld [vmem:[#allocation64_spill] sm:$0xff] }
 0x617   :  { %v1380_v1 = vsel %vm6840_vm5, %v6839_v27, %v6838_v63  ;;  %v1419_v46 = vsel %vm6845_vm8, %v6844_v15, %v6843_v26  ;;  %v6857_v27 = vld [vmem:[#allocation122_spill] sm:$0xff] }
 0x618   :  { %v1903_v16 = vpop.permute.xlu1 %1902 }
 0x619   :  { %v1908_v29 = vsel %vm1906_vm1, %v1903_v16, %v5409_v2  ;;  %v1907_v54 = vsel %vm1906_vm1, %v5395_v17, %v1903_v16  ;;  %v1303_v2 = vsel %vm1282_vm6, %v6832_v44, %v6834_v61  ;;  %v1306_v16 = vadd.f32 %v1302_v14, %v1267_v56  ;;  %v6851_v61 = vld [vmem:[#allocation65_spill] sm:$0xff] }
 0x61a   :  { %v5644_v37 = vpop.permute.xlu0 %2290  ;;  %v1912_v47 = vadd.f32 %v1908_v29, %v1873_v43  ;;  %v1911_v58 = vadd.f32 %v1907_v54, %v1872_v60  ;;  %v1307_v31 = vadd.f32 %v1303_v2, %v1268_v24  ;;  %vm2023_vm6 = vcmask 490496   ;;  %v6849_v43 = vld [vmem:[#allocation79_spill] sm:$0xff] }
 0x61b   :  { %v1345_v32 = vadd.f32 %v1341_v8, %v1306_v16  ;;  %v1458_v56 = vsel %vm1438_vm9, %v6849_v43, %v6848_v33  ;;  %v6852_v2 = vld [vmem:[#allocation83_spill] sm:$0xff]  ;;  %v6854_v16 = vld [vmem:[#allocation66_spill] sm:$0xff] }
 0x61c   :  { %v1942_v59 = vpop.permute.xlu1 %1941  ;;  %v1346_v19 = vadd.f32 %v1342_v7, %v1307_v31  ;;  %v1497_v60 = vsel %vm1477_vm7, %v6852_v2, %v6851_v61  ;;  %v6867_v2 = vld [vmem:[#allocation101_spill] sm:$0xff] }
 0x61d   :  { %v1947_v42 = vsel %vm6264_vm4, %v1942_v59, %v5433_v13  ;;  %v1946_v17 = vsel %vm6264_vm4, %v5421_v40, %v1942_v59  ;;  %vm6842_vm4 = vmmov %vm6840_vm5  ;;  %v1384_v36 = vadd.f32 %v1380_v1, %v1345_v32  ;;  %v6858_v1 = vld [vmem:[#allocation90_spill] sm:$0xff] }
 0x61e   :  { %v5663_v53 = vpop.permute.xlu0 %2294  ;;  %v1951_v38 = vadd.f32 %v1947_v42, %v1912_v47  ;;  %v1950_v40 = vadd.f32 %v1946_v17, %v1911_v58  ;;  %v1381_v3 = vsel %vm6842_vm4, %v6838_v63, %v6841_v5  ;;  %vm6847_vm5 = vmmov %vm6845_vm8  ;;  %vm2062_vm4 = vcmask 482304   ;;  %v6853_v17 = vld [vmem:[#allocation84_spill] sm:$0xff]  ;;  %v6855_v58 = vld [vmem:[#allocation85_spill] sm:$0xff] }
 0x61f   :  { %v1420_v52 = vsel %vm6847_vm5, %v6843_v26, %v6846_v30  ;;  %v1385_v44 = vadd.f32 %v1381_v3, %v1346_v19  ;;  %v1423_v35 = vadd.f32 %v1419_v46, %v1384_v36  ;;  %v6856_v63 = vld [vmem:[#allocation137_spill] sm:$0xff]  ;;  %v6859_v26 = vld [vmem:[#allocation92_spill] sm:$0xff]  ;;  %v6860_v46 = vld [vmem:[#allocation31_spill] sm:$0xff]  ;;  %vm2451_vm5 = vcmask 252928  }
 0x620   :  { %v1981_v11 = vpop.permute.xlu1 %1980  ;;  %v1576_v15 = vsel %vm1555_vm11, %v6857_v27, %v6859_v26  ;;  %v6863_v30 = vld [vmem:[#allocation41_spill] sm:$0xff] }
 0x621   :  { %v1986_v13 = vsel %vm1984_vm3, %v1981_v11, %v5455_v9  ;;  %v1985_v12 = vsel %vm1984_vm3, %v5444_v55, %v1981_v11  ;;  %v1424_v24 = vadd.f32 %v1420_v52, %v1385_v44  ;;  %v1462_v10 = vadd.f32 %v1458_v56, %v1423_v35  ;;  %v6864_v52 = vld [vmem:[#allocation98_spill] sm:$0xff] }
 0x622   :  { %v5682_v21 = vpop.permute.xlu0 %2329  ;;  %v1990_v18 = vadd.f32 %v1986_v13, %v1951_v38  ;;  %v1989_v20 = vadd.f32 %v1985_v12, %v1950_v40  ;;  %v1498_v13 = vsel %vm1477_vm7, %v6851_v61, %v6853_v17  ;;  %v1536_v38 = vsel %vm1516_vm10, %v6855_v58, %v6854_v16  ;;  %v6866_v61 = vld [vmem:[#allocation69_spill] sm:$0xff] }
 0x623   :  { %v1501_v50 = vadd.f32 %v1497_v60, %v1462_v10  ;;  %v1575_v12 = vsel %vm1555_vm11, %v6858_v1, %v6857_v27  ;;  %vm2140_vm7 = vcmask 392192   ;;  %v1692_v60 = vsel %vm1672_vm14, %v6867_v2, %v6866_v61  ;;  %v6868_v10 = vld [vmem:[#allocation104_spill] sm:$0xff]  ;;  %v6873_v27 = vld [vmem:[#allocation106_spill] sm:$0xff] }
 0x624   :  { %v2020_v9 = vpop.permute.xlu1 %2019  ;;  %vm2218_vm11 = vcmask 375808  }
 0x625   :  { %v2024_v59 = vsel %vm2023_vm6, %v5466_v28, %v2020_v9  ;;  %v2025_v55 = vsel %vm2023_vm6, %v2020_v9, %v5477_v57  ;;  %v6850_v57 = vld [vmem:[#allocation82_spill] sm:$0xff]  ;;  %v1540_v9 = vadd.f32 %v1536_v38, %v1501_v50 }
 0x626   :  { %v5699_v25 = vpop.permute.xlu0 %2333  ;;  %v2029_v29 = vadd.f32 %v2025_v55, %v1990_v18  ;;  %v2028_v14 = vadd.f32 %v2024_v59, %v1989_v20  ;;  %v1459_v42 = vsel %vm1438_vm9, %v6848_v33, %v6850_v57  ;;  %vm2101_vm9 = vcmask 474112   ;;  %v6861_v59 = vld [vmem:[#allocation143_spill] sm:$0xff] }
 0x627   :  { %v1463_v31 = vadd.f32 %v1459_v42, %v1424_v24  ;;  %v1614_v55 = vsel %vm1594_vm12, %v6861_v59, %v6860_v46  ;;  %v1579_v36 = vadd.f32 %v1575_v12, %v1540_v9  ;;  %v1653_v33 = vsel %vm1633_vm13, %v6864_v52, %v6863_v30  ;;  %v6865_v57 = vld [vmem:[#allocation147_spill] sm:$0xff]  ;;  %v6875_v9 = vld [vmem:[#allocation33_spill] sm:$0xff] }
 0x628   :  { %v2059_v28 = vpop.permute.xlu1 %2058  ;;  %v1654_v42 = vsel %vm1633_vm13, %v6863_v30, %v6865_v57 }
 0x629   :  { %v2063_v47 = vsel %vm2062_vm4, %v5487_v34, %v2059_v28  ;;  %v2064_v11 = vsel %vm2062_vm4, %v2059_v28, %v5497_v23  ;;  %v1537_v23 = vsel %vm1516_vm10, %v6854_v16, %v6856_v63  ;;  %v1502_v18 = vadd.f32 %v1498_v13, %v1463_v31 }
 0x62a   :  { %v5717_v54 = vpop.permute.xlu0 %2368  ;;  %v2067_v49 = vadd.f32 %v2063_v47, %v2028_v14  ;;  %v2068_v8 = vadd.f32 %v2064_v11, %v2029_v29  ;;  %v6862_v29 = vld [vmem:[#allocation144_spill] sm:$0xff]  ;;  %v1618_v35 = vadd.f32 %v1614_v55, %v1579_v36  ;;  %vm2179_vm10 = vcmask 384000   ;;  %v6878_v36 = vld [vmem:[#allocation109_spill] sm:$0xff] }
 0x62b   :  { %v1541_v19 = vadd.f32 %v1537_v23, %v1502_v18  ;;  %v6872_v23 = vld [vmem:[#allocation126_spill] sm:$0xff]  ;;  %v6874_v18 = vld [vmem:[#allocation107_spill] sm:$0xff] }
 0x62c   :  { %v2098_v7 = vpop.permute.xlu1 %2097  ;;  %v1657_v11 = vadd.f32 %v1653_v33, %v1618_v35  ;;  %v1770_v1 = vsel %vm1750_vm0, %v6873_v27, %v6872_v23  ;;  %v6884_v35 = vld [vmem:[#allocation115_spill] sm:$0xff]  ;;  %v6897_v27 = vld [vmem:[#allocation120_spill] sm:$0xff] }
 0x62d   :  { %v2102_v32 = vsel %vm2101_vm9, %v5509_v0, %v2098_v7  ;;  %v2103_v40 = vsel %vm2101_vm9, %v2098_v7, %v5515_v6  ;;  %v1615_v6 = vsel %vm1594_vm12, %v6860_v46, %v6862_v29  ;;  %v1580_v44 = vadd.f32 %v1576_v15, %v1541_v19  ;;  %v6871_v7 = vld [vmem:[#allocation148_spill] sm:$0xff] }
 0x62e   :  { %v5735_v34 = vpop.permute.xlu0 %2372  ;;  %v2106_v5 = vadd.f32 %v2102_v32, %v2067_v49  ;;  %v2107_v3 = vadd.f32 %v2103_v40, %v2068_v8  ;;  %v6869_v49 = vld [vmem:[#allocation70_spill] sm:$0xff]  ;;  %v6870_v8 = vld [vmem:[#allocation105_spill] sm:$0xff]  ;;  %v1696_v38 = vadd.f32 %v1692_v60, %v1657_v11  ;;  %vm6877_vm12 = vcmask 613376   ;;  %v6880_v29 = vld [vmem:[#allocation44_spill] sm:$0xff] }
 0x62f   :  { %v1619_v47 = vadd.f32 %v1615_v6, %v1580_v44  ;;  %v1731_v17 = vsel %vm1711_vm15, %v6870_v8, %v6869_v49  ;;  %v1732_v63 = vsel %vm1711_vm15, %v6869_v49, %v6871_v7  ;;  %vm6879_vm13 = vmmov %vm6877_vm12  ;;  %v6881_v6 = vld [vmem:[#allocation110_spill] sm:$0xff]  ;;  %vm6885_vm15 = vcmask 523264   ;;  %v6894_v7 = vld [vmem:[#allocation156_spill] sm:$0xff] }
 0x630   :  { %v2137_v20 = vpop.permute.xlu1 %2136  ;;  %v1735_v32 = vadd.f32 %v1731_v17, %v1696_v38  ;;  %v1848_v30 = vsel %vm1828_vm2, %v6881_v6, %v6880_v29  ;;  %v6883_v44 = vld [vmem:[#allocation34_spill] sm:$0xff] }
 0x631   :  { %v2141_v43 = vsel %vm2140_vm7, %v5523_v4, %v2137_v20  ;;  %v2142_v56 = vsel %vm2140_vm7, %v2137_v20, %v5525_v41  ;;  %v1693_v41 = vsel %vm1672_vm14, %v6866_v61, %v6868_v10  ;;  %v1658_v58 = vadd.f32 %v1654_v42, %v1619_v47  ;;  %v6886_v47 = vld [vmem:[#allocation116_spill] sm:$0xff]  ;;  %v6889_v10 = vld [vmem:[#allocation155_spill] sm:$0xff] }
 0x632   :  { %v5753_v0 = vpop.permute.xlu0 %2407  ;;  %v2145_v14 = vadd.f32 %v2141_v43, %v2106_v5  ;;  %v2146_v28 = vadd.f32 %v2142_v56, %v2107_v3  ;;  %v6876_v5 = vld [vmem:[#allocation150_spill] sm:$0xff]  ;;  %v1774_v59 = vadd.f32 %v1770_v1, %v1735_v32  ;;  %v1810_v20 = vsel %vm6879_vm13, %v6875_v9, %v6878_v36  ;;  %v6882_v56 = vld [vmem:[#allocation112_spill] sm:$0xff] }
 0x633   :  { %v1697_v12 = vadd.f32 %v1693_v41, %v1658_v58  ;;  %v1809_v3 = vsel %vm6877_vm12, %v6876_v5, %v6875_v9  ;;  %vm2257_vm14 = vcmask 367616   ;;  %v6892_v58 = vld [vmem:[#allocation119_spill] sm:$0xff]  ;;  %v6903_v36 = vld [vmem:[#allocation158_spill] sm:$0xff] }
 0x634   :  { %v2176_v24 = vpop.permute.xlu1 %2175  ;;  %v1813_v33 = vadd.f32 %v1809_v3, %v1774_v59  ;;  %v6899_v5 = vld [vmem:[#allocation135_spill] sm:$0xff]  ;;  %v6900_v3 = vld [vmem:[#allocation124_spill] sm:$0xff] }
 0x635   :  { %v2180_v13 = vsel %vm2179_vm10, %v5529_v48, %v2176_v24  ;;  %v2181_v16 = vsel %vm2179_vm10, %v2176_v24, %v5547_v62  ;;  %v1771_v62 = vsel %vm1750_vm0, %v6872_v23, %v6874_v18  ;;  %v1736_v46 = vadd.f32 %v1732_v63, %v1697_v12  ;;  %vm6887_vm0 = vmmov %vm6885_vm15  ;;  %v6888_v24 = vld [vmem:[#allocation46_spill] sm:$0xff]  ;;  %v6901_v59 = vld [vmem:[#allocation127_spill] sm:$0xff] }
 0x636   :  { %v5771_v4 = vpop.permute.xlu0 %2411  ;;  %v2184_v31 = vadd.f32 %v2180_v13, %v2145_v14  ;;  %v2185_v50 = vadd.f32 %v2181_v16, %v2146_v28  ;;  %v1887_v14 = vsel %vm6885_vm15, %v6884_v35, %v6883_v44  ;;  %v1852_v61 = vadd.f32 %v1848_v30, %v1813_v33  ;;  %v6891_v16 = vld [vmem:[#allocation76_spill] sm:$0xff]  ;;  %v6896_v23 = vld [vmem:[#allocation78_spill] sm:$0xff]  ;;  %v6904_v33 = vld [vmem:[#allocation129_spill] sm:$0xff] }
 0x637   :  { %v1775_v52 = vadd.f32 %v1771_v62, %v1736_v46  ;;  %v1888_v11 = vsel %vm6887_vm0, %v6883_v44, %v6886_v47  ;;  %v1926_v41 = vsel %vm1906_vm1, %v6889_v10, %v6888_v24  ;;  %v2004_v1 = vsel %vm1984_vm3, %v6897_v27, %v6896_v23  ;;  %v6898_v62 = vld [vmem:[#allocation123_spill] sm:$0xff] }
 0x638   :  { %v2215_v40 = vpop.permute.xlu1 %2214  ;;  %v1891_v8 = vadd.f32 %v1887_v14, %v1852_v61  ;;  %v2005_v9 = vsel %vm1984_vm3, %v6896_v23, %v6898_v62  ;;  %v6909_v61 = vld [vmem:[#allocation133_spill] sm:$0xff]  ;;  %vm2335_vm3 = vcmask 351232   ;;  %vm2646_vm15 = vcmask 211968  }
 0x639   :  { %v2219_v26 = vsel %vm2218_vm11, %v5563_v51, %v2215_v40  ;;  %v2220_v15 = vsel %vm2218_vm11, %v2215_v40, %v5580_v39  ;;  %v1849_v39 = vsel %vm1828_vm2, %v6880_v29, %v6882_v56  ;;  %v1814_v42 = vadd.f32 %v1810_v20, %v1775_v52  ;;  %v6905_v56 = vld [vmem:[#allocation39_spill] sm:$0xff]  ;;  %v6916_v62 = vld [vmem:[#allocation145_spill] sm:$0xff] }
 0x63a   :  { %v5789_v48 = vpop.permute.xlu0 %2445  ;;  %v2223_v55 = vadd.f32 %v2219_v26, %v2184_v31  ;;  %v2224_v19 = vadd.f32 %v2220_v15, %v2185_v50  ;;  %vm6893_vm2 = vcmask 506880   ;;  %v1930_v50 = vadd.f32 %v1926_v41, %v1891_v8 }
 0x63b   :  { %v1853_v49 = vadd.f32 %v1849_v39, %v1814_v42  ;;  %v1965_v38 = vsel %vm6893_vm2, %v6892_v58, %v6891_v16  ;;  %vm6895_vm8 = vmmov %vm6893_vm2  ;;  %v2043_v26 = vsel %vm2023_vm6, %v6900_v3, %v6899_v5  ;;  %v6906_v39 = vld [vmem:[#allocation159_spill] sm:$0xff]  ;;  %v6908_v42 = vld [vmem:[#allocation30_spill] sm:$0xff] }
 0x63c   :  { %v2254_v43 = vpop.permute.xlu1 %2253  ;;  %v1966_v63 = vsel %vm6895_vm8, %v6891_v16, %v6894_v7  ;;  %v1969_v32 = vadd.f32 %v1965_v38, %v1930_v50  ;;  %v2121_v44 = vsel %vm2101_vm9, %v6906_v39, %v6905_v56  ;;  %v2160_v47 = vsel %vm2140_vm7, %v6909_v61, %v6908_v42  ;;  %v6914_v7 = vld [vmem:[#allocation87_spill] sm:$0xff]  ;;  %v6918_v3 = vld [vmem:[#allocation37_spill] sm:$0xff] }
 0x63d   :  { %v2258_v28 = vsel %vm2257_vm14, %v5600_v22, %v2254_v43  ;;  %v2259_v57 = vsel %vm2257_vm14, %v2254_v43, %v5622_v45  ;;  %v6890_v45 = vld [vmem:[#allocation117_spill] sm:$0xff]  ;;  %v1892_v31 = vadd.f32 %v1888_v11, %v1853_v49 }
 0x63e   :  { %v5807_v51 = vpop.permute.xlu0 %2449  ;;  %v5819_v2 = vadd.f32 %v2258_v28, %v2223_v55  ;;  %v5821_v60 = vadd.f32 %v2259_v57, %v2224_v19  ;;  %v1927_v13 = vsel %vm1906_vm1, %v6888_v24, %v6890_v45  ;;  %v2008_v46 = vadd.f32 %v2004_v1, %v1969_v32  ;;  %v6902_v19 = vld [vmem:[#allocation36_spill] sm:$0xff]  ;;  %v6907_v28 = vld [vmem:[#allocation130_spill] sm:$0xff]  ;;  %v6910_v49 = vld [vmem:[#allocation161_spill] sm:$0xff] }
 0x63f   :  { %v1931_v12 = vadd.f32 %v1927_v13, %v1892_v31  ;;  %v2044_v55 = vsel %vm2023_vm6, %v6899_v5, %v6901_v59  ;;  %v2082_v20 = vsel %vm2062_vm4, %v6903_v36, %v6902_v19  ;;  %v2083_v43 = vsel %vm2062_vm4, %v6902_v19, %v6904_v33  ;;  %v6911_v45 = vld [vmem:[#allocation136_spill] sm:$0xff]  ;;  %v6912_v13 = vld [vmem:[#allocation134_spill] sm:$0xff]  ;;  %v6919_v59 = vld [vmem:[#allocation151_spill] sm:$0xff] }
 0x640   :  { %v2293_v22 = vpop.permute.xlu1 %2292  ;;  %v2047_v6 = vadd.f32 %v2043_v26, %v2008_v46  ;;  %v2122_v57 = vsel %vm2101_vm9, %v6905_v56, %v6907_v28  ;;  %v2161_v8 = vsel %vm2140_vm7, %v6908_v42, %v6910_v49  ;;  %v2199_v16 = vsel %vm2179_vm10, %v6912_v13, %v6911_v45  ;;  %v6913_v31 = vld [vmem:[#allocation140_spill] sm:$0xff]  ;;  %v6920_v19 = vld [vmem:[#allocation138_spill] sm:$0xff]  ;;  %v6922_v56 = vld [vmem:[#allocation153_spill] sm:$0xff] }
 0x641   :  { %v1970_v15 = vadd.f32 %v1966_v63, %v1931_v12  ;;  %v2200_v50 = vsel %vm2179_vm10, %v6911_v45, %v6913_v31  ;;  %v6915_v63 = vld [vmem:[#allocation142_spill] sm:$0xff]  ;;  %vm2296_vm1 = vcmask 359424   ;;  %v6917_v5 = vld [vmem:[#allocation88_spill] sm:$0xff]  ;;  %vm2374_vm6 = vcmask 343040   ;;  %v6927_v49 = vld [vmem:[#allocation185_spill] sm:$0xff] }
 0x642   :  { %v5829_v17 = vpop.permute.xlu0 %2484  ;;  %v2086_v14 = vadd.f32 %v2082_v20, %v2047_v6  ;;  %v2238_v23 = vsel %vm2218_vm11, %v6915_v63, %v6914_v7  ;;  %v2277_v26 = vsel %vm2257_vm14, %v6918_v3, %v6917_v5  ;;  %v6921_v36 = vld [vmem:[#allocation152_spill] sm:$0xff]  ;;  %v2317_v39 = vsel %vm2296_vm1, %v6920_v19, %v6922_v56  ;;  %v6930_v63 = vld [vmem:[#allocation162_spill] sm:$0xff] }
 0x643   :  { %v2009_v29 = vadd.f32 %v2005_v9, %v1970_v15  ;;  %v2239_v9 = vsel %vm2218_vm11, %v6914_v7, %v6916_v62  ;;  %v2316_v20 = vsel %vm2296_vm1, %v6921_v36, %v6920_v19  ;;  %v2297_v28 = vsel %vm2296_vm1, %v5644_v37, %v2293_v22  ;;  %v6928_v31 = vld [vmem:[#allocation160_spill] sm:$0xff]  ;;  %v6929_v7 = vld [vmem:[#allocation97_spill] sm:$0xff] }
 0x644   :  { %v2332_v40 = vpop.permute.xlu1 %2331  ;;  %v2125_v24 = vadd.f32 %v2121_v44, %v2086_v14  ;;  %v6923_v44 = vld [vmem:[#allocation93_spill] sm:$0xff]  ;;  %vm2490_vm4 = vcmask 244736   ;;  %vm2529_vm9 = vcmask 236544   ;;  %vm2568_vm7 = vcmask 228352  }
 0x645   :  { %v2048_v35 = vadd.f32 %v2044_v55, %v2009_v29  ;;  %v2278_v55 = vsel %vm2257_vm14, %v6917_v5, %v6919_v59  ;;  %v2336_v45 = vsel %vm2335_vm3, %v5682_v21, %v2332_v40  ;;  %v2337_v37 = vsel %vm2335_vm3, %v2332_v40, %v5699_v25  ;;  %v6935_v5 = vld [vmem:[#allocation164_spill] sm:$0xff]  ;;  %v6938_v19 = vld [vmem:[#allocation165_spill] sm:$0xff] }
 0x646   :  { %v5843_v18 = vpop.permute.xlu0 %2488  ;;  %v2164_v38 = vadd.f32 %v2160_v47, %v2125_v24  ;;  %v6925_v47 = vld [vmem:[#allocation157_spill] sm:$0xff]  ;;  %v6926_v24 = vld [vmem:[#allocation95_spill] sm:$0xff]  ;;  %vm6931_vm10 = vcmask 261120   ;;  %vm2607_vm14 = vcmask 220160  }
 0x647   :  { %v2087_v11 = vadd.f32 %v2083_v43, %v2048_v35  ;;  %v6924_v35 = vld [vmem:[#allocation154_spill] sm:$0xff]  ;;  %v2432_v21 = vsel %vm6931_vm10, %v6930_v63, %v6929_v7  ;;  %vm6933_vm11 = vmmov %vm6931_vm10 }
 0x648   :  { %v2371_v30 = vpop.permute.xlu1 %2370  ;;  %v2203_v1 = vadd.f32 %v2199_v16, %v2164_v38  ;;  %v2355_v14 = vsel %vm2335_vm3, %v6924_v35, %v6923_v44  ;;  %vm6936_vm12 = vmmov %vm6931_vm10  ;;  %v6941_v35 = vld [vmem:[#allocation193_spill] sm:$0xff] }
 0x649   :  { %v2126_v58 = vadd.f32 %v2122_v57, %v2087_v11  ;;  %v2298_v57 = vsel %vm2296_vm1, %v2293_v22, %v5663_v53  ;;  %v2356_v11 = vsel %vm2335_vm3, %v6923_v44, %v6925_v47  ;;  %v2301_v22 = vadd.f32 %v2297_v28, %v5819_v2  ;;  %vm6937_vm13 = vmmov %vm6931_vm10  ;;  %v6942_v28 = vld [vmem:[#allocation177_spill] sm:$0xff] }
 0x64a   :  { %v5857_v52 = vpop.permute.xlu0 %2523  ;;  %v2242_v46 = vadd.f32 %v2238_v23, %v2203_v1  ;;  %v2302_v16 = vadd.f32 %v2298_v57, %v5821_v60  ;;  %v2375_v25 = vsel %vm2374_vm6, %v5717_v54, %v2371_v30  ;;  %v2376_v40 = vsel %vm2374_vm6, %v2371_v30, %v5735_v34  ;;  %v6932_v1 = vld [vmem:[#allocation163_spill] sm:$0xff] }
 0x64b   :  { %v2165_v27 = vadd.f32 %v2161_v8, %v2126_v58  ;;  %v2394_v8 = vsel %vm2374_vm6, %v6927_v49, %v6926_v24  ;;  %v2433_v62 = vsel %vm6933_vm11, %v6929_v7, %v6932_v1  ;;  %v6943_v57 = vld [vmem:[#allocation167_spill] sm:$0xff] }
 0x64c   :  { %v2410_v10 = vpop.permute.xlu1 %2409  ;;  %v2281_v6 = vadd.f32 %v2277_v26, %v2242_v46  ;;  %v2341_v60 = vadd.f32 %v2337_v37, %v2302_v16  ;;  %v6946_v16 = vld [vmem:[#allocation169_spill] sm:$0xff] }
 0x64d   :  { %v2204_v15 = vadd.f32 %v2200_v50, %v2165_v27  ;;  %v2395_v50 = vsel %vm2374_vm6, %v6926_v24, %v6928_v31  ;;  %v2340_v27 = vadd.f32 %v2336_v45, %v2301_v22  ;;  %v2413_v26 = vsel %vm6936_vm12, %v5753_v0, %v2410_v10  ;;  %v6945_v22 = vld [vmem:[#allocation178_spill] sm:$0xff] }
 0x64e   :  { %v5871_v41 = vpop.permute.xlu0 %2527  ;;  %v2320_v61 = vadd.f32 %v2316_v20, %v2281_v6  ;;  %v2414_v54 = vsel %vm6937_vm13, %v2410_v10, %v5771_v4  ;;  %v2380_v46 = vadd.f32 %v2376_v40, %v2341_v60  ;;  %v6939_v20 = vld [vmem:[#allocation100_spill] sm:$0xff]  ;;  %v2588_v31 = vsel %vm2568_vm7, %v6946_v16, %v6945_v22  ;;  %v6950_v60 = vld [vmem:[#allocation201_spill] sm:$0xff] }
 0x64f   :  { %v2243_v29 = vadd.f32 %v2239_v9, %v2204_v15  ;;  %v6934_v9 = vld [vmem:[#allocation176_spill] sm:$0xff]  ;;  %v2379_v30 = vadd.f32 %v2375_v25, %v2340_v27 }
 0x650   :  { %v2448_v12 = vpop.permute.xlu1 %2447  ;;  %v2359_v53 = vadd.f32 %v2355_v14, %v2320_v61  ;;  %v2471_v3 = vsel %vm2451_vm5, %v6935_v5, %v6934_v9  ;;  %v2472_v36 = vsel %vm2451_vm5, %v6934_v9, %v6938_v19  ;;  %v2418_v44 = vadd.f32 %v2414_v54, %v2380_v46 }
 0x651   :  { %v2282_v42 = vadd.f32 %v2278_v55, %v2243_v29  ;;  %v6940_v29 = vld [vmem:[#allocation166_spill] sm:$0xff]  ;;  %v2452_v0 = vsel %vm2451_vm5, %v5789_v48, %v2448_v12  ;;  %v2453_v4 = vsel %vm2451_vm5, %v2448_v12, %v5807_v51  ;;  %v2511_v14 = vsel %vm2490_vm4, %v6939_v20, %v6941_v35 }
 0x652   :  { %v5885_v32 = vpop.permute.xlu0 %2562  ;;  %v2398_v2 = vadd.f32 %v2394_v8, %v2359_v53  ;;  %v2510_v6 = vsel %vm2490_vm4, %v6940_v29, %v6939_v20  ;;  %v6944_v8 = vld [vmem:[#allocation168_spill] sm:$0xff] }
 0x653   :  { %v2321_v13 = vadd.f32 %v2317_v39, %v2282_v42  ;;  %v2417_v39 = vadd.f32 %v2413_v26, %v2379_v30  ;;  %v2549_v42 = vsel %vm2529_vm9, %v6943_v57, %v6942_v28  ;;  %v2550_v45 = vsel %vm2529_vm9, %v6942_v28, %v6944_v8 }
 0x654   :  { %v2487_v33 = vpop.permute.xlu1 %2486  ;;  %v2436_v34 = vadd.f32 %v2432_v21, %v2398_v2  ;;  %v6949_v2 = vld [vmem:[#allocation170_spill] sm:$0xff]  ;;  %v3101_v57 = vmov 1966171168  }
 0x655   :  { %v2360_v23 = vadd.f32 %v2356_v11, %v2321_v13  ;;  %v2491_v61 = vsel %vm2490_vm4, %v5829_v17, %v2487_v33  ;;  %v2492_v48 = vsel %vm2490_vm4, %v2487_v33, %v5843_v18  ;;  %v2456_v12 = vadd.f32 %v2452_v0, %v2417_v39 }
 0x656   :  { %v5899_v43 = vpop.permute.xlu0 %2566  ;;  %v2475_v56 = vadd.f32 %v2471_v3, %v2436_v34  ;;  %v2457_v11 = vadd.f32 %v2453_v4, %v2418_v44 }
 0x657   :  { %v2399_v15 = vadd.f32 %v2395_v50, %v2360_v23  ;;  %v2495_v18 = vadd.f32 %v2491_v61, %v2456_v12  ;;  %v6947_v50 = vld [vmem:[#allocation198_spill] sm:$0xff]  ;;  %v6948_v23 = vld [vmem:[#allocation179_spill] sm:$0xff] }
 0x658   :  { %v2526_v58 = vpop.permute.xlu1 %2525  ;;  %v2514_v51 = vadd.f32 %v2510_v6, %v2475_v56  ;;  %v2496_v33 = vadd.f32 %v2492_v48, %v2457_v11  ;;  %v2589_v7 = vsel %vm2568_vm7, %v6945_v22, %v6947_v50  ;;  %v2627_v27 = vsel %vm2607_vm14, %v6949_v2, %v6948_v23  ;;  %v6955_v22 = vld [vmem:[#allocation16_spill] sm:$0xff] }
 0x659   :  { %v2437_v10 = vadd.f32 %v2433_v62, %v2399_v15  ;;  %v2530_v37 = vsel %vm2529_vm9, %v5857_v52, %v2526_v58  ;;  %v2531_v17 = vsel %vm2529_vm9, %v2526_v58, %v5871_v41  ;;  %v2628_v1 = vsel %vm2607_vm14, %v6948_v23, %v6950_v60  ;;  %v6961_v23 = vld [vmem:[#allocation20_spill] sm:$0xff] }
 0x65a   :  { %v2602_v38 = vpop.permute.xlu0 %2601  ;;  %v2553_v53 = vadd.f32 %v2549_v42, %v2514_v51  ;;  %v2534_v41 = vadd.f32 %v2530_v37, %v2495_v18  ;;  %v2535_v58 = vadd.f32 %v2531_v17, %v2496_v33  ;;  %v2690_v42 = vunpack.c.l.s4 %v3101_v57  ;;  %v6953_v37 = vld [vmem:[#allocation12_spill] sm:$0xff] }
 0x65b   :  { %v2476_v47 = vadd.f32 %v2472_v36, %v2437_v10  ;;  %v6951_v36 = vld [vmem:[#allocation203_spill] sm:$0xff] }
 0x65c   :  { %v2565_v59 = vpop.permute.xlu1 %2564  ;;  %v2592_v9 = vadd.f32 %v2588_v31, %v2553_v53  ;;  %v2691_v61 = vunpack.c.0.s8 %v2690_v42  ;;  %v6956_v31 = vld [vmem:[#allocation17_spill] sm:$0xff] }
 0x65d   :  { %v2515_v13 = vadd.f32 %v2511_v14, %v2476_v47  ;;  %v2569_v63 = vsel %vm2568_vm7, %v5885_v32, %v2565_v59  ;;  %v2570_v52 = vsel %vm2568_vm7, %v2565_v59, %v5899_v43  ;;  %v6952_v47 = vld [vmem:[#allocation11_spill] sm:$0xff] }
 0x65e   :  { %v2606_v55 = vpop.permute.xlu0 %2605  ;;  %v2573_v5 = vadd.f32 %v2569_v63, %v2534_v41  ;;  %v2574_v3 = vadd.f32 %v2570_v52, %v2535_v58  ;;  %v2631_v15 = vadd.f32 %v2627_v27, %v2592_v9  ;;  %v2694_v51 = vsub.s32 %v2691_v61, %v6952_v47  ;;  %v6958_v52 = vld [vmem:[#allocation15_spill] sm:$0xff]  ;;  %v6959_v41 = vld [vmem:[#allocation18_spill] sm:$0xff]  ;;  %v6962_v27 = vld [vmem:[#allocation21_spill] sm:$0xff] }
 0x65f   :  { %v2554_v21 = vadd.f32 %v2550_v45, %v2515_v13  ;;  %v6954_v13 = vld [vmem:[#allocation13_spill] sm:$0xff] }
 0x660   :  { %v2604_v24 = vpop.permute.xlu1 %2603 }
 0x661   :  { %v2608_v62 = vsel %vm2607_vm14, %v2602_v38, %v2604_v24  ;;  %v2609_v32 = vsel %vm2607_vm14, %v2604_v24, %v2606_v55  ;;  %v2593_v43 = vadd.f32 %v2589_v7, %v2554_v21  ;;  %v6957_v7 = vld [vmem:[#allocation14_spill] sm:$0xff] }
 0x662   :  { %v2641_v49 = vpop.permute.xlu0 %2640  ;;  %v2612_v30 = vadd.f32 %v2608_v62, %v2573_v5  ;;  %v2613_v46 = vadd.f32 %v2609_v32, %v2574_v3  ;;  %v6964_v32 = vld [vmem:[#allocation23_spill] sm:$0xff]  ;;  %v6966_v3 = vld [vmem:[#allocation25_spill] sm:$0xff] }
 0x663   :  { %v2632_v34 = vadd.f32 %v2628_v1, %v2593_v43  ;;  %v6963_v1 = vld [vmem:[#allocation22_spill] sm:$0xff]  ;;  %v6965_v43 = vld [vmem:[#allocation24_spill] sm:$0xff] }
 0x664   :  { %v2643_v25 = vpop.permute.xlu1 %2642 }
 0x665   :  { %v2647_v26 = vsel %vm2646_vm15, %v2641_v49, %v2643_v25 }
 0x666   :  { %v2645_v40 = vpop.permute.xlu0 %2644  ;;  %v2651_v55 = vadd.f32 %v2647_v26, %v2612_v30 }
 0x667   :  { %v2648_v54 = vsel %vm2646_vm15, %v2643_v25, %v2645_v40  ;;  %v6960_v25 = vld [vmem:[#allocation19_spill] sm:$0xff] }
 0x668   :  { %v2665_v59 = vpop.permute.xlu1 %2664  ;;  %v2652_v29 = vadd.f32 %v2648_v54, %v2613_v46  ;;  %v6967_v54 = vld [vmem:[#allocation26_spill] sm:$0xff]  ;;  %v6969_v46 = vld [vmem:[#allocation28_spill] sm:$0xff] }
 0x66a   :  { %v2663_v19 = vpop.permute.xlu0 %2662 }
 0x66b   :  { %v2666_v20 = vsel %vm2646_vm15, %v6951_v36, %v2663_v19  ;;  %v2667_v38 = vsel %vm2646_vm15, %v2663_v19, %v2665_v59  ;;  %v6970_v19 = vld [vmem:[#allocation29_spill] sm:$0xff] }
 0x66c   :  { %v2670_v6 = vadd.f32 %v2666_v20, %v2631_v15  ;;  %v2671_v0 = vadd.f32 %v2667_v38, %v2632_v34  ;;  %v6968_v34 = vld [vmem:[#allocation27_spill] sm:$0xff] }
 0x66e   :  { %v2672_v4 = vadd.f32 %v2670_v6, %v2651_v55  ;;  %v2673_v10 = vadd.f32 %v2671_v0, %v2652_v29 }
 0x670   :  { %v2882_v56 = vmul.f32 -1.442695, %v2672_v4  ;;  %v2883_v39 = vmul.f32 -1.442695, %v2673_v10 }
 0x672   :  { %2975 = vpow2.f32 %v2882_v56 }
 0x673   :  { %2977 = vpow2.f32 %v2883_v39 }
 0x67c   :  { %v2976_v44 = vpop.eup %2975 }
 0x67d   :  { %v2978_v35 = vpop.eup %2977  ;;  %v2680_v14 = vadd.f32 1.0, %v2976_v44 }
 0x67e   :  { %v2681_v28 = vadd.f32 1.0, %v2978_v35 }
 0x67f   :  { %2979 = vrcp.f32 %v2680_v14 }
 0x680   :  { %2981 = vrcp.f32 %v2681_v28 }
 0x689   :  { %v2980_v48 = vpop.eup %2979 }
 0x68a   :  { %v2982_v12 = vpop.eup %2981 }
 0x68b   :  { %v2688_v11 = vcombine.low %v2980_v48, %v2982_v12 }
 0x68d   :  { %v2695_v24 = vrot.slane %v2688_v11, %v2694_v51 }
 0x68f   :  { %v2696_v49 = vcombine.high %v2695_v24, %v2695_v24  ;;  %v2703_v8 = vrot.slane %v2695_v24, %v2694_v51 }
 0x691   :  { %v2710_v45 = vrot.slane %v2696_v49, %v2694_v51  ;;  %v2714_v17 = vrot.slane %v2703_v8, %v6953_v37  ;;  %v2718_v53 = vrot.slane %v2703_v8, %v6954_v13 }
 0x693   :  { %v2722_v18 = vrot.slane %v2710_v45, %v6953_v37  ;;  %v2726_v33 = vrot.slane %v2710_v45, %v6954_v13  ;;  %v2731_v16 = vmul.f32 %v2714_v17, %v6955_v22  ;;  %v2732_v50 = vmul.f32 %v2718_v53, %v6956_v31 }
 0x694   :  { %v2733_v63 = vmul.f32 %v2714_v17, %v6957_v7  ;;  %v2734_v21 = vmul.f32 %v2718_v53, %v6958_v52  ;;  %v2735_v58 = vmul.f32 %v2714_v17, %v6959_v41  ;;  %v2736_v40 = vmul.f32 %v2718_v53, %v6960_v25 }
 0x695   :  { %v2737_v2 = vmul.f32 %v2714_v17, %v6961_v23  ;;  %v2738_v60 = vmul.f32 %v2718_v53, %v6962_v27  ;;  %v2739_v62 = vmul.f32 %v2722_v18, %v6963_v1  ;;  %v2740_v9 = vmul.f32 %v2726_v33, %v6964_v32  ;;  %2747 = vst [vmem:[#allocation7] sm:$0xff] %v2731_v16 }
 0x696   :  { %2748 = vst [vmem:[#allocation7 + $0x8] sm:$0xff] %v2732_v50  ;;  %v2741_v5 = vmul.f32 %v2722_v18, %v6965_v43  ;;  %v2742_v26 = vmul.f32 %v2726_v33, %v6966_v3  ;;  %v2743_v15 = vmul.f32 %v2722_v18, %v6967_v54  ;;  %v2744_v30 = vmul.f32 %v2726_v33, %v6968_v34 }
 0x697   :  { %2749 = vst [vmem:[#allocation7 + $0x10] sm:$0xff] %v2733_v63  ;;  %2750 = vst [vmem:[#allocation7 + $0x18] sm:$0xff] %v2734_v21  ;;  %v2745_v59 = vmul.f32 %v2722_v18, %v6969_v46  ;;  %v2746_v36 = vmul.f32 %v2726_v33, %v6970_v19 }
 0x698   :  { %2751 = vst [vmem:[#allocation7 + $0x20] sm:$0xff] %v2735_v58  ;;  %2752 = vst [vmem:[#allocation7 + $0x28] sm:$0xff] %v2736_v40 }
 0x699   :  { %2753 = vst [vmem:[#allocation7 + $0x30] sm:$0xff] %v2737_v2  ;;  %2754 = vst [vmem:[#allocation7 + $0x38] sm:$0xff] %v2738_v60 }
 0x69a   :  { %2755 = vst [vmem:[#allocation7 + $0x40] sm:$0xff] %v2739_v62  ;;  %2756 = vst [vmem:[#allocation7 + $0x48] sm:$0xff] %v2740_v9 }
 0x69b   :  { %2757 = vst [vmem:[#allocation7 + $0x50] sm:$0xff] %v2741_v5  ;;  %2758 = vst [vmem:[#allocation7 + $0x58] sm:$0xff] %v2742_v26 }
 0x69c   :  { %2759 = vst [vmem:[#allocation7 + $0x60] sm:$0xff] %v2743_v15  ;;  %2760 = vst [vmem:[#allocation7 + $0x68] sm:$0xff] %v2744_v30 }
 0x69d   :  { %2761 = vst [vmem:[#allocation7 + $0x70] sm:$0xff] %v2745_v59  ;;  %2762 = vst [vmem:[#allocation7 + $0x78] sm:$0xff] %v2746_v36 }
 0x69e   :  { %3028 = shalt.err (!%p3025_p3)
}
 0x69f   :  { %s3029_s8 = scalar_lea.hbm %s6034_s5, 2048 }
 0x6a0   :  { %p3030_p4 = scmp.ne.s32.totalorder %s6034_s5, %s3029_s8  ;;  %p3033_p5 = scmp.lt.u32.totalorder %s3029_s8, %s6034_s5 }
 0x6a2   :  { %p3035_p6 = pnand %p3033_p5, %p3030_p4 }
 0x6a4   :  { %3038 = shalt.err (!%p3035_p6)
}
 0x6a5   :  { %s6971_s2 = smov 16   ;;  %s6972_s20 = smov 256  }
 0x6a6   :  { %2774 = dma.vmem_to_hbm [thread:$0]  %s2769_s13, 2048, %s6034_s5, [#allocation4], %s6972_s20, %s6972_s20, %s6971_s2  }
 0x6a7   :  { %3043 = dma.done.wait [#allocation4], 2048  }
 0x6a8   :  { %3044 = vsyncadd [#allocation4], 4294965248 }
 0x6a9   :  { %2778 = vsyncpa [#allocation3], 1 }
 0x6aa   :  { %2779 = vsyncpa [#allocation4], 1 }
 0x6ab   :  { %2780 = vsyncpa [#allocation5], 1 }

</bundles_post_ra>
